<compile_context>
chip_gen: v6e
topology: v6e:2x2x1
jax: 0.10.0
libtpu: 0.0.40
codegen_flags: <defaults>
</compile_context>

<pallas_src>
import functools

import jax
import jax.numpy as jnp
from jax.experimental import pallas as pl
from jax.experimental.pallas import tpu as pltpu


DOT_DTYPE = jnp.bfloat16              # MXU-native operand dtype; accumulation f32.
_VMEM_LIMIT = 32 * 1024 * 1024        # explicit scoped-VMEM budget per kernel.


# ----------------------------------------------------------------------------
# In-kernel math helpers (traced inside Pallas kernels)
# ----------------------------------------------------------------------------
def _mm(a, b):
    """2-D matmul with f32 accumulation (operands are expected to be bf16)."""
    return jax.lax.dot_general(
        a, b, dimension_numbers=(((1,), (0,)), ((), ())),
        preferred_element_type=jnp.float32)


def _gelu(x):
    # tanh-approximate GELU: the tanh runs on the EUP (a separate VLIW slot),
    # replacing ~12 VALU ops + an exp of the erf-polynomial form.
    # TODO(synk): PyTorch nn.GELU defaults to exact erf; tanh form deviates ~1e-3.
    c = 0.7978845608028654  # sqrt(2/pi)
    return 0.5 * x * (1.0 + jnp.tanh(c * (x + 0.044715 * x * x * x)))


def _ln(x, g, b, eps=1e-5):
    mu = jnp.mean(x, axis=-1, keepdims=True)
    var = jnp.mean(jnp.square(x - mu), axis=-1, keepdims=True)
    return (x - mu) * jax.lax.rsqrt(var + eps) * g + b


# ----------------------------------------------------------------------------
# Pallas kernels
# ----------------------------------------------------------------------------
def _embed_kernel(x_ref, w_ref, b_ref, o_ref):
    """Patch embedding: one (t, P) @ (P, dim) matmul + bias per (batch, person)."""
    o_ref[0] = _mm(x_ref[0].astype(DOT_DTYPE), w_ref[...]) + b_ref[...]


def _tcn_kernel(x_ref, w1_ref, w2_ref, s1_ref, t1_ref, s2_ref, t2_ref, o_ref, *,
                ksize, dilations):
    """Two dilated-conv levels + BatchNorm(eval) + GELU for ONE sequence.

    x_ref : (1, T, 2)        rows = time, lanes = input channels
    wX    : (ksize*Cin, Cout) rows k*Cin:(k+1)*Cin = torch convX.weight[:, :, k].T
    sX/tX : (1, Cout)         folded BatchNorm scale / (conv bias + BN shift)

    The zero-padded dilated conv is expressed as: concat over taps of the
    time-rolled (pltpu.roll, XLU) and edge-masked input, followed by a single
    dense matmul per level -- no shift matrices, no O(R^2) MXU work.
    """
    T = x_ref.shape[1]

    def conv(h, w_ref, dil):
        pad = (ksize - 1) * dil // 2
        cols = []
        for k in range(ksize):
            off = k * dil - pad                        # static Python int
            if off == 0:
                cols.append(h)
            else:
                sh = pltpu.roll(h, shift=(-off) % T, axis=0)
                idx = jax.lax.broadcasted_iota(jnp.int32, h.shape, 0)
                valid = (idx + off >= 0) & (idx + off < T)
                cols.append(jnp.where(valid, sh, jnp.zeros_like(sh)))
        xc = jnp.concatenate(cols, axis=1).astype(DOT_DTYPE)   # (T, ksize*Cin)
        return _mm(xc, w_ref[...])                              # (T, Cout) f32

    h1 = _gelu(conv(x_ref[0], w1_ref, dilations[0]) * s1_ref[...] + t1_ref[...])
    o_ref[0] = _gelu(conv(h1, w2_ref, dilations[1]) * s2_ref[...] + t2_ref[...])


def _transformer_kernel(x_ref, pe_ref, tok_ref,
                        ln1_g, ln1_b, wqkv, wo, bo,
                        ln2_g, ln2_b, fw1, fb1, fw2, fb2,
                        ng, nb, o_ref, *, depth, heads, dim_head):
    """All transformer layers for ONE independent sequence; only cls row written.

    x_ref  : (1, S-1, D)  sequence features (cls token prepended in-kernel)
    pe_ref : (1, S, D)    positional embedding slice for this sequence
    tok_ref: (1, D)       cls token
    wqkv   : (L, D, 3*H*Dh)  fused QKV weights (Q columns pre-scaled by Dh^-0.5)
    wo     : (L, H*Dh, D)    fused (head-merged) output projection
    """
    hdh = heads * dim_head
    # Fused prolog: cls-token prepend + positional-embedding add (stays in VMEM).
    x = jnp.concatenate([tok_ref[...], x_ref[0]], axis=0) + pe_ref[0]   # (S, D) f32

    for l in range(depth):
        # ---- attention (pre-norm), fused QKV, folded scale ----
        y16 = _ln(x, ln1_g[l], ln1_b[l]).astype(DOT_DTYPE)
        qkv = _mm(y16, wqkv[l]).astype(DOT_DTYPE)                # (S, 3*H*Dh)
        ctx = []
        for h in range(heads):
            q = qkv[:, h * dim_head:(h + 1) * dim_head]
            k = qkv[:, hdh + h * dim_head:hdh + (h + 1) * dim_head]
            v = qkv[:, 2 * hdh + h * dim_head:2 * hdh + (h + 1) * dim_head]
            s = jax.lax.dot_general(q, k, (((1,), (1,)), ((), ())),
                                    preferred_element_type=jnp.float32)  # (S, S)
            m = jnp.max(s, axis=-1, keepdims=True)
            p = jnp.exp(s - m)
            inv = pl.reciprocal(jnp.sum(p, axis=-1, keepdims=True), approx=True)
            ctx.append(_mm((p * inv).astype(DOT_DTYPE), v))      # (S, Dh) f32
        ctx16 = jnp.concatenate(ctx, axis=1).astype(DOT_DTYPE)   # (S, H*Dh)
        x = x + _mm(ctx16, wo[l]) + bo[l]

        # ---- feed-forward (pre-norm) ----
        y2 = _ln(x, ln2_g[l], ln2_b[l]).astype(DOT_DTYPE)
        hmid = _gelu(_mm(y2, fw1[l]) + fb1[l]).astype(DOT_DTYPE)
        x = x + _mm(hmid, fw2[l]) + fb2[l]

    # Final LayerNorm; only the cls row is consumed downstream.
    o_ref[0] = _ln(x[0:1, :], ng[...], nb[...])


def _head_kernel(x_ref, g_ref, b_ref, w1_ref, b1_ref, w2_ref, b2_ref, o_ref):
    y = _ln(x_ref[...], g_ref[...], b_ref[...]).astype(DOT_DTYPE)
    h = _gelu(_mm(y, w1_ref[...]) + b1_ref[...]).astype(DOT_DTYPE)
    o_ref[...] = _mm(h, w2_ref[...]) + b2_ref[...]


# ----------------------------------------------------------------------------
# Wrappers around pallas_call
# ----------------------------------------------------------------------------
def _full_spec(w):
    """Whole-array block with a constant index map (weight reused on every step)."""
    return pl.BlockSpec(w.shape, lambda i, nd=w.ndim: (0,) * nd)


def _run_transformer(x3d, pe, token, tf, *, heads, dim_head):
    """x3d: (G, Sin, D) independent sequences; pe: (npe, Sin+1, D); token: (1, D)."""
    G, Sin, D = x3d.shape
    S = Sin + 1
    depth = tf["wqkv"].shape[0]
    mlp = tf["ff_w1"].shape[-1]
    hdh = heads * dim_head
    npe = pe.shape[0]

    names = ("ln1_g", "ln1_b", "wqkv", "wo", "bo", "ln2_g", "ln2_b",
             "ff_w1", "ff_b1", "ff_w2", "ff_b2", "norm_g", "norm_b")
    weights = [tf[k] for k in names]

    if npe == 1:
        pe_map = lambda i: (0, 0, 0)
    else:
        pe_map = lambda i: (i % npe, 0, 0)       # person index for the pos-emb slice

    # Advisory cost estimate for XLA's scheduler.
    flops = G * depth * (2 * S * D * 3 * hdh + 4 * heads * S * S * dim_head
                         + 2 * S * hdh * D + 4 * S * D * mlp)
    transc = G * depth * (heads * S * S + S * mlp)
    nbytes = (x3d.size * 4 + pe.size * 4 + G * D * 4
              + sum(int(w.size) * w.dtype.itemsize for w in weights))

    kern = functools.partial(_transformer_kernel, depth=depth, heads=heads,
                             dim_head=dim_head)
    return pl.pallas_call(
        kern,
        grid=(G,),
        in_specs=[pl.BlockSpec((1, Sin, D), lambda i: (i, 0, 0)),
                  pl.BlockSpec((1, S, D), pe_map),
                  pl.BlockSpec(token.shape, lambda i: (0, 0))]
                 + [_full_spec(w) for w in weights],
        out_specs=pl.BlockSpec((1, 1, D), lambda i: (i, 0, 0)),
        out_shape=jax.ShapeDtypeStruct((G, 1, D), jnp.float32),
        compiler_params=pltpu.CompilerParams(
            dimension_semantics=("parallel",), vmem_limit_bytes=_VMEM_LIMIT),
        cost_estimate=pl.CostEstimate(flops=int(flops), transcendentals=int(transc),
                                      bytes_accessed=int(nbytes)),
    )(x3d, pe, token, *weights)


# ----------------------------------------------------------------------------
# TemPoseII_TF forward (eval)
# ----------------------------------------------------------------------------
def tempose_forward(params, x, sp, *, heads, dim_head, kernel_size):
    b, t, n_in, P = x.shape
    dim = params["embed_w"].shape[1]
    n = n_in + 3                                            # self.people

    # ---- 1. patch embedding : 'b t n d -> b n t d' then Linear ------------
    xe_in = jnp.transpose(x, (0, 2, 1, 3)).reshape(b * n_in, t, P)
    xe = pl.pallas_call(
        _embed_kernel,
        grid=(b * n_in,),
        in_specs=[pl.BlockSpec((1, t, P), lambda i: (i, 0, 0)),
                  _full_spec(params["embed_w"]),
                  _full_spec(params["embed_b"])],
        out_specs=pl.BlockSpec((1, t, dim), lambda i: (i, 0, 0)),
        out_shape=jax.ShapeDtypeStruct((b * n_in, t, dim), jnp.float32),
        compiler_params=pltpu.CompilerParams(
            dimension_semantics=("parallel",), vmem_limit_bytes=_VMEM_LIMIT),
    )(xe_in, params["embed_w"], params["embed_b"])
    xe = xe.reshape(b, n_in, t, dim)

    # ---- 2. TCN (tcn1/tcn2/tcn3 share weights; dilations 1, 3 = 2*i+1) -----
    tcn_in = jnp.concatenate([sp[:, :, 0:2], sp[:, :, 2:4], sp[:, :, -2:]], axis=0)
    tp = params["tcn"]
    c2 = tp["w2"].shape[-1]
    tcn_w = [tp["w1"], tp["w2"], tp["s1"], tp["t1"], tp["s2"], tp["t2"]]
    tcn_out = pl.pallas_call(
        functools.partial(_tcn_kernel, ksize=kernel_size, dilations=(1, 3)),
        grid=(3 * b,),
        in_specs=[pl.BlockSpec((1, t, 2), lambda i: (i, 0, 0))]
                 + [_full_spec(w) for w in tcn_w],
        out_specs=pl.BlockSpec((1, t, c2), lambda i: (i, 0, 0)),
        out_shape=jax.ShapeDtypeStruct((3 * b, t, c2), jnp.float32),
        compiler_params=pltpu.CompilerParams(
            dimension_semantics=("parallel",), vmem_limit_bytes=_VMEM_LIMIT),
    )(tcn_in, *tcn_w)
    tcn_out = tcn_out.reshape(3, b, t, c2)

    # ---- 3. temporal transformer (grid over b*n independent sequences) -----
    xt = jnp.concatenate(
        [xe, tcn_out[0][:, None], tcn_out[1][:, None], tcn_out[2][:, None]], axis=1
    ).reshape(b * n, t, dim)                                # (b*n, t, dim)
    pe_t = params["temporal_embedding"][0, :, :t + 1, :]    # (n, t+1, dim)
    # TODO(synk): t_pad attention masking not implemented (t_pad=None path only;
    # with the all-ones mask the PyTorch masked_fill is a no-op).
    cls_t = _run_transformer(xt, pe_t, params["temporal_token"],
                             params["temporal_tf"], heads=heads, dim_head=dim_head)
    xcls = cls_t.reshape(b, n, dim)

    # ---- 4. interaction transformer (grid over batch) -----------------------
    pe_i = params["interaction_embedding"][:, :n + 1, :]    # (1, n+1, dim)
    cls_i = _run_transformer(xcls, pe_i, params["interaction_token"],
                             params["interaction_tf"], heads=heads, dim_head=dim_head)
    x0 = cls_i.reshape(b, dim)                               # pool == 'cls'

    # ---- 5. mlp head ---------------------------------------------------------
    num_classes = params["head_w2"].shape[1]
    logits = pl.pallas_call(
        _head_kernel,
        out_shape=jax.ShapeDtypeStruct((b, num_classes), jnp.float32),
        compiler_params=pltpu.CompilerParams(vmem_limit_bytes=_VMEM_LIMIT),
    )(x0, params["head_ln_g"], params["head_ln_b"],
      params["head_w1"], params["head_b1"], params["head_w2"], params["head_b2"])
    return logits


# ----------------------------------------------------------------------------
# Deterministic parameter initialization
# ----------------------------------------------------------------------------
def init_params(key, *, poses_numbers, time_steps, num_people, num_classes,
                dim, kernel_size, depth, depth_int, heads, scale_dim, dim_head):
    people = num_people + 3
    keys = iter(jax.random.split(key, 64))

    def nrm(shape, std=0.02):
        return (std * jax.random.normal(next(keys), shape)).astype(jnp.float32)

    def init_tf(L):
        mlp = dim * scale_dim
        hdh = heads * dim_head
        # Fused per-layer QKV weight.  Checkpoint mapping:
        #   wqkv[l, :, 0:hdh]        = to_qkv.weight[0:hdh].T * dim_head**-0.5
        #   wqkv[l, :, hdh:2*hdh]    = to_qkv.weight[hdh:2*hdh].T
        #   wqkv[l, :, 2*hdh:3*hdh]  = to_qkv.weight[2*hdh:3*hdh].T
        #   wo[l]                    = to_out[0].weight.T
        scale_cols = jnp.concatenate(
            [jnp.full((hdh,), float(dim_head) ** -0.5, jnp.float32),
             jnp.ones((2 * hdh,), jnp.float32)])
        wqkv = nrm((L, dim, 3 * hdh)) * scale_cols
        return dict(
            ln1_g=jnp.ones((L, 1, dim), jnp.float32),
            ln1_b=jnp.zeros((L, 1, dim), jnp.float32),
            wqkv=wqkv.astype(DOT_DTYPE),
            wo=nrm((L, hdh, dim)).astype(DOT_DTYPE),
            bo=jnp.zeros((L, 1, dim), jnp.float32),
            ln2_g=jnp.ones((L, 1, dim), jnp.float32),
            ln2_b=jnp.zeros((L, 1, dim), jnp.float32),
            ff_w1=nrm((L, dim, mlp)).astype(DOT_DTYPE),
            ff_b1=jnp.zeros((L, 1, mlp), jnp.float32),
            ff_w2=nrm((L, mlp, dim)).astype(DOT_DTYPE),
            ff_b2=jnp.zeros((L, 1, dim), jnp.float32),
            norm_g=jnp.ones((1, dim), jnp.float32),
            norm_b=jnp.zeros((1, dim), jnp.float32),
        )

    # TCN (shared by tcn1/tcn2/tcn3; 2 levels, dilation 2*i+1 = 1, 3).
    # wX rows [k*Cin:(k+1)*Cin] correspond to torch convX.weight[:, :, k].T.
    c1, c2 = dim // 2, dim
    eps = 1e-5
    w1 = nrm((kernel_size * 2, c1))
    w2 = nrm((kernel_size * c1, c2))
    conv_b1 = jnp.zeros((c1,), jnp.float32)
    conv_b2 = jnp.zeros((c2,), jnp.float32)
    bn1_g, bn1_b = jnp.ones((c1,)), jnp.zeros((c1,))
    bn1_m, bn1_v = jnp.zeros((c1,)), jnp.ones((c1,))
    bn2_g, bn2_b = jnp.ones((c2,)), jnp.zeros((c2,))
    bn2_m, bn2_v = jnp.zeros((c2,)), jnp.ones((c2,))
    s1 = bn1_g * jax.lax.rsqrt(bn1_v + eps)
    t1 = (conv_b1 - bn1_m) * s1 + bn1_b
    s2 = bn2_g * jax.lax.rsqrt(bn2_v + eps)
    t2 = (conv_b2 - bn2_m) * s2 + bn2_b
    tcn = dict(
        w1=w1.astype(DOT_DTYPE), w2=w2.astype(DOT_DTYPE),
        s1=s1.reshape(1, c1).astype(jnp.float32),
        t1=t1.reshape(1, c1).astype(jnp.float32),
        s2=s2.reshape(1, c2).astype(jnp.float32),
        t2=t2.reshape(1, c2).astype(jnp.float32),
    )

    params = dict(
        embed_w=nrm((poses_numbers, dim)).astype(DOT_DTYPE),
        embed_b=jnp.zeros((1, dim), jnp.float32),
        # TODO(synk): 2D sin-cos positional-embedding init replaced with a
        # deterministic random init (forward-pass math is unchanged).
        temporal_embedding=nrm((1, people, time_steps + 1, dim)),
        temporal_token=nrm((1, dim)),
        interaction_embedding=nrm((1, people + 1, dim)),
        interaction_token=nrm((1, dim)),
        temporal_tf=init_tf(depth),
        interaction_tf=init_tf(depth_int),
        head_ln_g=jnp.ones((1, dim), jnp.float32),
        head_ln_b=jnp.zeros((1, dim), jnp.float32),
        head_w1=nrm((dim, scale_dim * dim)).astype(DOT_DTYPE),
        head_b1=jnp.zeros((1, scale_dim * dim), jnp.float32),
        head_w2=nrm((scale_dim * dim, num_classes)).astype(DOT_DTYPE),
        head_b2=jnp.zeros((1, num_classes), jnp.float32),
        tcn=tcn,
    )
    return params


# ----------------------------------------------------------------------------
if __name__ == "__main__":
    B = 2
    TIME_STEPS = 8
    NUM_PEOPLE = 2          # -> people = 5
    POSES = 24
    NUM_CLASSES = 10
    DIM = 32
    HEADS = 2
    DIM_HEAD = 16
    SCALE_DIM = 4
    DEPTH = 2
    DEPTH_INT = 1
    KSIZE = 5

    root = jax.random.PRNGKey(0)
    kp, kx, ks = jax.random.split(root, 3)

    params = init_params(
        kp,
        poses_numbers=POSES, time_steps=TIME_STEPS, num_people=NUM_PEOPLE,
        num_classes=NUM_CLASSES, dim=DIM, kernel_size=KSIZE,
        depth=DEPTH, depth_int=DEPTH_INT, heads=HEADS,
        scale_dim=SCALE_DIM, dim_head=DIM_HEAD,
    )

    x = jax.random.normal(kx, (B, TIME_STEPS, NUM_PEOPLE, POSES), jnp.float32)
    sp = jax.random.normal(ks, (B, TIME_STEPS, 6), jnp.float32)

    fwd = jax.jit(functools.partial(tempose_forward, heads=HEADS,
                                    dim_head=DIM_HEAD, kernel_size=KSIZE))
    logits = fwd(params, x, sp)
    jax.block_until_ready(logits)

    assert logits.shape == (B, NUM_CLASSES), logits.shape
    assert bool(jnp.all(jnp.isfinite(logits)))
    print("KERNEL_OK")
</pallas_src>

<mosaic_0001>
module attributes {stable_mosaic.version = 11 : i64} {
  func.func @_tcn_kernel(%arg0: i32, %arg1: memref<1x8x2xf32, #tpu.memory_space<vmem>>, %arg2: memref<10x16xbf16, #tpu.memory_space<vmem>>, %arg3: memref<80x32xbf16, #tpu.memory_space<vmem>>, %arg4: memref<1x16xf32, #tpu.memory_space<vmem>>, %arg5: memref<1x16xf32, #tpu.memory_space<vmem>>, %arg6: memref<1x32xf32, #tpu.memory_space<vmem>>, %arg7: memref<1x32xf32, #tpu.memory_space<vmem>>, %arg8: memref<1x8x32xf32, #tpu.memory_space<vmem>>) attributes {dimension_semantics = [#tpu.dimension_semantics<parallel>], iteration_bounds = array<i64: 6>, scalar_prefetch = 0 : i64, scratch_operands = 0 : i64, tpu.core_type = #tpu.core_type<tc>, window_params = [{transform_indices = @transform_0, window_bounds = array<i64: 1, 8, 2>}, {pipeline_mode = #tpu.pipeline_mode<synchronous>, transform_indices = @transform_1, window_bounds = array<i64: 10, 16>}, {pipeline_mode = #tpu.pipeline_mode<synchronous>, transform_indices = @transform_2, window_bounds = array<i64: 80, 32>}, {pipeline_mode = #tpu.pipeline_mode<synchronous>, transform_indices = @transform_3, window_bounds = array<i64: 1, 16>}, {pipeline_mode = #tpu.pipeline_mode<synchronous>, transform_indices = @transform_4, window_bounds = array<i64: 1, 16>}, {pipeline_mode = #tpu.pipeline_mode<synchronous>, transform_indices = @transform_5, window_bounds = array<i64: 1, 32>}, {pipeline_mode = #tpu.pipeline_mode<synchronous>, transform_indices = @transform_6, window_bounds = array<i64: 1, 32>}, {transform_indices = @transform_7, window_bounds = array<i64: 1, 8, 32>}]} {
    %c0 = arith.constant 0 : index
    %c0_0 = arith.constant 0 : index
    %c0_1 = arith.constant 0 : index
    %0 = vector.load %arg1[%c0, %c0_0, %c0_1] : memref<1x8x2xf32, #tpu.memory_space<vmem>>, vector<1x8x2xf32>
    %1 = vector.shape_cast %0 : vector<1x8x2xf32> to vector<8x2xf32>
    %c2_i32 = arith.constant 2 : i32
    %2 = tpu.dynamic_rotate %1 by %c2_i32 dim 0 : vector<8x2xf32>, i32 -> vector<8x2xf32>
    %3 = tpu.iota {dimensions = array<i32: 0>} : vector<8x2xi32>
    %c-2_i32 = arith.constant -2 : i32
    %4 = vector.broadcast %c-2_i32 : i32 to vector<8x2xi32>
    %5 = arith.addi %3, %4 : vector<8x2xi32>
    %c0_i32 = arith.constant 0 : i32
    %6 = vector.broadcast %c0_i32 : i32 to vector<8x2xi32>
    %7 = arith.cmpi sge, %5, %6 : vector<8x2xi32>
    %c-2_i32_2 = arith.constant -2 : i32
    %8 = vector.broadcast %c-2_i32_2 : i32 to vector<8x2xi32>
    %9 = arith.addi %3, %8 : vector<8x2xi32>
    %c8_i32 = arith.constant 8 : i32
    %10 = vector.broadcast %c8_i32 : i32 to vector<8x2xi32>
    %11 = arith.cmpi slt, %9, %10 : vector<8x2xi32>
    %12 = arith.andi %7, %11 : vector<8x2xi1>
    %cst = arith.constant 0.000000e+00 : f32
    %13 = vector.broadcast %cst : f32 to vector<8x2xf32>
    %14 = arith.select %12, %2, %13 : vector<8x2xi1>, vector<8x2xf32>
    %c1_i32 = arith.constant 1 : i32
    %15 = tpu.dynamic_rotate %1 by %c1_i32 dim 0 : vector<8x2xf32>, i32 -> vector<8x2xf32>
    %16 = tpu.iota {dimensions = array<i32: 0>} : vector<8x2xi32>
    %c-1_i32 = arith.constant -1 : i32
    %17 = vector.broadcast %c-1_i32 : i32 to vector<8x2xi32>
    %18 = arith.addi %16, %17 : vector<8x2xi32>
    %c0_i32_3 = arith.constant 0 : i32
    %19 = vector.broadcast %c0_i32_3 : i32 to vector<8x2xi32>
    %20 = arith.cmpi sge, %18, %19 : vector<8x2xi32>
    %c-1_i32_4 = arith.constant -1 : i32
    %21 = vector.broadcast %c-1_i32_4 : i32 to vector<8x2xi32>
    %22 = arith.addi %16, %21 : vector<8x2xi32>
    %c8_i32_5 = arith.constant 8 : i32
    %23 = vector.broadcast %c8_i32_5 : i32 to vector<8x2xi32>
    %24 = arith.cmpi slt, %22, %23 : vector<8x2xi32>
    %25 = arith.andi %20, %24 : vector<8x2xi1>
    %cst_6 = arith.constant 0.000000e+00 : f32
    %26 = vector.broadcast %cst_6 : f32 to vector<8x2xf32>
    %27 = arith.select %25, %15, %26 : vector<8x2xi1>, vector<8x2xf32>
    %c7_i32 = arith.constant 7 : i32
    %28 = tpu.dynamic_rotate %1 by %c7_i32 dim 0 : vector<8x2xf32>, i32 -> vector<8x2xf32>
    %29 = tpu.iota {dimensions = array<i32: 0>} : vector<8x2xi32>
    %c1_i32_7 = arith.constant 1 : i32
    %30 = vector.broadcast %c1_i32_7 : i32 to vector<8x2xi32>
    %31 = arith.addi %29, %30 : vector<8x2xi32>
    %c0_i32_8 = arith.constant 0 : i32
    %32 = vector.broadcast %c0_i32_8 : i32 to vector<8x2xi32>
    %33 = arith.cmpi sge, %31, %32 : vector<8x2xi32>
    %c1_i32_9 = arith.constant 1 : i32
    %34 = vector.broadcast %c1_i32_9 : i32 to vector<8x2xi32>
    %35 = arith.addi %29, %34 : vector<8x2xi32>
    %c8_i32_10 = arith.constant 8 : i32
    %36 = vector.broadcast %c8_i32_10 : i32 to vector<8x2xi32>
    %37 = arith.cmpi slt, %35, %36 : vector<8x2xi32>
    %38 = arith.andi %33, %37 : vector<8x2xi1>
    %cst_11 = arith.constant 0.000000e+00 : f32
    %39 = vector.broadcast %cst_11 : f32 to vector<8x2xf32>
    %40 = arith.select %38, %28, %39 : vector<8x2xi1>, vector<8x2xf32>
    %c6_i32 = arith.constant 6 : i32
    %41 = tpu.dynamic_rotate %1 by %c6_i32 dim 0 : vector<8x2xf32>, i32 -> vector<8x2xf32>
    %42 = tpu.iota {dimensions = array<i32: 0>} : vector<8x2xi32>
    %c2_i32_12 = arith.constant 2 : i32
    %43 = vector.broadcast %c2_i32_12 : i32 to vector<8x2xi32>
    %44 = arith.addi %42, %43 : vector<8x2xi32>
    %c0_i32_13 = arith.constant 0 : i32
    %45 = vector.broadcast %c0_i32_13 : i32 to vector<8x2xi32>
    %46 = arith.cmpi sge, %44, %45 : vector<8x2xi32>
    %c2_i32_14 = arith.constant 2 : i32
    %47 = vector.broadcast %c2_i32_14 : i32 to vector<8x2xi32>
    %48 = arith.addi %42, %47 : vector<8x2xi32>
    %c8_i32_15 = arith.constant 8 : i32
    %49 = vector.broadcast %c8_i32_15 : i32 to vector<8x2xi32>
    %50 = arith.cmpi slt, %48, %49 : vector<8x2xi32>
    %51 = arith.andi %46, %50 : vector<8x2xi1>
    %cst_16 = arith.constant 0.000000e+00 : f32
    %52 = vector.broadcast %cst_16 : f32 to vector<8x2xf32>
    %53 = arith.select %51, %41, %52 : vector<8x2xi1>, vector<8x2xf32>
    %54 = tpu.concatenate %14, %27, %1, %40, %53 in 1 : vector<8x2xf32>, vector<8x2xf32>, vector<8x2xf32>, vector<8x2xf32>, vector<8x2xf32> -> vector<8x10xf32>
    %55 = arith.truncf %54 : vector<8x10xf32> to vector<8x10xbf16>
    %c0_17 = arith.constant 0 : index
    %c0_18 = arith.constant 0 : index
    %56 = vector.load %arg2[%c0_17, %c0_18] : memref<10x16xbf16, #tpu.memory_space<vmem>>, vector<10x16xbf16>
    %cst_19 = arith.constant dense<0.000000e+00> : vector<8x16xf32>
    %57 = tpu.matmul %55, %56, %cst_19 {dimension_numbers = #tpu.dot_dimension_numbers<[1], [0], [0], [1], [0, 0, 1, 1], [], []>} : vector<8x10xbf16>, vector<10x16xbf16>, vector<8x16xf32> -> vector<8x16xf32>
    %c0_20 = arith.constant 0 : index
    %c0_21 = arith.constant 0 : index
    %58 = vector.load %arg4[%c0_20, %c0_21] : memref<1x16xf32, #tpu.memory_space<vmem>>, vector<1x16xf32>
    %59 = vector.broadcast %58 : vector<1x16xf32> to vector<8x16xf32>
    %60 = arith.mulf %57, %59 : vector<8x16xf32>
    %c0_22 = arith.constant 0 : index
    %c0_23 = arith.constant 0 : index
    %61 = vector.load %arg5[%c0_22, %c0_23] : memref<1x16xf32, #tpu.memory_space<vmem>>, vector<1x16xf32>
    %62 = vector.broadcast %61 : vector<1x16xf32> to vector<8x16xf32>
    %63 = arith.addf %60, %62 : vector<8x16xf32>
    %cst_24 = arith.constant 5.000000e-01 : f32
    %64 = vector.broadcast %cst_24 : f32 to vector<8x16xf32>
    %65 = arith.mulf %64, %63 : vector<8x16xf32>
    %cst_25 = arith.constant 4.471500e-02 : f32
    %66 = vector.broadcast %cst_25 : f32 to vector<8x16xf32>
    %67 = arith.mulf %66, %63 : vector<8x16xf32>
    %68 = arith.mulf %67, %63 : vector<8x16xf32>
    %69 = arith.mulf %68, %63 : vector<8x16xf32>
    %70 = arith.addf %63, %69 : vector<8x16xf32>
    %cst_26 = arith.constant 0.797884583 : f32
    %71 = vector.broadcast %cst_26 : f32 to vector<8x16xf32>
    %72 = arith.mulf %71, %70 : vector<8x16xf32>
    %73 = math.tanh %72 : vector<8x16xf32>
    %cst_27 = arith.constant 1.000000e+00 : f32
    %74 = vector.broadcast %cst_27 : f32 to vector<8x16xf32>
    %75 = arith.addf %74, %73 : vector<8x16xf32>
    %76 = arith.mulf %65, %75 : vector<8x16xf32>
    %c6_i32_28 = arith.constant 6 : i32
    %77 = tpu.dynamic_rotate %76 by %c6_i32_28 dim 0 : vector<8x16xf32>, i32 -> vector<8x16xf32>
    %78 = tpu.iota {dimensions = array<i32: 0>} : vector<8x16xi32>
    %c-6_i32 = arith.constant -6 : i32
    %79 = vector.broadcast %c-6_i32 : i32 to vector<8x16xi32>
    %80 = arith.addi %78, %79 : vector<8x16xi32>
    %c0_i32_29 = arith.constant 0 : i32
    %81 = vector.broadcast %c0_i32_29 : i32 to vector<8x16xi32>
    %82 = arith.cmpi sge, %80, %81 : vector<8x16xi32>
    %c-6_i32_30 = arith.constant -6 : i32
    %83 = vector.broadcast %c-6_i32_30 : i32 to vector<8x16xi32>
    %84 = arith.addi %78, %83 : vector<8x16xi32>
    %c8_i32_31 = arith.constant 8 : i32
    %85 = vector.broadcast %c8_i32_31 : i32 to vector<8x16xi32>
    %86 = arith.cmpi slt, %84, %85 : vector<8x16xi32>
    %87 = arith.andi %82, %86 : vector<8x16xi1>
    %cst_32 = arith.constant 0.000000e+00 : f32
    %88 = vector.broadcast %cst_32 : f32 to vector<8x16xf32>
    %89 = arith.select %87, %77, %88 : vector<8x16xi1>, vector<8x16xf32>
    %c3_i32 = arith.constant 3 : i32
    %90 = tpu.dynamic_rotate %76 by %c3_i32 dim 0 : vector<8x16xf32>, i32 -> vector<8x16xf32>
    %91 = tpu.iota {dimensions = array<i32: 0>} : vector<8x16xi32>
    %c-3_i32 = arith.constant -3 : i32
    %92 = vector.broadcast %c-3_i32 : i32 to vector<8x16xi32>
    %93 = arith.addi %91, %92 : vector<8x16xi32>
    %c0_i32_33 = arith.constant 0 : i32
    %94 = vector.broadcast %c0_i32_33 : i32 to vector<8x16xi32>
    %95 = arith.cmpi sge, %93, %94 : vector<8x16xi32>
    %c-3_i32_34 = arith.constant -3 : i32
    %96 = vector.broadcast %c-3_i32_34 : i32 to vector<8x16xi32>
    %97 = arith.addi %91, %96 : vector<8x16xi32>
    %c8_i32_35 = arith.constant 8 : i32
    %98 = vector.broadcast %c8_i32_35 : i32 to vector<8x16xi32>
    %99 = arith.cmpi slt, %97, %98 : vector<8x16xi32>
    %100 = arith.andi %95, %99 : vector<8x16xi1>
    %cst_36 = arith.constant 0.000000e+00 : f32
    %101 = vector.broadcast %cst_36 : f32 to vector<8x16xf32>
    %102 = arith.select %100, %90, %101 : vector<8x16xi1>, vector<8x16xf32>
    %c5_i32 = arith.constant 5 : i32
    %103 = tpu.dynamic_rotate %76 by %c5_i32 dim 0 : vector<8x16xf32>, i32 -> vector<8x16xf32>
    %104 = tpu.iota {dimensions = array<i32: 0>} : vector<8x16xi32>
    %c3_i32_37 = arith.constant 3 : i32
    %105 = vector.broadcast %c3_i32_37 : i32 to vector<8x16xi32>
    %106 = arith.addi %104, %105 : vector<8x16xi32>
    %c0_i32_38 = arith.constant 0 : i32
    %107 = vector.broadcast %c0_i32_38 : i32 to vector<8x16xi32>
    %108 = arith.cmpi sge, %106, %107 : vector<8x16xi32>
    %c3_i32_39 = arith.constant 3 : i32
    %109 = vector.broadcast %c3_i32_39 : i32 to vector<8x16xi32>
    %110 = arith.addi %104, %109 : vector<8x16xi32>
    %c8_i32_40 = arith.constant 8 : i32
    %111 = vector.broadcast %c8_i32_40 : i32 to vector<8x16xi32>
    %112 = arith.cmpi slt, %110, %111 : vector<8x16xi32>
    %113 = arith.andi %108, %112 : vector<8x16xi1>
    %cst_41 = arith.constant 0.000000e+00 : f32
    %114 = vector.broadcast %cst_41 : f32 to vector<8x16xf32>
    %115 = arith.select %113, %103, %114 : vector<8x16xi1>, vector<8x16xf32>
    %c2_i32_42 = arith.constant 2 : i32
    %116 = tpu.dynamic_rotate %76 by %c2_i32_42 dim 0 : vector<8x16xf32>, i32 -> vector<8x16xf32>
    %117 = tpu.iota {dimensions = array<i32: 0>} : vector<8x16xi32>
    %c6_i32_43 = arith.constant 6 : i32
    %118 = vector.broadcast %c6_i32_43 : i32 to vector<8x16xi32>
    %119 = arith.addi %117, %118 : vector<8x16xi32>
    %c0_i32_44 = arith.constant 0 : i32
    %120 = vector.broadcast %c0_i32_44 : i32 to vector<8x16xi32>
    %121 = arith.cmpi sge, %119, %120 : vector<8x16xi32>
    %c6_i32_45 = arith.constant 6 : i32
    %122 = vector.broadcast %c6_i32_45 : i32 to vector<8x16xi32>
    %123 = arith.addi %117, %122 : vector<8x16xi32>
    %c8_i32_46 = arith.constant 8 : i32
    %124 = vector.broadcast %c8_i32_46 : i32 to vector<8x16xi32>
    %125 = arith.cmpi slt, %123, %124 : vector<8x16xi32>
    %126 = arith.andi %121, %125 : vector<8x16xi1>
    %cst_47 = arith.constant 0.000000e+00 : f32
    %127 = vector.broadcast %cst_47 : f32 to vector<8x16xf32>
    %128 = arith.select %126, %116, %127 : vector<8x16xi1>, vector<8x16xf32>
    %129 = tpu.concatenate %89, %102, %76, %115, %128 in 1 : vector<8x16xf32>, vector<8x16xf32>, vector<8x16xf32>, vector<8x16xf32>, vector<8x16xf32> -> vector<8x80xf32>
    %130 = arith.truncf %129 : vector<8x80xf32> to vector<8x80xbf16>
    %c0_48 = arith.constant 0 : index
    %c0_49 = arith.constant 0 : index
    %131 = vector.load %arg3[%c0_48, %c0_49] : memref<80x32xbf16, #tpu.memory_space<vmem>>, vector<80x32xbf16>
    %cst_50 = arith.constant dense<0.000000e+00> : vector<8x32xf32>
    %132 = tpu.matmul %130, %131, %cst_50 {dimension_numbers = #tpu.dot_dimension_numbers<[1], [0], [0], [1], [0, 0, 1, 1], [], []>} : vector<8x80xbf16>, vector<80x32xbf16>, vector<8x32xf32> -> vector<8x32xf32>
    %c0_51 = arith.constant 0 : index
    %c0_52 = arith.constant 0 : index
    %133 = vector.load %arg6[%c0_51, %c0_52] : memref<1x32xf32, #tpu.memory_space<vmem>>, vector<1x32xf32>
    %134 = vector.broadcast %133 : vector<1x32xf32> to vector<8x32xf32>
    %135 = arith.mulf %132, %134 : vector<8x32xf32>
    %c0_53 = arith.constant 0 : index
    %c0_54 = arith.constant 0 : index
    %136 = vector.load %arg7[%c0_53, %c0_54] : memref<1x32xf32, #tpu.memory_space<vmem>>, vector<1x32xf32>
    %137 = vector.broadcast %136 : vector<1x32xf32> to vector<8x32xf32>
    %138 = arith.addf %135, %137 : vector<8x32xf32>
    %cst_55 = arith.constant 5.000000e-01 : f32
    %139 = vector.broadcast %cst_55 : f32 to vector<8x32xf32>
    %140 = arith.mulf %139, %138 : vector<8x32xf32>
    %cst_56 = arith.constant 4.471500e-02 : f32
    %141 = vector.broadcast %cst_56 : f32 to vector<8x32xf32>
    %142 = arith.mulf %141, %138 : vector<8x32xf32>
    %143 = arith.mulf %142, %138 : vector<8x32xf32>
    %144 = arith.mulf %143, %138 : vector<8x32xf32>
    %145 = arith.addf %138, %144 : vector<8x32xf32>
    %cst_57 = arith.constant 0.797884583 : f32
    %146 = vector.broadcast %cst_57 : f32 to vector<8x32xf32>
    %147 = arith.mulf %146, %145 : vector<8x32xf32>
    %148 = math.tanh %147 : vector<8x32xf32>
    %cst_58 = arith.constant 1.000000e+00 : f32
    %149 = vector.broadcast %cst_58 : f32 to vector<8x32xf32>
    %150 = arith.addf %149, %148 : vector<8x32xf32>
    %151 = arith.mulf %140, %150 : vector<8x32xf32>
    %c0_59 = arith.constant 0 : index
    %c0_60 = arith.constant 0 : index
    %c0_61 = arith.constant 0 : index
    %152 = vector.load %arg8[%c0_59, %c0_60, %c0_61] : memref<1x8x32xf32, #tpu.memory_space<vmem>>, vector<1x8x32xf32>
    %153 = vector.shape_cast %152 : vector<1x8x32xf32> to vector<8x32xf32>
    %154 = vector.shape_cast %151 : vector<8x32xf32> to vector<1x8x32xf32>
    tpu.vector_store %arg8[%c0_59, %c0_60, %c0_61], %154 {strides = array<i32>} : memref<1x8x32xf32, #tpu.memory_space<vmem>>, vector<1x8x32xf32>,
    return
  }
  func.func @transform_0(%arg0: i32) -> (i32, i32, i32) {
    %c0_i32 = arith.constant 0 : i32
    %c0_i32_0 = arith.constant 0 : i32
    %c0_i32_1 = arith.constant 0 : i32
    return %arg0, %c0_i32, %c0_i32_0 : i32, i32, i32
  }
  func.func @transform_1(%arg0: i32) -> (i32, i32) {
    %c0_i32 = arith.constant 0 : i32
    %c0_i32_0 = arith.constant 0 : i32
    %c0_i32_1 = arith.constant 0 : i32
    return %c0_i32, %c0_i32_0 : i32, i32
  }
  func.func @transform_2(%arg0: i32) -> (i32, i32) {
    %c0_i32 = arith.constant 0 : i32
    %c0_i32_0 = arith.constant 0 : i32
    %c0_i32_1 = arith.constant 0 : i32
    return %c0_i32, %c0_i32_0 : i32, i32
  }
  func.func @transform_3(%arg0: i32) -> (i32, i32) {
    %c0_i32 = arith.constant 0 : i32
    %c0_i32_0 = arith.constant 0 : i32
    %c0_i32_1 = arith.constant 0 : i32
    return %c0_i32, %c0_i32_0 : i32, i32
  }
  func.func @transform_4(%arg0: i32) -> (i32, i32) {
    %c0_i32 = arith.constant 0 : i32
    %c0_i32_0 = arith.constant 0 : i32
    %c0_i32_1 = arith.constant 0 : i32
    return %c0_i32, %c0_i32_0 : i32, i32
  }
  func.func @transform_5(%arg0: i32) -> (i32, i32) {
    %c0_i32 = arith.constant 0 : i32
    %c0_i32_0 = arith.constant 0 : i32
    %c0_i32_1 = arith.constant 0 : i32
    return %c0_i32, %c0_i32_0 : i32, i32
  }
  func.func @transform_6(%arg0: i32) -> (i32, i32) {
    %c0_i32 = arith.constant 0 : i32
    %c0_i32_0 = arith.constant 0 : i32
    %c0_i32_1 = arith.constant 0 : i32
    return %c0_i32, %c0_i32_0 : i32, i32
  }
  func.func @transform_7(%arg0: i32) -> (i32, i32, i32) {
    %c0_i32 = arith.constant 0 : i32
    %c0_i32_0 = arith.constant 0 : i32
    %c0_i32_1 = arith.constant 0 : i32
    return %arg0, %c0_i32, %c0_i32_0 : i32, i32, i32
  }
}

module attributes {stable_mosaic.version = 11 : i64} {
  func.func @_embed_kernel(%arg0: i32, %arg1: memref<1x8x24xf32, #tpu.memory_space<vmem>>, %arg2: memref<24x32xbf16, #tpu.memory_space<vmem>>, %arg3: memref<1x32xf32, #tpu.memory_space<vmem>>, %arg4: memref<1x8x32xf32, #tpu.memory_space<vmem>>) attributes {dimension_semantics = [#tpu.dimension_semantics<parallel>], iteration_bounds = array<i64: 4>, scalar_prefetch = 0 : i64, scratch_operands = 0 : i64, tpu.core_type = #tpu.core_type<tc>, window_params = [{transform_indices = @transform_0, window_bounds = array<i64: 1, 8, 24>}, {pipeline_mode = #tpu.pipeline_mode<synchronous>, transform_indices = @transform_1, window_bounds = array<i64: 24, 32>}, {pipeline_mode = #tpu.pipeline_mode<synchronous>, transform_indices = @transform_2, window_bounds = array<i64: 1, 32>}, {transform_indices = @transform_3, window_bounds = array<i64: 1, 8, 32>}]} {
    %c0 = arith.constant 0 : index
    %c0_0 = arith.constant 0 : index
    %c0_1 = arith.constant 0 : index
    %0 = vector.load %arg1[%c0, %c0_0, %c0_1] : memref<1x8x24xf32, #tpu.memory_space<vmem>>, vector<1x8x24xf32>
    %1 = vector.shape_cast %0 : vector<1x8x24xf32> to vector<8x24xf32>
    %2 = arith.truncf %1 : vector<8x24xf32> to vector<8x24xbf16>
    %c0_2 = arith.constant 0 : index
    %c0_3 = arith.constant 0 : index
    %3 = vector.load %arg2[%c0_2, %c0_3] : memref<24x32xbf16, #tpu.memory_space<vmem>>, vector<24x32xbf16>
    %cst = arith.constant dense<0.000000e+00> : vector<8x32xf32>
    %4 = tpu.matmul %2, %3, %cst {dimension_numbers = #tpu.dot_dimension_numbers<[1], [0], [0], [1], [0, 0, 1, 1], [], []>} : vector<8x24xbf16>, vector<24x32xbf16>, vector<8x32xf32> -> vector<8x32xf32>
    %c0_4 = arith.constant 0 : index
    %c0_5 = arith.constant 0 : index
    %5 = vector.load %arg3[%c0_4, %c0_5] : memref<1x32xf32, #tpu.memory_space<vmem>>, vector<1x32xf32>
    %6 = vector.broadcast %5 : vector<1x32xf32> to vector<8x32xf32>
    %7 = arith.addf %4, %6 : vector<8x32xf32>
    %c0_6 = arith.constant 0 : index
    %c0_7 = arith.constant 0 : index
    %c0_8 = arith.constant 0 : index
    %8 = vector.load %arg4[%c0_6, %c0_7, %c0_8] : memref<1x8x32xf32, #tpu.memory_space<vmem>>, vector<1x8x32xf32>
    %9 = vector.shape_cast %8 : vector<1x8x32xf32> to vector<8x32xf32>
    %10 = vector.shape_cast %7 : vector<8x32xf32> to vector<1x8x32xf32>
    tpu.vector_store %arg4[%c0_6, %c0_7, %c0_8], %10 {strides = array<i32>} : memref<1x8x32xf32, #tpu.memory_space<vmem>>, vector<1x8x32xf32>,
    return
  }
  func.func @transform_0(%arg0: i32) -> (i32, i32, i32) {
    %c0_i32 = arith.constant 0 : i32
    %c0_i32_0 = arith.constant 0 : i32
    %c0_i32_1 = arith.constant 0 : i32
    return %arg0, %c0_i32, %c0_i32_0 : i32, i32, i32
  }
  func.func @transform_1(%arg0: i32) -> (i32, i32) {
    %c0_i32 = arith.constant 0 : i32
    %c0_i32_0 = arith.constant 0 : i32
    %c0_i32_1 = arith.constant 0 : i32
    return %c0_i32, %c0_i32_0 : i32, i32
  }
  func.func @transform_2(%arg0: i32) -> (i32, i32) {
    %c0_i32 = arith.constant 0 : i32
    %c0_i32_0 = arith.constant 0 : i32
    %c0_i32_1 = arith.constant 0 : i32
    return %c0_i32, %c0_i32_0 : i32, i32
  }
  func.func @transform_3(%arg0: i32) -> (i32, i32, i32) {
    %c0_i32 = arith.constant 0 : i32
    %c0_i32_0 = arith.constant 0 : i32
    %c0_i32_1 = arith.constant 0 : i32
    return %arg0, %c0_i32, %c0_i32_0 : i32, i32, i32
  }
}

module attributes {stable_mosaic.version = 11 : i64} {
  func.func @_transformer_kernel(%arg0: i32, %arg1: memref<1x8x32xf32, #tpu.memory_space<vmem>>, %arg2: memref<1x9x32xf32, #tpu.memory_space<vmem>>, %arg3: memref<1x32xf32, #tpu.memory_space<vmem>>, %arg4: memref<2x1x32xf32, #tpu.memory_space<vmem>>, %arg5: memref<2x1x32xf32, #tpu.memory_space<vmem>>, %arg6: memref<2x32x96xbf16, #tpu.memory_space<vmem>>, %arg7: memref<2x32x32xbf16, #tpu.memory_space<vmem>>, %arg8: memref<2x1x32xf32, #tpu.memory_space<vmem>>, %arg9: memref<2x1x32xf32, #tpu.memory_space<vmem>>, %arg10: memref<2x1x32xf32, #tpu.memory_space<vmem>>, %arg11: memref<2x32x128xbf16, #tpu.memory_space<vmem>>, %arg12: memref<2x1x128xf32, #tpu.memory_space<vmem>>, %arg13: memref<2x128x32xbf16, #tpu.memory_space<vmem>>, %arg14: memref<2x1x32xf32, #tpu.memory_space<vmem>>, %arg15: memref<1x32xf32, #tpu.memory_space<vmem>>, %arg16: memref<1x32xf32, #tpu.memory_space<vmem>>, %arg17: memref<1x1x32xf32, #tpu.memory_space<vmem>>) attributes {dimension_semantics = [#tpu.dimension_semantics<parallel>], iteration_bounds = array<i64: 10>, scalar_prefetch = 0 : i64, scratch_operands = 0 : i64, tpu.core_type = #tpu.core_type<tc>, window_params = [{transform_indices = @transform_0, window_bounds = array<i64: 1, 8, 32>}, {transform_indices = @transform_1, window_bounds = array<i64: 1, 9, 32>}, {pipeline_mode = #tpu.pipeline_mode<synchronous>, transform_indices = @transform_2, window_bounds = array<i64: 1, 32>}, {pipeline_mode = #tpu.pipeline_mode<synchronous>, transform_indices = @transform_3, window_bounds = array<i64: 2, 1, 32>}, {pipeline_mode = #tpu.pipeline_mode<synchronous>, transform_indices = @transform_4, window_bounds = array<i64: 2, 1, 32>}, {pipeline_mode = #tpu.pipeline_mode<synchronous>, transform_indices = @transform_5, window_bounds = array<i64: 2, 32, 96>}, {pipeline_mode = #tpu.pipeline_mode<synchronous>, transform_indices = @transform_6, window_bounds = array<i64: 2, 32, 32>}, {pipeline_mode = #tpu.pipeline_mode<synchronous>, transform_indices = @transform_7, window_bounds = array<i64: 2, 1, 32>}, {pipeline_mode = #tpu.pipeline_mode<synchronous>, transform_indices = @transform_8, window_bounds = array<i64: 2, 1, 32>}, {pipeline_mode = #tpu.pipeline_mode<synchronous>, transform_indices = @transform_9, window_bounds = array<i64: 2, 1, 32>}, {pipeline_mode = #tpu.pipeline_mode<synchronous>, transform_indices = @transform_10, window_bounds = array<i64: 2, 32, 128>}, {pipeline_mode = #tpu.pipeline_mode<synchronous>, transform_indices = @transform_11, window_bounds = array<i64: 2, 1, 128>}, {pipeline_mode = #tpu.pipeline_mode<synchronous>, transform_indices = @transform_12, window_bounds = array<i64: 2, 128, 32>}, {pipeline_mode = #tpu.pipeline_mode<synchronous>, transform_indices = @transform_13, window_bounds = array<i64: 2, 1, 32>}, {pipeline_mode = #tpu.pipeline_mode<synchronous>, transform_indices = @transform_14, window_bounds = array<i64: 1, 32>}, {pipeline_mode = #tpu.pipeline_mode<synchronous>, transform_indices = @transform_15, window_bounds = array<i64: 1, 32>}, {transform_indices = @transform_16, window_bounds = array<i64: 1, 1, 32>}]} {
    %c0 = arith.constant 0 : index
    %c0_0 = arith.constant 0 : index
    %0 = vector.load %arg3[%c0, %c0_0] : memref<1x32xf32, #tpu.memory_space<vmem>>, vector<1x32xf32>
    %c0_1 = arith.constant 0 : index
    %c0_2 = arith.constant 0 : index
    %c0_3 = arith.constant 0 : index
    %1 = vector.load %arg1[%c0_1, %c0_2, %c0_3] : memref<1x8x32xf32, #tpu.memory_space<vmem>>, vector<1x8x32xf32>
    %2 = vector.shape_cast %1 : vector<1x8x32xf32> to vector<8x32xf32>
    %3 = tpu.concatenate %0, %2 in 0 : vector<1x32xf32>, vector<8x32xf32> -> vector<9x32xf32>
    %c0_4 = arith.constant 0 : index
    %c0_5 = arith.constant 0 : index
    %c0_6 = arith.constant 0 : index
    %4 = vector.load %arg2[%c0_4, %c0_5, %c0_6] : memref<1x9x32xf32, #tpu.memory_space<vmem>>, vector<1x9x32xf32>
    %5 = vector.shape_cast %4 : vector<1x9x32xf32> to vector<9x32xf32>
    %6 = arith.addf %3, %5 : vector<9x32xf32>
    %c0_7 = arith.constant 0 : index
    %c0_8 = arith.constant 0 : index
    %c0_9 = arith.constant 0 : index
    %7 = vector.load %arg4[%c0_7, %c0_8, %c0_9] : memref<2x1x32xf32, #tpu.memory_space<vmem>>, vector<1x1x32xf32>
    %8 = vector.shape_cast %7 : vector<1x1x32xf32> to vector<1x32xf32>
    %c0_10 = arith.constant 0 : index
    %c0_11 = arith.constant 0 : index
    %c0_12 = arith.constant 0 : index
    %9 = vector.load %arg5[%c0_10, %c0_11, %c0_12] : memref<2x1x32xf32, #tpu.memory_space<vmem>>, vector<1x1x32xf32>
    %10 = vector.shape_cast %9 : vector<1x1x32xf32> to vector<1x32xf32>
    %cst = arith.constant dense<0.000000e+00> : vector<9xf32>
    %11 = vector.multi_reduction <add>, %6, %cst [1] : vector<9x32xf32> to vector<9xf32>
    %12 = vector.shape_cast %11 : vector<9xf32> to vector<9x1xf32>
    %cst_13 = arith.constant 3.200000e+01 : f32
    %13 = vector.broadcast %cst_13 : f32 to vector<9x1xf32>
    %14 = arith.divf %12, %13 : vector<9x1xf32>
    %15 = vector.broadcast %14 : vector<9x1xf32> to vector<9x32xf32>
    %16 = arith.subf %6, %15 : vector<9x32xf32>
    %17 = arith.mulf %16, %16 : vector<9x32xf32>
    %cst_14 = arith.constant dense<0.000000e+00> : vector<9xf32>
    %18 = vector.multi_reduction <add>, %17, %cst_14 [1] : vector<9x32xf32> to vector<9xf32>
    %19 = vector.shape_cast %18 : vector<9xf32> to vector<9x1xf32>
    %cst_15 = arith.constant 3.200000e+01 : f32
    %20 = vector.broadcast %cst_15 : f32 to vector<9x1xf32>
    %21 = arith.divf %19, %20 : vector<9x1xf32>
    %22 = vector.broadcast %14 : vector<9x1xf32> to vector<9x32xf32>
    %23 = arith.subf %6, %22 : vector<9x32xf32>
    %cst_16 = arith.constant 9.99999974E-6 : f32
    %24 = vector.broadcast %cst_16 : f32 to vector<9x1xf32>
    %25 = arith.addf %21, %24 : vector<9x1xf32>
    %26 = math.rsqrt %25 : vector<9x1xf32>
    %27 = vector.broadcast %26 : vector<9x1xf32> to vector<9x32xf32>
    %28 = arith.mulf %23, %27 : vector<9x32xf32>
    %29 = vector.broadcast %8 : vector<1x32xf32> to vector<9x32xf32>
    %30 = arith.mulf %28, %29 : vector<9x32xf32>
    %31 = vector.broadcast %10 : vector<1x32xf32> to vector<9x32xf32>
    %32 = arith.addf %30, %31 : vector<9x32xf32>
    %33 = arith.truncf %32 : vector<9x32xf32> to vector<9x32xbf16>
    %c0_17 = arith.constant 0 : index
    %c0_18 = arith.constant 0 : index
    %c0_19 = arith.constant 0 : index
    %34 = vector.load %arg6[%c0_17, %c0_18, %c0_19] : memref<2x32x96xbf16, #tpu.memory_space<vmem>>, vector<1x32x96xbf16>
    %35 = vector.shape_cast %34 : vector<1x32x96xbf16> to vector<32x96xbf16>
    %cst_20 = arith.constant dense<0.000000e+00> : vector<9x96xf32>
    %36 = tpu.matmul %33, %35, %cst_20 {dimension_numbers = #tpu.dot_dimension_numbers<[1], [0], [0], [1], [0, 0, 1, 1], [], []>} : vector<9x32xbf16>, vector<32x96xbf16>, vector<9x96xf32> -> vector<9x96xf32>
    %37 = arith.truncf %36 : vector<9x96xf32> to vector<9x96xbf16>
    %38 = vector.extract_strided_slice %37 {offsets = [0, 0], sizes = [9, 16], strides = [1, 1]} : vector<9x96xbf16> to vector<9x16xbf16>
    %39 = vector.extract_strided_slice %37 {offsets = [0, 32], sizes = [9, 16], strides = [1, 1]} : vector<9x96xbf16> to vector<9x16xbf16>
    %40 = vector.extract_strided_slice %37 {offsets = [0, 64], sizes = [9, 16], strides = [1, 1]} : vector<9x96xbf16> to vector<9x16xbf16>
    %cst_21 = arith.constant dense<0.000000e+00> : vector<9x9xf32>
    %41 = tpu.matmul %38, %39, %cst_21 {dimension_numbers = #tpu.dot_dimension_numbers<[1], [1], [0], [0], [0, 0, 1, 0], [], []>} : vector<9x16xbf16>, vector<9x16xbf16>, vector<9x9xf32> -> vector<9x9xf32>
    %cst_22 = arith.constant dense<0xFF800000> : vector<9xf32>
    %42 = vector.multi_reduction <maximumf>, %41, %cst_22 [1] : vector<9x9xf32> to vector<9xf32>
    %43 = vector.shape_cast %42 : vector<9xf32> to vector<9x1xf32>
    %44 = vector.broadcast %43 : vector<9x1xf32> to vector<9x9xf32>
    %45 = arith.subf %41, %44 : vector<9x9xf32>
    %46 = math.exp %45 : vector<9x9xf32>
    %cst_23 = arith.constant dense<0.000000e+00> : vector<9xf32>
    %47 = vector.multi_reduction <add>, %46, %cst_23 [1] : vector<9x9xf32> to vector<9xf32>
    %48 = vector.shape_cast %47 : vector<9xf32> to vector<9x1xf32>
    %49 = tpu.reciprocal %48 {approx = true} : vector<9x1xf32> -> vector<9x1xf32>
    %50 = vector.broadcast %49 : vector<9x1xf32> to vector<9x9xf32>
    %51 = arith.mulf %46, %50 : vector<9x9xf32>
    %52 = arith.truncf %51 : vector<9x9xf32> to vector<9x9xbf16>
    %cst_24 = arith.constant dense<0.000000e+00> : vector<9x16xf32>
    %53 = tpu.matmul %52, %40, %cst_24 {dimension_numbers = #tpu.dot_dimension_numbers<[1], [0], [0], [1], [0, 0, 1, 1], [], []>} : vector<9x9xbf16>, vector<9x16xbf16>, vector<9x16xf32> -> vector<9x16xf32>
    %54 = vector.extract_strided_slice %37 {offsets = [0, 16], sizes = [9, 16], strides = [1, 1]} : vector<9x96xbf16> to vector<9x16xbf16>
    %55 = vector.extract_strided_slice %37 {offsets = [0, 48], sizes = [9, 16], strides = [1, 1]} : vector<9x96xbf16> to vector<9x16xbf16>
    %56 = vector.extract_strided_slice %37 {offsets = [0, 80], sizes = [9, 16], strides = [1, 1]} : vector<9x96xbf16> to vector<9x16xbf16>
    %cst_25 = arith.constant dense<0.000000e+00> : vector<9x9xf32>
    %57 = tpu.matmul %54, %55, %cst_25 {dimension_numbers = #tpu.dot_dimension_numbers<[1], [1], [0], [0], [0, 0, 1, 0], [], []>} : vector<9x16xbf16>, vector<9x16xbf16>, vector<9x9xf32> -> vector<9x9xf32>
    %cst_26 = arith.constant dense<0xFF800000> : vector<9xf32>
    %58 = vector.multi_reduction <maximumf>, %57, %cst_26 [1] : vector<9x9xf32> to vector<9xf32>
    %59 = vector.shape_cast %58 : vector<9xf32> to vector<9x1xf32>
    %60 = vector.broadcast %59 : vector<9x1xf32> to vector<9x9xf32>
    %61 = arith.subf %57, %60 : vector<9x9xf32>
    %62 = math.exp %61 : vector<9x9xf32>
    %cst_27 = arith.constant dense<0.000000e+00> : vector<9xf32>
    %63 = vector.multi_reduction <add>, %62, %cst_27 [1] : vector<9x9xf32> to vector<9xf32>
    %64 = vector.shape_cast %63 : vector<9xf32> to vector<9x1xf32>
    %65 = tpu.reciprocal %64 {approx = true} : vector<9x1xf32> -> vector<9x1xf32>
    %66 = vector.broadcast %65 : vector<9x1xf32> to vector<9x9xf32>
    %67 = arith.mulf %62, %66 : vector<9x9xf32>
    %68 = arith.truncf %67 : vector<9x9xf32> to vector<9x9xbf16>
    %cst_28 = arith.constant dense<0.000000e+00> : vector<9x16xf32>
    %69 = tpu.matmul %68, %56, %cst_28 {dimension_numbers = #tpu.dot_dimension_numbers<[1], [0], [0], [1], [0, 0, 1, 1], [], []>} : vector<9x9xbf16>, vector<9x16xbf16>, vector<9x16xf32> -> vector<9x16xf32>
    %70 = tpu.concatenate %53, %69 in 1 : vector<9x16xf32>, vector<9x16xf32> -> vector<9x32xf32>
    %71 = arith.truncf %70 : vector<9x32xf32> to vector<9x32xbf16>
    %c0_29 = arith.constant 0 : index
    %c0_30 = arith.constant 0 : index
    %c0_31 = arith.constant 0 : index
    %72 = vector.load %arg7[%c0_29, %c0_30, %c0_31] : memref<2x32x32xbf16, #tpu.memory_space<vmem>>, vector<1x32x32xbf16>
    %73 = vector.shape_cast %72 : vector<1x32x32xbf16> to vector<32x32xbf16>
    %cst_32 = arith.constant dense<0.000000e+00> : vector<9x32xf32>
    %74 = tpu.matmul %71, %73, %cst_32 {dimension_numbers = #tpu.dot_dimension_numbers<[1], [0], [0], [1], [0, 0, 1, 1], [], []>} : vector<9x32xbf16>, vector<32x32xbf16>, vector<9x32xf32> -> vector<9x32xf32>
    %75 = arith.addf %6, %74 : vector<9x32xf32>
    %c0_33 = arith.constant 0 : index
    %c0_34 = arith.constant 0 : index
    %c0_35 = arith.constant 0 : index
    %76 = vector.load %arg8[%c0_33, %c0_34, %c0_35] : memref<2x1x32xf32, #tpu.memory_space<vmem>>, vector<1x1x32xf32>
    %77 = vector.shape_cast %76 : vector<1x1x32xf32> to vector<1x32xf32>
    %78 = vector.broadcast %77 : vector<1x32xf32> to vector<9x32xf32>
    %79 = arith.addf %75, %78 : vector<9x32xf32>
    %c0_36 = arith.constant 0 : index
    %c0_37 = arith.constant 0 : index
    %c0_38 = arith.constant 0 : index
    %80 = vector.load %arg9[%c0_36, %c0_37, %c0_38] : memref<2x1x32xf32, #tpu.memory_space<vmem>>, vector<1x1x32xf32>
    %81 = vector.shape_cast %80 : vector<1x1x32xf32> to vector<1x32xf32>
    %c0_39 = arith.constant 0 : index
    %c0_40 = arith.constant 0 : index
    %c0_41 = arith.constant 0 : index
    %82 = vector.load %arg10[%c0_39, %c0_40, %c0_41] : memref<2x1x32xf32, #tpu.memory_space<vmem>>, vector<1x1x32xf32>
    %83 = vector.shape_cast %82 : vector<1x1x32xf32> to vector<1x32xf32>
    %cst_42 = arith.constant dense<0.000000e+00> : vector<9xf32>
    %84 = vector.multi_reduction <add>, %79, %cst_42 [1] : vector<9x32xf32> to vector<9xf32>
    %85 = vector.shape_cast %84 : vector<9xf32> to vector<9x1xf32>
    %cst_43 = arith.constant 3.200000e+01 : f32
    %86 = vector.broadcast %cst_43 : f32 to vector<9x1xf32>
    %87 = arith.divf %85, %86 : vector<9x1xf32>
    %88 = vector.broadcast %87 : vector<9x1xf32> to vector<9x32xf32>
    %89 = arith.subf %79, %88 : vector<9x32xf32>
    %90 = arith.mulf %89, %89 : vector<9x32xf32>
    %cst_44 = arith.constant dense<0.000000e+00> : vector<9xf32>
    %91 = vector.multi_reduction <add>, %90, %cst_44 [1] : vector<9x32xf32> to vector<9xf32>
    %92 = vector.shape_cast %91 : vector<9xf32> to vector<9x1xf32>
    %cst_45 = arith.constant 3.200000e+01 : f32
    %93 = vector.broadcast %cst_45 : f32 to vector<9x1xf32>
    %94 = arith.divf %92, %93 : vector<9x1xf32>
    %95 = vector.broadcast %87 : vector<9x1xf32> to vector<9x32xf32>
    %96 = arith.subf %79, %95 : vector<9x32xf32>
    %cst_46 = arith.constant 9.99999974E-6 : f32
    %97 = vector.broadcast %cst_46 : f32 to vector<9x1xf32>
    %98 = arith.addf %94, %97 : vector<9x1xf32>
    %99 = math.rsqrt %98 : vector<9x1xf32>
    %100 = vector.broadcast %99 : vector<9x1xf32> to vector<9x32xf32>
    %101 = arith.mulf %96, %100 : vector<9x32xf32>
    %102 = vector.broadcast %81 : vector<1x32xf32> to vector<9x32xf32>
    %103 = arith.mulf %101, %102 : vector<9x32xf32>
    %104 = vector.broadcast %83 : vector<1x32xf32> to vector<9x32xf32>
    %105 = arith.addf %103, %104 : vector<9x32xf32>
    %106 = arith.truncf %105 : vector<9x32xf32> to vector<9x32xbf16>
    %c0_47 = arith.constant 0 : index
    %c0_48 = arith.constant 0 : index
    %c0_49 = arith.constant 0 : index
    %107 = vector.load %arg11[%c0_47, %c0_48, %c0_49] : memref<2x32x128xbf16, #tpu.memory_space<vmem>>, vector<1x32x128xbf16>
    %108 = vector.shape_cast %107 : vector<1x32x128xbf16> to vector<32x128xbf16>
    %cst_50 = arith.constant dense<0.000000e+00> : vector<9x128xf32>
    %109 = tpu.matmul %106, %108, %cst_50 {dimension_numbers = #tpu.dot_dimension_numbers<[1], [0], [0], [1], [0, 0, 1, 1], [], []>} : vector<9x32xbf16>, vector<32x128xbf16>, vector<9x128xf32> -> vector<9x128xf32>
    %c0_51 = arith.constant 0 : index
    %c0_52 = arith.constant 0 : index
    %c0_53 = arith.constant 0 : index
    %110 = vector.load %arg12[%c0_51, %c0_52, %c0_53] : memref<2x1x128xf32, #tpu.memory_space<vmem>>, vector<1x1x128xf32>
    %111 = vector.shape_cast %110 : vector<1x1x128xf32> to vector<1x128xf32>
    %112 = vector.broadcast %111 : vector<1x128xf32> to vector<9x128xf32>
    %113 = arith.addf %109, %112 : vector<9x128xf32>
    %cst_54 = arith.constant 5.000000e-01 : f32
    %114 = vector.broadcast %cst_54 : f32 to vector<9x128xf32>
    %115 = arith.mulf %114, %113 : vector<9x128xf32>
    %cst_55 = arith.constant 4.471500e-02 : f32
    %116 = vector.broadcast %cst_55 : f32 to vector<9x128xf32>
    %117 = arith.mulf %116, %113 : vector<9x128xf32>
    %118 = arith.mulf %117, %113 : vector<9x128xf32>
    %119 = arith.mulf %118, %113 : vector<9x128xf32>
    %120 = arith.addf %113, %119 : vector<9x128xf32>
    %cst_56 = arith.constant 0.797884583 : f32
    %121 = vector.broadcast %cst_56 : f32 to vector<9x128xf32>
    %122 = arith.mulf %121, %120 : vector<9x128xf32>
    %123 = math.tanh %122 : vector<9x128xf32>
    %cst_57 = arith.constant 1.000000e+00 : f32
    %124 = vector.broadcast %cst_57 : f32 to vector<9x128xf32>
    %125 = arith.addf %124, %123 : vector<9x128xf32>
    %126 = arith.mulf %115, %125 : vector<9x128xf32>
    %127 = arith.truncf %126 : vector<9x128xf32> to vector<9x128xbf16>
    %c0_58 = arith.constant 0 : index
    %c0_59 = arith.constant 0 : index
    %c0_60 = arith.constant 0 : index
    %128 = vector.load %arg13[%c0_58, %c0_59, %c0_60] : memref<2x128x32xbf16, #tpu.memory_space<vmem>>, vector<1x128x32xbf16>
    %129 = vector.shape_cast %128 : vector<1x128x32xbf16> to vector<128x32xbf16>
    %cst_61 = arith.constant dense<0.000000e+00> : vector<9x32xf32>
    %130 = tpu.matmul %127, %129, %cst_61 {dimension_numbers = #tpu.dot_dimension_numbers<[1], [0], [0], [1], [0, 0, 1, 1], [], []>} : vector<9x128xbf16>, vector<128x32xbf16>, vector<9x32xf32> -> vector<9x32xf32>
    %131 = arith.addf %79, %130 : vector<9x32xf32>
    %c0_62 = arith.constant 0 : index
    %c0_63 = arith.constant 0 : index
    %c0_64 = arith.constant 0 : index
    %132 = vector.load %arg14[%c0_62, %c0_63, %c0_64] : memref<2x1x32xf32, #tpu.memory_space<vmem>>, vector<1x1x32xf32>
    %133 = vector.shape_cast %132 : vector<1x1x32xf32> to vector<1x32xf32>
    %134 = vector.broadcast %133 : vector<1x32xf32> to vector<9x32xf32>
    %135 = arith.addf %131, %134 : vector<9x32xf32>
    %c1 = arith.constant 1 : index
    %c0_65 = arith.constant 0 : index
    %c0_66 = arith.constant 0 : index
    %136 = vector.load %arg4[%c1, %c0_65, %c0_66] : memref<2x1x32xf32, #tpu.memory_space<vmem>>, vector<1x1x32xf32>
    %137 = vector.shape_cast %136 : vector<1x1x32xf32> to vector<1x32xf32>
    %c1_67 = arith.constant 1 : index
    %c0_68 = arith.constant 0 : index
    %c0_69 = arith.constant 0 : index
    %138 = vector.load %arg5[%c1_67, %c0_68, %c0_69] : memref<2x1x32xf32, #tpu.memory_space<vmem>>, vector<1x1x32xf32>
    %139 = vector.shape_cast %138 : vector<1x1x32xf32> to vector<1x32xf32>
    %cst_70 = arith.constant dense<0.000000e+00> : vector<9xf32>
    %140 = vector.multi_reduction <add>, %135, %cst_70 [1] : vector<9x32xf32> to vector<9xf32>
    %141 = vector.shape_cast %140 : vector<9xf32> to vector<9x1xf32>
    %cst_71 = arith.constant 3.200000e+01 : f32
    %142 = vector.broadcast %cst_71 : f32 to vector<9x1xf32>
    %143 = arith.divf %141, %142 : vector<9x1xf32>
    %144 = vector.broadcast %143 : vector<9x1xf32> to vector<9x32xf32>
    %145 = arith.subf %135, %144 : vector<9x32xf32>
    %146 = arith.mulf %145, %145 : vector<9x32xf32>
    %cst_72 = arith.constant dense<0.000000e+00> : vector<9xf32>
    %147 = vector.multi_reduction <add>, %146, %cst_72 [1] : vector<9x32xf32> to vector<9xf32>
    %148 = vector.shape_cast %147 : vector<9xf32> to vector<9x1xf32>
    %cst_73 = arith.constant 3.200000e+01 : f32
    %149 = vector.broadcast %cst_73 : f32 to vector<9x1xf32>
    %150 = arith.divf %148, %149 : vector<9x1xf32>
    %151 = vector.broadcast %143 : vector<9x1xf32> to vector<9x32xf32>
    %152 = arith.subf %135, %151 : vector<9x32xf32>
    %cst_74 = arith.constant 9.99999974E-6 : f32
    %153 = vector.broadcast %cst_74 : f32 to vector<9x1xf32>
    %154 = arith.addf %150, %153 : vector<9x1xf32>
    %155 = math.rsqrt %154 : vector<9x1xf32>
    %156 = vector.broadcast %155 : vector<9x1xf32> to vector<9x32xf32>
    %157 = arith.mulf %152, %156 : vector<9x32xf32>
    %158 = vector.broadcast %137 : vector<1x32xf32> to vector<9x32xf32>
    %159 = arith.mulf %157, %158 : vector<9x32xf32>
    %160 = vector.broadcast %139 : vector<1x32xf32> to vector<9x32xf32>
    %161 = arith.addf %159, %160 : vector<9x32xf32>
    %162 = arith.truncf %161 : vector<9x32xf32> to vector<9x32xbf16>
    %c1_75 = arith.constant 1 : index
    %c0_76 = arith.constant 0 : index
    %c0_77 = arith.constant 0 : index
    %163 = vector.load %arg6[%c1_75, %c0_76, %c0_77] : memref<2x32x96xbf16, #tpu.memory_space<vmem>>, vector<1x32x96xbf16>
    %164 = vector.shape_cast %163 : vector<1x32x96xbf16> to vector<32x96xbf16>
    %cst_78 = arith.constant dense<0.000000e+00> : vector<9x96xf32>
    %165 = tpu.matmul %162, %164, %cst_78 {dimension_numbers = #tpu.dot_dimension_numbers<[1], [0], [0], [1], [0, 0, 1, 1], [], []>} : vector<9x32xbf16>, vector<32x96xbf16>, vector<9x96xf32> -> vector<9x96xf32>
    %166 = arith.truncf %165 : vector<9x96xf32> to vector<9x96xbf16>
    %167 = vector.extract_strided_slice %166 {offsets = [0, 0], sizes = [9, 16], strides = [1, 1]} : vector<9x96xbf16> to vector<9x16xbf16>
    %168 = vector.extract_strided_slice %166 {offsets = [0, 32], sizes = [9, 16], strides = [1, 1]} : vector<9x96xbf16> to vector<9x16xbf16>
    %169 = vector.extract_strided_slice %166 {offsets = [0, 64], sizes = [9, 16], strides = [1, 1]} : vector<9x96xbf16> to vector<9x16xbf16>
    %cst_79 = arith.constant dense<0.000000e+00> : vector<9x9xf32>
    %170 = tpu.matmul %167, %168, %cst_79 {dimension_numbers = #tpu.dot_dimension_numbers<[1], [1], [0], [0], [0, 0, 1, 0], [], []>} : vector<9x16xbf16>, vector<9x16xbf16>, vector<9x9xf32> -> vector<9x9xf32>
    %cst_80 = arith.constant dense<0xFF800000> : vector<9xf32>
    %171 = vector.multi_reduction <maximumf>, %170, %cst_80 [1] : vector<9x9xf32> to vector<9xf32>
    %172 = vector.shape_cast %171 : vector<9xf32> to vector<9x1xf32>
    %173 = vector.broadcast %172 : vector<9x1xf32> to vector<9x9xf32>
    %174 = arith.subf %170, %173 : vector<9x9xf32>
    %175 = math.exp %174 : vector<9x9xf32>
    %cst_81 = arith.constant dense<0.000000e+00> : vector<9xf32>
    %176 = vector.multi_reduction <add>, %175, %cst_81 [1] : vector<9x9xf32> to vector<9xf32>
    %177 = vector.shape_cast %176 : vector<9xf32> to vector<9x1xf32>
    %178 = tpu.reciprocal %177 {approx = true} : vector<9x1xf32> -> vector<9x1xf32>
    %179 = vector.broadcast %178 : vector<9x1xf32> to vector<9x9xf32>
    %180 = arith.mulf %175, %179 : vector<9x9xf32>
    %181 = arith.truncf %180 : vector<9x9xf32> to vector<9x9xbf16>
    %cst_82 = arith.constant dense<0.000000e+00> : vector<9x16xf32>
    %182 = tpu.matmul %181, %169, %cst_82 {dimension_numbers = #tpu.dot_dimension_numbers<[1], [0], [0], [1], [0, 0, 1, 1], [], []>} : vector<9x9xbf16>, vector<9x16xbf16>, vector<9x16xf32> -> vector<9x16xf32>
    %183 = vector.extract_strided_slice %166 {offsets = [0, 16], sizes = [9, 16], strides = [1, 1]} : vector<9x96xbf16> to vector<9x16xbf16>
    %184 = vector.extract_strided_slice %166 {offsets = [0, 48], sizes = [9, 16], strides = [1, 1]} : vector<9x96xbf16> to vector<9x16xbf16>
    %185 = vector.extract_strided_slice %166 {offsets = [0, 80], sizes = [9, 16], strides = [1, 1]} : vector<9x96xbf16> to vector<9x16xbf16>
    %cst_83 = arith.constant dense<0.000000e+00> : vector<9x9xf32>
    %186 = tpu.matmul %183, %184, %cst_83 {dimension_numbers = #tpu.dot_dimension_numbers<[1], [1], [0], [0], [0, 0, 1, 0], [], []>} : vector<9x16xbf16>, vector<9x16xbf16>, vector<9x9xf32> -> vector<9x9xf32>
    %cst_84 = arith.constant dense<0xFF800000> : vector<9xf32>
    %187 = vector.multi_reduction <maximumf>, %186, %cst_84 [1] : vector<9x9xf32> to vector<9xf32>
    %188 = vector.shape_cast %187 : vector<9xf32> to vector<9x1xf32>
    %189 = vector.broadcast %188 : vector<9x1xf32> to vector<9x9xf32>
    %190 = arith.subf %186, %189 : vector<9x9xf32>
    %191 = math.exp %190 : vector<9x9xf32>
    %cst_85 = arith.constant dense<0.000000e+00> : vector<9xf32>
    %192 = vector.multi_reduction <add>, %191, %cst_85 [1] : vector<9x9xf32> to vector<9xf32>
    %193 = vector.shape_cast %192 : vector<9xf32> to vector<9x1xf32>
    %194 = tpu.reciprocal %193 {approx = true} : vector<9x1xf32> -> vector<9x1xf32>
    %195 = vector.broadcast %194 : vector<9x1xf32> to vector<9x9xf32>
    %196 = arith.mulf %191, %195 : vector<9x9xf32>
    %197 = arith.truncf %196 : vector<9x9xf32> to vector<9x9xbf16>
    %cst_86 = arith.constant dense<0.000000e+00> : vector<9x16xf32>
    %198 = tpu.matmul %197, %185, %cst_86 {dimension_numbers = #tpu.dot_dimension_numbers<[1], [0], [0], [1], [0, 0, 1, 1], [], []>} : vector<9x9xbf16>, vector<9x16xbf16>, vector<9x16xf32> -> vector<9x16xf32>
    %199 = tpu.concatenate %182, %198 in 1 : vector<9x16xf32>, vector<9x16xf32> -> vector<9x32xf32>
    %200 = arith.truncf %199 : vector<9x32xf32> to vector<9x32xbf16>
    %c1_87 = arith.constant 1 : index
    %c0_88 = arith.constant 0 : index
    %c0_89 = arith.constant 0 : index
    %201 = vector.load %arg7[%c1_87, %c0_88, %c0_89] : memref<2x32x32xbf16, #tpu.memory_space<vmem>>, vector<1x32x32xbf16>
    %202 = vector.shape_cast %201 : vector<1x32x32xbf16> to vector<32x32xbf16>
    %cst_90 = arith.constant dense<0.000000e+00> : vector<9x32xf32>
    %203 = tpu.matmul %200, %202, %cst_90 {dimension_numbers = #tpu.dot_dimension_numbers<[1], [0], [0], [1], [0, 0, 1, 1], [], []>} : vector<9x32xbf16>, vector<32x32xbf16>, vector<9x32xf32> -> vector<9x32xf32>
    %204 = arith.addf %135, %203 : vector<9x32xf32>
    %c1_91 = arith.constant 1 : index
    %c0_92 = arith.constant 0 : index
    %c0_93 = arith.constant 0 : index
    %205 = vector.load %arg8[%c1_91, %c0_92, %c0_93] : memref<2x1x32xf32, #tpu.memory_space<vmem>>, vector<1x1x32xf32>
    %206 = vector.shape_cast %205 : vector<1x1x32xf32> to vector<1x32xf32>
    %207 = vector.broadcast %206 : vector<1x32xf32> to vector<9x32xf32>
    %208 = arith.addf %204, %207 : vector<9x32xf32>
    %c1_94 = arith.constant 1 : index
    %c0_95 = arith.constant 0 : index
    %c0_96 = arith.constant 0 : index
    %209 = vector.load %arg9[%c1_94, %c0_95, %c0_96] : memref<2x1x32xf32, #tpu.memory_space<vmem>>, vector<1x1x32xf32>
    %210 = vector.shape_cast %209 : vector<1x1x32xf32> to vector<1x32xf32>
    %c1_97 = arith.constant 1 : index
    %c0_98 = arith.constant 0 : index
    %c0_99 = arith.constant 0 : index
    %211 = vector.load %arg10[%c1_97, %c0_98, %c0_99] : memref<2x1x32xf32, #tpu.memory_space<vmem>>, vector<1x1x32xf32>
    %212 = vector.shape_cast %211 : vector<1x1x32xf32> to vector<1x32xf32>
    %cst_100 = arith.constant dense<0.000000e+00> : vector<9xf32>
    %213 = vector.multi_reduction <add>, %208, %cst_100 [1] : vector<9x32xf32> to vector<9xf32>
    %214 = vector.shape_cast %213 : vector<9xf32> to vector<9x1xf32>
    %cst_101 = arith.constant 3.200000e+01 : f32
    %215 = vector.broadcast %cst_101 : f32 to vector<9x1xf32>
    %216 = arith.divf %214, %215 : vector<9x1xf32>
    %217 = vector.broadcast %216 : vector<9x1xf32> to vector<9x32xf32>
    %218 = arith.subf %208, %217 : vector<9x32xf32>
    %219 = arith.mulf %218, %218 : vector<9x32xf32>
    %cst_102 = arith.constant dense<0.000000e+00> : vector<9xf32>
    %220 = vector.multi_reduction <add>, %219, %cst_102 [1] : vector<9x32xf32> to vector<9xf32>
    %221 = vector.shape_cast %220 : vector<9xf32> to vector<9x1xf32>
    %cst_103 = arith.constant 3.200000e+01 : f32
    %222 = vector.broadcast %cst_103 : f32 to vector<9x1xf32>
    %223 = arith.divf %221, %222 : vector<9x1xf32>
    %224 = vector.broadcast %216 : vector<9x1xf32> to vector<9x32xf32>
    %225 = arith.subf %208, %224 : vector<9x32xf32>
    %cst_104 = arith.constant 9.99999974E-6 : f32
    %226 = vector.broadcast %cst_104 : f32 to vector<9x1xf32>
    %227 = arith.addf %223, %226 : vector<9x1xf32>
    %228 = math.rsqrt %227 : vector<9x1xf32>
    %229 = vector.broadcast %228 : vector<9x1xf32> to vector<9x32xf32>
    %230 = arith.mulf %225, %229 : vector<9x32xf32>
    %231 = vector.broadcast %210 : vector<1x32xf32> to vector<9x32xf32>
    %232 = arith.mulf %230, %231 : vector<9x32xf32>
    %233 = vector.broadcast %212 : vector<1x32xf32> to vector<9x32xf32>
    %234 = arith.addf %232, %233 : vector<9x32xf32>
    %235 = arith.truncf %234 : vector<9x32xf32> to vector<9x32xbf16>
    %c1_105 = arith.constant 1 : index
    %c0_106 = arith.constant 0 : index
    %c0_107 = arith.constant 0 : index
    %236 = vector.load %arg11[%c1_105, %c0_106, %c0_107] : memref<2x32x128xbf16, #tpu.memory_space<vmem>>, vector<1x32x128xbf16>
    %237 = vector.shape_cast %236 : vector<1x32x128xbf16> to vector<32x128xbf16>
    %cst_108 = arith.constant dense<0.000000e+00> : vector<9x128xf32>
    %238 = tpu.matmul %235, %237, %cst_108 {dimension_numbers = #tpu.dot_dimension_numbers<[1], [0], [0], [1], [0, 0, 1, 1], [], []>} : vector<9x32xbf16>, vector<32x128xbf16>, vector<9x128xf32> -> vector<9x128xf32>
    %c1_109 = arith.constant 1 : index
    %c0_110 = arith.constant 0 : index
    %c0_111 = arith.constant 0 : index
    %239 = vector.load %arg12[%c1_109, %c0_110, %c0_111] : memref<2x1x128xf32, #tpu.memory_space<vmem>>, vector<1x1x128xf32>
    %240 = vector.shape_cast %239 : vector<1x1x128xf32> to vector<1x128xf32>
    %241 = vector.broadcast %240 : vector<1x128xf32> to vector<9x128xf32>
    %242 = arith.addf %238, %241 : vector<9x128xf32>
    %cst_112 = arith.constant 5.000000e-01 : f32
    %243 = vector.broadcast %cst_112 : f32 to vector<9x128xf32>
    %244 = arith.mulf %243, %242 : vector<9x128xf32>
    %cst_113 = arith.constant 4.471500e-02 : f32
    %245 = vector.broadcast %cst_113 : f32 to vector<9x128xf32>
    %246 = arith.mulf %245, %242 : vector<9x128xf32>
    %247 = arith.mulf %246, %242 : vector<9x128xf32>
    %248 = arith.mulf %247, %242 : vector<9x128xf32>
    %249 = arith.addf %242, %248 : vector<9x128xf32>
    %cst_114 = arith.constant 0.797884583 : f32
    %250 = vector.broadcast %cst_114 : f32 to vector<9x128xf32>
    %251 = arith.mulf %250, %249 : vector<9x128xf32>
    %252 = math.tanh %251 : vector<9x128xf32>
    %cst_115 = arith.constant 1.000000e+00 : f32
    %253 = vector.broadcast %cst_115 : f32 to vector<9x128xf32>
    %254 = arith.addf %253, %252 : vector<9x128xf32>
    %255 = arith.mulf %244, %254 : vector<9x128xf32>
    %256 = arith.truncf %255 : vector<9x128xf32> to vector<9x128xbf16>
    %c1_116 = arith.constant 1 : index
    %c0_117 = arith.constant 0 : index
    %c0_118 = arith.constant 0 : index
    %257 = vector.load %arg13[%c1_116, %c0_117, %c0_118] : memref<2x128x32xbf16, #tpu.memory_space<vmem>>, vector<1x128x32xbf16>
    %258 = vector.shape_cast %257 : vector<1x128x32xbf16> to vector<128x32xbf16>
    %cst_119 = arith.constant dense<0.000000e+00> : vector<9x32xf32>
    %259 = tpu.matmul %256, %258, %cst_119 {dimension_numbers = #tpu.dot_dimension_numbers<[1], [0], [0], [1], [0, 0, 1, 1], [], []>} : vector<9x128xbf16>, vector<128x32xbf16>, vector<9x32xf32> -> vector<9x32xf32>
    %260 = arith.addf %208, %259 : vector<9x32xf32>
    %c1_120 = arith.constant 1 : index
    %c0_121 = arith.constant 0 : index
    %c0_122 = arith.constant 0 : index
    %261 = vector.load %arg14[%c1_120, %c0_121, %c0_122] : memref<2x1x32xf32, #tpu.memory_space<vmem>>, vector<1x1x32xf32>
    %262 = vector.shape_cast %261 : vector<1x1x32xf32> to vector<1x32xf32>
    %263 = vector.broadcast %262 : vector<1x32xf32> to vector<9x32xf32>
    %264 = arith.addf %260, %263 : vector<9x32xf32>
    %265 = vector.extract_strided_slice %264 {offsets = [0, 0], sizes = [1, 32], strides = [1, 1]} : vector<9x32xf32> to vector<1x32xf32>
    %c0_123 = arith.constant 0 : index
    %c0_124 = arith.constant 0 : index
    %266 = vector.load %arg15[%c0_123, %c0_124] : memref<1x32xf32, #tpu.memory_space<vmem>>, vector<1x32xf32>
    %c0_125 = arith.constant 0 : index
    %c0_126 = arith.constant 0 : index
    %267 = vector.load %arg16[%c0_125, %c0_126] : memref<1x32xf32, #tpu.memory_space<vmem>>, vector<1x32xf32>
    %cst_127 = arith.constant dense<0.000000e+00> : vector<1xf32>
    %268 = vector.multi_reduction <add>, %265, %cst_127 [1] : vector<1x32xf32> to vector<1xf32>
    %269 = vector.shape_cast %268 : vector<1xf32> to vector<1x1xf32>
    %cst_128 = arith.constant 3.200000e+01 : f32
    %270 = vector.broadcast %cst_128 : f32 to vector<1x1xf32>
    %271 = arith.divf %269, %270 : vector<1x1xf32>
    %272 = vector.broadcast %271 : vector<1x1xf32> to vector<1x32xf32>
    %273 = arith.subf %265, %272 : vector<1x32xf32>
    %274 = arith.mulf %273, %273 : vector<1x32xf32>
    %cst_129 = arith.constant dense<0.000000e+00> : vector<1xf32>
    %275 = vector.multi_reduction <add>, %274, %cst_129 [1] : vector<1x32xf32> to vector<1xf32>
    %276 = vector.shape_cast %275 : vector<1xf32> to vector<1x1xf32>
    %cst_130 = arith.constant 3.200000e+01 : f32
    %277 = vector.broadcast %cst_130 : f32 to vector<1x1xf32>
    %278 = arith.divf %276, %277 : vector<1x1xf32>
    %279 = vector.broadcast %271 : vector<1x1xf32> to vector<1x32xf32>
    %280 = arith.subf %265, %279 : vector<1x32xf32>
    %cst_131 = arith.constant 9.99999974E-6 : f32
    %281 = vector.broadcast %cst_131 : f32 to vector<1x1xf32>
    %282 = arith.addf %278, %281 : vector<1x1xf32>
    %283 = math.rsqrt %282 : vector<1x1xf32>
    %284 = vector.broadcast %283 : vector<1x1xf32> to vector<1x32xf32>
    %285 = arith.mulf %280, %284 : vector<1x32xf32>
    %286 = arith.mulf %285, %266 : vector<1x32xf32>
    %287 = arith.addf %286, %267 : vector<1x32xf32>
    %c0_132 = arith.constant 0 : index
    %c0_133 = arith.constant 0 : index
    %c0_134 = arith.constant 0 : index
    %288 = vector.load %arg17[%c0_132, %c0_133, %c0_134] : memref<1x1x32xf32, #tpu.memory_space<vmem>>, vector<1x1x32xf32>
    %289 = vector.shape_cast %288 : vector<1x1x32xf32> to vector<1x32xf32>
    %290 = vector.shape_cast %287 : vector<1x32xf32> to vector<1x1x32xf32>
    tpu.vector_store %arg17[%c0_132, %c0_133, %c0_134], %290 {strides = array<i32>} : memref<1x1x32xf32, #tpu.memory_space<vmem>>, vector<1x1x32xf32>,
    return
  }
  func.func @transform_0(%arg0: i32) -> (i32, i32, i32) {
    %c0_i32 = arith.constant 0 : i32
    %c0_i32_0 = arith.constant 0 : i32
    %c0_i32_1 = arith.constant 0 : i32
    return %arg0, %c0_i32, %c0_i32_0 : i32, i32, i32
  }
  func.func @transform_1(%arg0: i32) -> (i32, i32, i32) {
    %c5_i32 = arith.constant 5 : i32
    %c0_i32 = arith.constant 0 : i32
    %0 = arith.cmpi eq, %c5_i32, %c0_i32 : i32
    %c1_i32 = arith.constant 1 : i32
    %1 = arith.select %0, %c1_i32, %c5_i32 : i32
    %2 = arith.remsi %arg0, %1 : i32
    %c0_i32_0 = arith.constant 0 : i32
    %3 = arith.cmpi ne, %2, %c0_i32_0 : i32
    %c0_i32_1 = arith.constant 0 : i32
    %4 = arith.cmpi slt, %2, %c0_i32_1 : i32
    %c0_i32_2 = arith.constant 0 : i32
    %5 = arith.cmpi slt, %1, %c0_i32_2 : i32
    %6 = arith.xori %4, %5 : i1
    %7 = arith.andi %6, %3 : i1
    %8 = arith.addi %2, %1 : i32
    %9 = arith.select %7, %8, %2 : i32
    %c0_i32_3 = arith.constant 0 : i32
    %c0_i32_4 = arith.constant 0 : i32
    %c0_i32_5 = arith.constant 0 : i32
    return %9, %c0_i32_3, %c0_i32_4 : i32, i32, i32
  }
  func.func @transform_2(%arg0: i32) -> (i32, i32) {
    %c0_i32 = arith.constant 0 : i32
    %c0_i32_0 = arith.constant 0 : i32
    %c0_i32_1 = arith.constant 0 : i32
    return %c0_i32, %c0_i32_0 : i32, i32
  }
  func.func @transform_3(%arg0: i32) -> (i32, i32, i32) {
    %c0_i32 = arith.constant 0 : i32
    %c0_i32_0 = arith.constant 0 : i32
    %c0_i32_1 = arith.constant 0 : i32
    %c0_i32_2 = arith.constant 0 : i32
    return %c0_i32, %c0_i32_0, %c0_i32_1 : i32, i32, i32
  }
  func.func @transform_4(%arg0: i32) -> (i32, i32, i32) {
    %c0_i32 = arith.constant 0 : i32
    %c0_i32_0 = arith.constant 0 : i32
    %c0_i32_1 = arith.constant 0 : i32
    %c0_i32_2 = arith.constant 0 : i32
    return %c0_i32, %c0_i32_0, %c0_i32_1 : i32, i32, i32
  }
  func.func @transform_5(%arg0: i32) -> (i32, i32, i32) {
    %c0_i32 = arith.constant 0 : i32
    %c0_i32_0 = arith.constant 0 : i32
    %c0_i32_1 = arith.constant 0 : i32
    %c0_i32_2 = arith.constant 0 : i32
    return %c0_i32, %c0_i32_0, %c0_i32_1 : i32, i32, i32
  }
  func.func @transform_6(%arg0: i32) -> (i32, i32, i32) {
    %c0_i32 = arith.constant 0 : i32
    %c0_i32_0 = arith.constant 0 : i32
    %c0_i32_1 = arith.constant 0 : i32
    %c0_i32_2 = arith.constant 0 : i32
    return %c0_i32, %c0_i32_0, %c0_i32_1 : i32, i32, i32
  }
  func.func @transform_7(%arg0: i32) -> (i32, i32, i32) {
    %c0_i32 = arith.constant 0 : i32
    %c0_i32_0 = arith.constant 0 : i32
    %c0_i32_1 = arith.constant 0 : i32
    %c0_i32_2 = arith.constant 0 : i32
    return %c0_i32, %c0_i32_0, %c0_i32_1 : i32, i32, i32
  }
  func.func @transform_8(%arg0: i32) -> (i32, i32, i32) {
    %c0_i32 = arith.constant 0 : i32
    %c0_i32_0 = arith.constant 0 : i32
    %c0_i32_1 = arith.constant 0 : i32
    %c0_i32_2 = arith.constant 0 : i32
    return %c0_i32, %c0_i32_0, %c0_i32_1 : i32, i32, i32
  }
  func.func @transform_9(%arg0: i32) -> (i32, i32, i32) {
    %c0_i32 = arith.constant 0 : i32
    %c0_i32_0 = arith.constant 0 : i32
    %c0_i32_1 = arith.constant 0 : i32
    %c0_i32_2 = arith.constant 0 : i32
    return %c0_i32, %c0_i32_0, %c0_i32_1 : i32, i32, i32
  }
  func.func @transform_10(%arg0: i32) -> (i32, i32, i32) {
    %c0_i32 = arith.constant 0 : i32
    %c0_i32_0 = arith.constant 0 : i32
    %c0_i32_1 = arith.constant 0 : i32
    %c0_i32_2 = arith.constant 0 : i32
    return %c0_i32, %c0_i32_0, %c0_i32_1 : i32, i32, i32
  }
  func.func @transform_11(%arg0: i32) -> (i32, i32, i32) {
    %c0_i32 = arith.constant 0 : i32
    %c0_i32_0 = arith.constant 0 : i32
    %c0_i32_1 = arith.constant 0 : i32
    %c0_i32_2 = arith.constant 0 : i32
    return %c0_i32, %c0_i32_0, %c0_i32_1 : i32, i32, i32
  }
  func.func @transform_12(%arg0: i32) -> (i32, i32, i32) {
    %c0_i32 = arith.constant 0 : i32
    %c0_i32_0 = arith.constant 0 : i32
    %c0_i32_1 = arith.constant 0 : i32
    %c0_i32_2 = arith.constant 0 : i32
    return %c0_i32, %c0_i32_0, %c0_i32_1 : i32, i32, i32
  }
  func.func @transform_13(%arg0: i32) -> (i32, i32, i32) {
    %c0_i32 = arith.constant 0 : i32
    %c0_i32_0 = arith.constant 0 : i32
    %c0_i32_1 = arith.constant 0 : i32
    %c0_i32_2 = arith.constant 0 : i32
    return %c0_i32, %c0_i32_0, %c0_i32_1 : i32, i32, i32
  }
  func.func @transform_14(%arg0: i32) -> (i32, i32) {
    %c0_i32 = arith.constant 0 : i32
    %c0_i32_0 = arith.constant 0 : i32
    %c0_i32_1 = arith.constant 0 : i32
    return %c0_i32, %c0_i32_0 : i32, i32
  }
  func.func @transform_15(%arg0: i32) -> (i32, i32) {
    %c0_i32 = arith.constant 0 : i32
    %c0_i32_0 = arith.constant 0 : i32
    %c0_i32_1 = arith.constant 0 : i32
    return %c0_i32, %c0_i32_0 : i32, i32
  }
  func.func @transform_16(%arg0: i32) -> (i32, i32, i32) {
    %c0_i32 = arith.constant 0 : i32
    %c0_i32_0 = arith.constant 0 : i32
    %c0_i32_1 = arith.constant 0 : i32
    return %arg0, %c0_i32, %c0_i32_0 : i32, i32, i32
  }
}

module attributes {stable_mosaic.version = 11 : i64} {
  func.func @_transformer_kernel(%arg0: i32, %arg1: memref<1x5x32xf32, #tpu.memory_space<vmem>>, %arg2: memref<1x6x32xf32, #tpu.memory_space<vmem>>, %arg3: memref<1x32xf32, #tpu.memory_space<vmem>>, %arg4: memref<1x1x32xf32, #tpu.memory_space<vmem>>, %arg5: memref<1x1x32xf32, #tpu.memory_space<vmem>>, %arg6: memref<1x32x96xbf16, #tpu.memory_space<vmem>>, %arg7: memref<1x32x32xbf16, #tpu.memory_space<vmem>>, %arg8: memref<1x1x32xf32, #tpu.memory_space<vmem>>, %arg9: memref<1x1x32xf32, #tpu.memory_space<vmem>>, %arg10: memref<1x1x32xf32, #tpu.memory_space<vmem>>, %arg11: memref<1x32x128xbf16, #tpu.memory_space<vmem>>, %arg12: memref<1x1x128xf32, #tpu.memory_space<vmem>>, %arg13: memref<1x128x32xbf16, #tpu.memory_space<vmem>>, %arg14: memref<1x1x32xf32, #tpu.memory_space<vmem>>, %arg15: memref<1x32xf32, #tpu.memory_space<vmem>>, %arg16: memref<1x32xf32, #tpu.memory_space<vmem>>, %arg17: memref<1x1x32xf32, #tpu.memory_space<vmem>>) attributes {dimension_semantics = [#tpu.dimension_semantics<parallel>], iteration_bounds = array<i64: 2>, scalar_prefetch = 0 : i64, scratch_operands = 0 : i64, tpu.core_type = #tpu.core_type<tc>, window_params = [{transform_indices = @transform_0, window_bounds = array<i64: 1, 5, 32>}, {pipeline_mode = #tpu.pipeline_mode<synchronous>, transform_indices = @transform_1, window_bounds = array<i64: 1, 6, 32>}, {pipeline_mode = #tpu.pipeline_mode<synchronous>, transform_indices = @transform_2, window_bounds = array<i64: 1, 32>}, {pipeline_mode = #tpu.pipeline_mode<synchronous>, transform_indices = @transform_3, window_bounds = array<i64: 1, 1, 32>}, {pipeline_mode = #tpu.pipeline_mode<synchronous>, transform_indices = @transform_4, window_bounds = array<i64: 1, 1, 32>}, {pipeline_mode = #tpu.pipeline_mode<synchronous>, transform_indices = @transform_5, window_bounds = array<i64: 1, 32, 96>}, {pipeline_mode = #tpu.pipeline_mode<synchronous>, transform_indices = @transform_6, window_bounds = array<i64: 1, 32, 32>}, {pipeline_mode = #tpu.pipeline_mode<synchronous>, transform_indices = @transform_7, window_bounds = array<i64: 1, 1, 32>}, {pipeline_mode = #tpu.pipeline_mode<synchronous>, transform_indices = @transform_8, window_bounds = array<i64: 1, 1, 32>}, {pipeline_mode = #tpu.pipeline_mode<synchronous>, transform_indices = @transform_9, window_bounds = array<i64: 1, 1, 32>}, {pipeline_mode = #tpu.pipeline_mode<synchronous>, transform_indices = @transform_10, window_bounds = array<i64: 1, 32, 128>}, {pipeline_mode = #tpu.pipeline_mode<synchronous>, transform_indices = @transform_11, window_bounds = array<i64: 1, 1, 128>}, {pipeline_mode = #tpu.pipeline_mode<synchronous>, transform_indices = @transform_12, window_bounds = array<i64: 1, 128, 32>}, {pipeline_mode = #tpu.pipeline_mode<synchronous>, transform_indices = @transform_13, window_bounds = array<i64: 1, 1, 32>}, {pipeline_mode = #tpu.pipeline_mode<synchronous>, transform_indices = @transform_14, window_bounds = array<i64: 1, 32>}, {pipeline_mode = #tpu.pipeline_mode<synchronous>, transform_indices = @transform_15, window_bounds = array<i64: 1, 32>}, {transform_indices = @transform_16, window_bounds = array<i64: 1, 1, 32>}]} {
    %c0 = arith.constant 0 : index
    %c0_0 = arith.constant 0 : index
    %0 = vector.load %arg3[%c0, %c0_0] : memref<1x32xf32, #tpu.memory_space<vmem>>, vector<1x32xf32>
    %c0_1 = arith.constant 0 : index
    %c0_2 = arith.constant 0 : index
    %c0_3 = arith.constant 0 : index
    %1 = vector.load %arg1[%c0_1, %c0_2, %c0_3] : memref<1x5x32xf32, #tpu.memory_space<vmem>>, vector<1x5x32xf32>
    %2 = vector.shape_cast %1 : vector<1x5x32xf32> to vector<5x32xf32>
    %3 = tpu.concatenate %0, %2 in 0 : vector<1x32xf32>, vector<5x32xf32> -> vector<6x32xf32>
    %c0_4 = arith.constant 0 : index
    %c0_5 = arith.constant 0 : index
    %c0_6 = arith.constant 0 : index
    %4 = vector.load %arg2[%c0_4, %c0_5, %c0_6] : memref<1x6x32xf32, #tpu.memory_space<vmem>>, vector<1x6x32xf32>
    %5 = vector.shape_cast %4 : vector<1x6x32xf32> to vector<6x32xf32>
    %6 = arith.addf %3, %5 : vector<6x32xf32>
    %c0_7 = arith.constant 0 : index
    %c0_8 = arith.constant 0 : index
    %c0_9 = arith.constant 0 : index
    %7 = vector.load %arg4[%c0_7, %c0_8, %c0_9] : memref<1x1x32xf32, #tpu.memory_space<vmem>>, vector<1x1x32xf32>
    %8 = vector.shape_cast %7 : vector<1x1x32xf32> to vector<1x32xf32>
    %c0_10 = arith.constant 0 : index
    %c0_11 = arith.constant 0 : index
    %c0_12 = arith.constant 0 : index
    %9 = vector.load %arg5[%c0_10, %c0_11, %c0_12] : memref<1x1x32xf32, #tpu.memory_space<vmem>>, vector<1x1x32xf32>
    %10 = vector.shape_cast %9 : vector<1x1x32xf32> to vector<1x32xf32>
    %cst = arith.constant dense<0.000000e+00> : vector<6xf32>
    %11 = vector.multi_reduction <add>, %6, %cst [1] : vector<6x32xf32> to vector<6xf32>
    %12 = vector.shape_cast %11 : vector<6xf32> to vector<6x1xf32>
    %cst_13 = arith.constant 3.200000e+01 : f32
    %13 = vector.broadcast %cst_13 : f32 to vector<6x1xf32>
    %14 = arith.divf %12, %13 : vector<6x1xf32>
    %15 = vector.broadcast %14 : vector<6x1xf32> to vector<6x32xf32>
    %16 = arith.subf %6, %15 : vector<6x32xf32>
    %17 = arith.mulf %16, %16 : vector<6x32xf32>
    %cst_14 = arith.constant dense<0.000000e+00> : vector<6xf32>
    %18 = vector.multi_reduction <add>, %17, %cst_14 [1] : vector<6x32xf32> to vector<6xf32>
    %19 = vector.shape_cast %18 : vector<6xf32> to vector<6x1xf32>
    %cst_15 = arith.constant 3.200000e+01 : f32
    %20 = vector.broadcast %cst_15 : f32 to vector<6x1xf32>
    %21 = arith.divf %19, %20 : vector<6x1xf32>
    %22 = vector.broadcast %14 : vector<6x1xf32> to vector<6x32xf32>
    %23 = arith.subf %6, %22 : vector<6x32xf32>
    %cst_16 = arith.constant 9.99999974E-6 : f32
    %24 = vector.broadcast %cst_16 : f32 to vector<6x1xf32>
    %25 = arith.addf %21, %24 : vector<6x1xf32>
    %26 = math.rsqrt %25 : vector<6x1xf32>
    %27 = vector.broadcast %26 : vector<6x1xf32> to vector<6x32xf32>
    %28 = arith.mulf %23, %27 : vector<6x32xf32>
    %29 = vector.broadcast %8 : vector<1x32xf32> to vector<6x32xf32>
    %30 = arith.mulf %28, %29 : vector<6x32xf32>
    %31 = vector.broadcast %10 : vector<1x32xf32> to vector<6x32xf32>
    %32 = arith.addf %30, %31 : vector<6x32xf32>
    %33 = arith.truncf %32 : vector<6x32xf32> to vector<6x32xbf16>
    %c0_17 = arith.constant 0 : index
    %c0_18 = arith.constant 0 : index
    %c0_19 = arith.constant 0 : index
    %34 = vector.load %arg6[%c0_17, %c0_18, %c0_19] : memref<1x32x96xbf16, #tpu.memory_space<vmem>>, vector<1x32x96xbf16>
    %35 = vector.shape_cast %34 : vector<1x32x96xbf16> to vector<32x96xbf16>
    %cst_20 = arith.constant dense<0.000000e+00> : vector<6x96xf32>
    %36 = tpu.matmul %33, %35, %cst_20 {dimension_numbers = #tpu.dot_dimension_numbers<[1], [0], [0], [1], [0, 0, 1, 1], [], []>} : vector<6x32xbf16>, vector<32x96xbf16>, vector<6x96xf32> -> vector<6x96xf32>
    %37 = arith.truncf %36 : vector<6x96xf32> to vector<6x96xbf16>
    %38 = vector.extract_strided_slice %37 {offsets = [0, 0], sizes = [6, 16], strides = [1, 1]} : vector<6x96xbf16> to vector<6x16xbf16>
    %39 = vector.extract_strided_slice %37 {offsets = [0, 32], sizes = [6, 16], strides = [1, 1]} : vector<6x96xbf16> to vector<6x16xbf16>
    %40 = vector.extract_strided_slice %37 {offsets = [0, 64], sizes = [6, 16], strides = [1, 1]} : vector<6x96xbf16> to vector<6x16xbf16>
    %cst_21 = arith.constant dense<0.000000e+00> : vector<6x6xf32>
    %41 = tpu.matmul %38, %39, %cst_21 {dimension_numbers = #tpu.dot_dimension_numbers<[1], [1], [0], [0], [0, 0, 1, 0], [], []>} : vector<6x16xbf16>, vector<6x16xbf16>, vector<6x6xf32> -> vector<6x6xf32>
    %cst_22 = arith.constant dense<0xFF800000> : vector<6xf32>
    %42 = vector.multi_reduction <maximumf>, %41, %cst_22 [1] : vector<6x6xf32> to vector<6xf32>
    %43 = vector.shape_cast %42 : vector<6xf32> to vector<6x1xf32>
    %44 = vector.broadcast %43 : vector<6x1xf32> to vector<6x6xf32>
    %45 = arith.subf %41, %44 : vector<6x6xf32>
    %46 = math.exp %45 : vector<6x6xf32>
    %cst_23 = arith.constant dense<0.000000e+00> : vector<6xf32>
    %47 = vector.multi_reduction <add>, %46, %cst_23 [1] : vector<6x6xf32> to vector<6xf32>
    %48 = vector.shape_cast %47 : vector<6xf32> to vector<6x1xf32>
    %49 = tpu.reciprocal %48 {approx = true} : vector<6x1xf32> -> vector<6x1xf32>
    %50 = vector.broadcast %49 : vector<6x1xf32> to vector<6x6xf32>
    %51 = arith.mulf %46, %50 : vector<6x6xf32>
    %52 = arith.truncf %51 : vector<6x6xf32> to vector<6x6xbf16>
    %cst_24 = arith.constant dense<0.000000e+00> : vector<6x16xf32>
    %53 = tpu.matmul %52, %40, %cst_24 {dimension_numbers = #tpu.dot_dimension_numbers<[1], [0], [0], [1], [0, 0, 1, 1], [], []>} : vector<6x6xbf16>, vector<6x16xbf16>, vector<6x16xf32> -> vector<6x16xf32>
    %54 = vector.extract_strided_slice %37 {offsets = [0, 16], sizes = [6, 16], strides = [1, 1]} : vector<6x96xbf16> to vector<6x16xbf16>
    %55 = vector.extract_strided_slice %37 {offsets = [0, 48], sizes = [6, 16], strides = [1, 1]} : vector<6x96xbf16> to vector<6x16xbf16>
    %56 = vector.extract_strided_slice %37 {offsets = [0, 80], sizes = [6, 16], strides = [1, 1]} : vector<6x96xbf16> to vector<6x16xbf16>
    %cst_25 = arith.constant dense<0.000000e+00> : vector<6x6xf32>
    %57 = tpu.matmul %54, %55, %cst_25 {dimension_numbers = #tpu.dot_dimension_numbers<[1], [1], [0], [0], [0, 0, 1, 0], [], []>} : vector<6x16xbf16>, vector<6x16xbf16>, vector<6x6xf32> -> vector<6x6xf32>
    %cst_26 = arith.constant dense<0xFF800000> : vector<6xf32>
    %58 = vector.multi_reduction <maximumf>, %57, %cst_26 [1] : vector<6x6xf32> to vector<6xf32>
    %59 = vector.shape_cast %58 : vector<6xf32> to vector<6x1xf32>
    %60 = vector.broadcast %59 : vector<6x1xf32> to vector<6x6xf32>
    %61 = arith.subf %57, %60 : vector<6x6xf32>
    %62 = math.exp %61 : vector<6x6xf32>
    %cst_27 = arith.constant dense<0.000000e+00> : vector<6xf32>
    %63 = vector.multi_reduction <add>, %62, %cst_27 [1] : vector<6x6xf32> to vector<6xf32>
    %64 = vector.shape_cast %63 : vector<6xf32> to vector<6x1xf32>
    %65 = tpu.reciprocal %64 {approx = true} : vector<6x1xf32> -> vector<6x1xf32>
    %66 = vector.broadcast %65 : vector<6x1xf32> to vector<6x6xf32>
    %67 = arith.mulf %62, %66 : vector<6x6xf32>
    %68 = arith.truncf %67 : vector<6x6xf32> to vector<6x6xbf16>
    %cst_28 = arith.constant dense<0.000000e+00> : vector<6x16xf32>
    %69 = tpu.matmul %68, %56, %cst_28 {dimension_numbers = #tpu.dot_dimension_numbers<[1], [0], [0], [1], [0, 0, 1, 1], [], []>} : vector<6x6xbf16>, vector<6x16xbf16>, vector<6x16xf32> -> vector<6x16xf32>
    %70 = tpu.concatenate %53, %69 in 1 : vector<6x16xf32>, vector<6x16xf32> -> vector<6x32xf32>
    %71 = arith.truncf %70 : vector<6x32xf32> to vector<6x32xbf16>
    %c0_29 = arith.constant 0 : index
    %c0_30 = arith.constant 0 : index
    %c0_31 = arith.constant 0 : index
    %72 = vector.load %arg7[%c0_29, %c0_30, %c0_31] : memref<1x32x32xbf16, #tpu.memory_space<vmem>>, vector<1x32x32xbf16>
    %73 = vector.shape_cast %72 : vector<1x32x32xbf16> to vector<32x32xbf16>
    %cst_32 = arith.constant dense<0.000000e+00> : vector<6x32xf32>
    %74 = tpu.matmul %71, %73, %cst_32 {dimension_numbers = #tpu.dot_dimension_numbers<[1], [0], [0], [1], [0, 0, 1, 1], [], []>} : vector<6x32xbf16>, vector<32x32xbf16>, vector<6x32xf32> -> vector<6x32xf32>
    %75 = arith.addf %6, %74 : vector<6x32xf32>
    %c0_33 = arith.constant 0 : index
    %c0_34 = arith.constant 0 : index
    %c0_35 = arith.constant 0 : index
    %76 = vector.load %arg8[%c0_33, %c0_34, %c0_35] : memref<1x1x32xf32, #tpu.memory_space<vmem>>, vector<1x1x32xf32>
    %77 = vector.shape_cast %76 : vector<1x1x32xf32> to vector<1x32xf32>
    %78 = vector.broadcast %77 : vector<1x32xf32> to vector<6x32xf32>
    %79 = arith.addf %75, %78 : vector<6x32xf32>
    %c0_36 = arith.constant 0 : index
    %c0_37 = arith.constant 0 : index
    %c0_38 = arith.constant 0 : index
    %80 = vector.load %arg9[%c0_36, %c0_37, %c0_38] : memref<1x1x32xf32, #tpu.memory_space<vmem>>, vector<1x1x32xf32>
    %81 = vector.shape_cast %80 : vector<1x1x32xf32> to vector<1x32xf32>
    %c0_39 = arith.constant 0 : index
    %c0_40 = arith.constant 0 : index
    %c0_41 = arith.constant 0 : index
    %82 = vector.load %arg10[%c0_39, %c0_40, %c0_41] : memref<1x1x32xf32, #tpu.memory_space<vmem>>, vector<1x1x32xf32>
    %83 = vector.shape_cast %82 : vector<1x1x32xf32> to vector<1x32xf32>
    %cst_42 = arith.constant dense<0.000000e+00> : vector<6xf32>
    %84 = vector.multi_reduction <add>, %79, %cst_42 [1] : vector<6x32xf32> to vector<6xf32>
    %85 = vector.shape_cast %84 : vector<6xf32> to vector<6x1xf32>
    %cst_43 = arith.constant 3.200000e+01 : f32
    %86 = vector.broadcast %cst_43 : f32 to vector<6x1xf32>
    %87 = arith.divf %85, %86 : vector<6x1xf32>
    %88 = vector.broadcast %87 : vector<6x1xf32> to vector<6x32xf32>
    %89 = arith.subf %79, %88 : vector<6x32xf32>
    %90 = arith.mulf %89, %89 : vector<6x32xf32>
    %cst_44 = arith.constant dense<0.000000e+00> : vector<6xf32>
    %91 = vector.multi_reduction <add>, %90, %cst_44 [1] : vector<6x32xf32> to vector<6xf32>
    %92 = vector.shape_cast %91 : vector<6xf32> to vector<6x1xf32>
    %cst_45 = arith.constant 3.200000e+01 : f32
    %93 = vector.broadcast %cst_45 : f32 to vector<6x1xf32>
    %94 = arith.divf %92, %93 : vector<6x1xf32>
    %95 = vector.broadcast %87 : vector<6x1xf32> to vector<6x32xf32>
    %96 = arith.subf %79, %95 : vector<6x32xf32>
    %cst_46 = arith.constant 9.99999974E-6 : f32
    %97 = vector.broadcast %cst_46 : f32 to vector<6x1xf32>
    %98 = arith.addf %94, %97 : vector<6x1xf32>
    %99 = math.rsqrt %98 : vector<6x1xf32>
    %100 = vector.broadcast %99 : vector<6x1xf32> to vector<6x32xf32>
    %101 = arith.mulf %96, %100 : vector<6x32xf32>
    %102 = vector.broadcast %81 : vector<1x32xf32> to vector<6x32xf32>
    %103 = arith.mulf %101, %102 : vector<6x32xf32>
    %104 = vector.broadcast %83 : vector<1x32xf32> to vector<6x32xf32>
    %105 = arith.addf %103, %104 : vector<6x32xf32>
    %106 = arith.truncf %105 : vector<6x32xf32> to vector<6x32xbf16>
    %c0_47 = arith.constant 0 : index
    %c0_48 = arith.constant 0 : index
    %c0_49 = arith.constant 0 : index
    %107 = vector.load %arg11[%c0_47, %c0_48, %c0_49] : memref<1x32x128xbf16, #tpu.memory_space<vmem>>, vector<1x32x128xbf16>
    %108 = vector.shape_cast %107 : vector<1x32x128xbf16> to vector<32x128xbf16>
    %cst_50 = arith.constant dense<0.000000e+00> : vector<6x128xf32>
    %109 = tpu.matmul %106, %108, %cst_50 {dimension_numbers = #tpu.dot_dimension_numbers<[1], [0], [0], [1], [0, 0, 1, 1], [], []>} : vector<6x32xbf16>, vector<32x128xbf16>, vector<6x128xf32> -> vector<6x128xf32>
    %c0_51 = arith.constant 0 : index
    %c0_52 = arith.constant 0 : index
    %c0_53 = arith.constant 0 : index
    %110 = vector.load %arg12[%c0_51, %c0_52, %c0_53] : memref<1x1x128xf32, #tpu.memory_space<vmem>>, vector<1x1x128xf32>
    %111 = vector.shape_cast %110 : vector<1x1x128xf32> to vector<1x128xf32>
    %112 = vector.broadcast %111 : vector<1x128xf32> to vector<6x128xf32>
    %113 = arith.addf %109, %112 : vector<6x128xf32>
    %cst_54 = arith.constant 5.000000e-01 : f32
    %114 = vector.broadcast %cst_54 : f32 to vector<6x128xf32>
    %115 = arith.mulf %114, %113 : vector<6x128xf32>
    %cst_55 = arith.constant 4.471500e-02 : f32
    %116 = vector.broadcast %cst_55 : f32 to vector<6x128xf32>
    %117 = arith.mulf %116, %113 : vector<6x128xf32>
    %118 = arith.mulf %117, %113 : vector<6x128xf32>
    %119 = arith.mulf %118, %113 : vector<6x128xf32>
    %120 = arith.addf %113, %119 : vector<6x128xf32>
    %cst_56 = arith.constant 0.797884583 : f32
    %121 = vector.broadcast %cst_56 : f32 to vector<6x128xf32>
    %122 = arith.mulf %121, %120 : vector<6x128xf32>
    %123 = math.tanh %122 : vector<6x128xf32>
    %cst_57 = arith.constant 1.000000e+00 : f32
    %124 = vector.broadcast %cst_57 : f32 to vector<6x128xf32>
    %125 = arith.addf %124, %123 : vector<6x128xf32>
    %126 = arith.mulf %115, %125 : vector<6x128xf32>
    %127 = arith.truncf %126 : vector<6x128xf32> to vector<6x128xbf16>
    %c0_58 = arith.constant 0 : index
    %c0_59 = arith.constant 0 : index
    %c0_60 = arith.constant 0 : index
    %128 = vector.load %arg13[%c0_58, %c0_59, %c0_60] : memref<1x128x32xbf16, #tpu.memory_space<vmem>>, vector<1x128x32xbf16>
    %129 = vector.shape_cast %128 : vector<1x128x32xbf16> to vector<128x32xbf16>
    %cst_61 = arith.constant dense<0.000000e+00> : vector<6x32xf32>
    %130 = tpu.matmul %127, %129, %cst_61 {dimension_numbers = #tpu.dot_dimension_numbers<[1], [0], [0], [1], [0, 0, 1, 1], [], []>} : vector<6x128xbf16>, vector<128x32xbf16>, vector<6x32xf32> -> vector<6x32xf32>
    %131 = arith.addf %79, %130 : vector<6x32xf32>
    %c0_62 = arith.constant 0 : index
    %c0_63 = arith.constant 0 : index
    %c0_64 = arith.constant 0 : index
    %132 = vector.load %arg14[%c0_62, %c0_63, %c0_64] : memref<1x1x32xf32, #tpu.memory_space<vmem>>, vector<1x1x32xf32>
    %133 = vector.shape_cast %132 : vector<1x1x32xf32> to vector<1x32xf32>
    %134 = vector.broadcast %133 : vector<1x32xf32> to vector<6x32xf32>
    %135 = arith.addf %131, %134 : vector<6x32xf32>
    %136 = vector.extract_strided_slice %135 {offsets = [0, 0], sizes = [1, 32], strides = [1, 1]} : vector<6x32xf32> to vector<1x32xf32>
    %c0_65 = arith.constant 0 : index
    %c0_66 = arith.constant 0 : index
    %137 = vector.load %arg15[%c0_65, %c0_66] : memref<1x32xf32, #tpu.memory_space<vmem>>, vector<1x32xf32>
    %c0_67 = arith.constant 0 : index
    %c0_68 = arith.constant 0 : index
    %138 = vector.load %arg16[%c0_67, %c0_68] : memref<1x32xf32, #tpu.memory_space<vmem>>, vector<1x32xf32>
    %cst_69 = arith.constant dense<0.000000e+00> : vector<1xf32>
    %139 = vector.multi_reduction <add>, %136, %cst_69 [1] : vector<1x32xf32> to vector<1xf32>
    %140 = vector.shape_cast %139 : vector<1xf32> to vector<1x1xf32>
    %cst_70 = arith.constant 3.200000e+01 : f32
    %141 = vector.broadcast %cst_70 : f32 to vector<1x1xf32>
    %142 = arith.divf %140, %141 : vector<1x1xf32>
    %143 = vector.broadcast %142 : vector<1x1xf32> to vector<1x32xf32>
    %144 = arith.subf %136, %143 : vector<1x32xf32>
    %145 = arith.mulf %144, %144 : vector<1x32xf32>
    %cst_71 = arith.constant dense<0.000000e+00> : vector<1xf32>
    %146 = vector.multi_reduction <add>, %145, %cst_71 [1] : vector<1x32xf32> to vector<1xf32>
    %147 = vector.shape_cast %146 : vector<1xf32> to vector<1x1xf32>
    %cst_72 = arith.constant 3.200000e+01 : f32
    %148 = vector.broadcast %cst_72 : f32 to vector<1x1xf32>
    %149 = arith.divf %147, %148 : vector<1x1xf32>
    %150 = vector.broadcast %142 : vector<1x1xf32> to vector<1x32xf32>
    %151 = arith.subf %136, %150 : vector<1x32xf32>
    %cst_73 = arith.constant 9.99999974E-6 : f32
    %152 = vector.broadcast %cst_73 : f32 to vector<1x1xf32>
    %153 = arith.addf %149, %152 : vector<1x1xf32>
    %154 = math.rsqrt %153 : vector<1x1xf32>
    %155 = vector.broadcast %154 : vector<1x1xf32> to vector<1x32xf32>
    %156 = arith.mulf %151, %155 : vector<1x32xf32>
    %157 = arith.mulf %156, %137 : vector<1x32xf32>
    %158 = arith.addf %157, %138 : vector<1x32xf32>
    %c0_74 = arith.constant 0 : index
    %c0_75 = arith.constant 0 : index
    %c0_76 = arith.constant 0 : index
    %159 = vector.load %arg17[%c0_74, %c0_75, %c0_76] : memref<1x1x32xf32, #tpu.memory_space<vmem>>, vector<1x1x32xf32>
    %160 = vector.shape_cast %159 : vector<1x1x32xf32> to vector<1x32xf32>
    %161 = vector.shape_cast %158 : vector<1x32xf32> to vector<1x1x32xf32>
    tpu.vector_store %arg17[%c0_74, %c0_75, %c0_76], %161 {strides = array<i32>} : memref<1x1x32xf32, #tpu.memory_space<vmem>>, vector<1x1x32xf32>,
    return
  }
  func.func @transform_0(%arg0: i32) -> (i32, i32, i32) {
    %c0_i32 = arith.constant 0 : i32
    %c0_i32_0 = arith.constant 0 : i32
    %c0_i32_1 = arith.constant 0 : i32
    return %arg0, %c0_i32, %c0_i32_0 : i32, i32, i32
  }
  func.func @transform_1(%arg0: i32) -> (i32, i32, i32) {
    %c0_i32 = arith.constant 0 : i32
    %c0_i32_0 = arith.constant 0 : i32
    %c0_i32_1 = arith.constant 0 : i32
    %c0_i32_2 = arith.constant 0 : i32
    return %c0_i32, %c0_i32_0, %c0_i32_1 : i32, i32, i32
  }
  func.func @transform_2(%arg0: i32) -> (i32, i32) {
    %c0_i32 = arith.constant 0 : i32
    %c0_i32_0 = arith.constant 0 : i32
    %c0_i32_1 = arith.constant 0 : i32
    return %c0_i32, %c0_i32_0 : i32, i32
  }
  func.func @transform_3(%arg0: i32) -> (i32, i32, i32) {
    %c0_i32 = arith.constant 0 : i32
    %c0_i32_0 = arith.constant 0 : i32
    %c0_i32_1 = arith.constant 0 : i32
    %c0_i32_2 = arith.constant 0 : i32
    return %c0_i32, %c0_i32_0, %c0_i32_1 : i32, i32, i32
  }
  func.func @transform_4(%arg0: i32) -> (i32, i32, i32) {
    %c0_i32 = arith.constant 0 : i32
    %c0_i32_0 = arith.constant 0 : i32
    %c0_i32_1 = arith.constant 0 : i32
    %c0_i32_2 = arith.constant 0 : i32
    return %c0_i32, %c0_i32_0, %c0_i32_1 : i32, i32, i32
  }
  func.func @transform_5(%arg0: i32) -> (i32, i32, i32) {
    %c0_i32 = arith.constant 0 : i32
    %c0_i32_0 = arith.constant 0 : i32
    %c0_i32_1 = arith.constant 0 : i32
    %c0_i32_2 = arith.constant 0 : i32
    return %c0_i32, %c0_i32_0, %c0_i32_1 : i32, i32, i32
  }
  func.func @transform_6(%arg0: i32) -> (i32, i32, i32) {
    %c0_i32 = arith.constant 0 : i32
    %c0_i32_0 = arith.constant 0 : i32
    %c0_i32_1 = arith.constant 0 : i32
    %c0_i32_2 = arith.constant 0 : i32
    return %c0_i32, %c0_i32_0, %c0_i32_1 : i32, i32, i32
  }
  func.func @transform_7(%arg0: i32) -> (i32, i32, i32) {
    %c0_i32 = arith.constant 0 : i32
    %c0_i32_0 = arith.constant 0 : i32
    %c0_i32_1 = arith.constant 0 : i32
    %c0_i32_2 = arith.constant 0 : i32
    return %c0_i32, %c0_i32_0, %c0_i32_1 : i32, i32, i32
  }
  func.func @transform_8(%arg0: i32) -> (i32, i32, i32) {
    %c0_i32 = arith.constant 0 : i32
    %c0_i32_0 = arith.constant 0 : i32
    %c0_i32_1 = arith.constant 0 : i32
    %c0_i32_2 = arith.constant 0 : i32
    return %c0_i32, %c0_i32_0, %c0_i32_1 : i32, i32, i32
  }
  func.func @transform_9(%arg0: i32) -> (i32, i32, i32) {
    %c0_i32 = arith.constant 0 : i32
    %c0_i32_0 = arith.constant 0 : i32
    %c0_i32_1 = arith.constant 0 : i32
    %c0_i32_2 = arith.constant 0 : i32
    return %c0_i32, %c0_i32_0, %c0_i32_1 : i32, i32, i32
  }
  func.func @transform_10(%arg0: i32) -> (i32, i32, i32) {
    %c0_i32 = arith.constant 0 : i32
    %c0_i32_0 = arith.constant 0 : i32
    %c0_i32_1 = arith.constant 0 : i32
    %c0_i32_2 = arith.constant 0 : i32
    return %c0_i32, %c0_i32_0, %c0_i32_1 : i32, i32, i32
  }
  func.func @transform_11(%arg0: i32) -> (i32, i32, i32) {
    %c0_i32 = arith.constant 0 : i32
    %c0_i32_0 = arith.constant 0 : i32
    %c0_i32_1 = arith.constant 0 : i32
    %c0_i32_2 = arith.constant 0 : i32
    return %c0_i32, %c0_i32_0, %c0_i32_1 : i32, i32, i32
  }
  func.func @transform_12(%arg0: i32) -> (i32, i32, i32) {
    %c0_i32 = arith.constant 0 : i32
    %c0_i32_0 = arith.constant 0 : i32
    %c0_i32_1 = arith.constant 0 : i32
    %c0_i32_2 = arith.constant 0 : i32
    return %c0_i32, %c0_i32_0, %c0_i32_1 : i32, i32, i32
  }
  func.func @transform_13(%arg0: i32) -> (i32, i32, i32) {
    %c0_i32 = arith.constant 0 : i32
    %c0_i32_0 = arith.constant 0 : i32
    %c0_i32_1 = arith.constant 0 : i32
    %c0_i32_2 = arith.constant 0 : i32
    return %c0_i32, %c0_i32_0, %c0_i32_1 : i32, i32, i32
  }
  func.func @transform_14(%arg0: i32) -> (i32, i32) {
    %c0_i32 = arith.constant 0 : i32
    %c0_i32_0 = arith.constant 0 : i32
    %c0_i32_1 = arith.constant 0 : i32
    return %c0_i32, %c0_i32_0 : i32, i32
  }
  func.func @transform_15(%arg0: i32) -> (i32, i32) {
    %c0_i32 = arith.constant 0 : i32
    %c0_i32_0 = arith.constant 0 : i32
    %c0_i32_1 = arith.constant 0 : i32
    return %c0_i32, %c0_i32_0 : i32, i32
  }
  func.func @transform_16(%arg0: i32) -> (i32, i32, i32) {
    %c0_i32 = arith.constant 0 : i32
    %c0_i32_0 = arith.constant 0 : i32
    %c0_i32_1 = arith.constant 0 : i32
    return %arg0, %c0_i32, %c0_i32_0 : i32, i32, i32
  }
}

module attributes {stable_mosaic.version = 11 : i64} {
  func.func @_head_kernel(%arg0: memref<2x32xf32, #tpu.memory_space<vmem>>, %arg1: memref<1x32xf32, #tpu.memory_space<vmem>>, %arg2: memref<1x32xf32, #tpu.memory_space<vmem>>, %arg3: memref<32x128xbf16, #tpu.memory_space<vmem>>, %arg4: memref<1x128xf32, #tpu.memory_space<vmem>>, %arg5: memref<128x10xbf16, #tpu.memory_space<vmem>>, %arg6: memref<1x10xf32, #tpu.memory_space<vmem>>, %arg7: memref<2x10xf32, #tpu.memory_space<vmem>>) attributes {dimension_semantics = [], scalar_prefetch = 0 : i64, scratch_operands = 0 : i64, tpu.core_type = #tpu.core_type<tc>} {
    %c0 = arith.constant 0 : index
    %c0_0 = arith.constant 0 : index
    %0 = vector.load %arg0[%c0, %c0_0] : memref<2x32xf32, #tpu.memory_space<vmem>>, vector<2x32xf32>
    %c0_1 = arith.constant 0 : index
    %c0_2 = arith.constant 0 : index
    %1 = vector.load %arg1[%c0_1, %c0_2] : memref<1x32xf32, #tpu.memory_space<vmem>>, vector<1x32xf32>
    %c0_3 = arith.constant 0 : index
    %c0_4 = arith.constant 0 : index
    %2 = vector.load %arg2[%c0_3, %c0_4] : memref<1x32xf32, #tpu.memory_space<vmem>>, vector<1x32xf32>
    %cst = arith.constant dense<0.000000e+00> : vector<2xf32>
    %3 = vector.multi_reduction <add>, %0, %cst [1] : vector<2x32xf32> to vector<2xf32>
    %4 = vector.shape_cast %3 : vector<2xf32> to vector<2x1xf32>
    %cst_5 = arith.constant 3.200000e+01 : f32
    %5 = vector.broadcast %cst_5 : f32 to vector<2x1xf32>
    %6 = arith.divf %4, %5 : vector<2x1xf32>
    %7 = vector.broadcast %6 : vector<2x1xf32> to vector<2x32xf32>
    %8 = arith.subf %0, %7 : vector<2x32xf32>
    %9 = arith.mulf %8, %8 : vector<2x32xf32>
    %cst_6 = arith.constant dense<0.000000e+00> : vector<2xf32>
    %10 = vector.multi_reduction <add>, %9, %cst_6 [1] : vector<2x32xf32> to vector<2xf32>
    %11 = vector.shape_cast %10 : vector<2xf32> to vector<2x1xf32>
    %cst_7 = arith.constant 3.200000e+01 : f32
    %12 = vector.broadcast %cst_7 : f32 to vector<2x1xf32>
    %13 = arith.divf %11, %12 : vector<2x1xf32>
    %14 = vector.broadcast %6 : vector<2x1xf32> to vector<2x32xf32>
    %15 = arith.subf %0, %14 : vector<2x32xf32>
    %cst_8 = arith.constant 9.99999974E-6 : f32
    %16 = vector.broadcast %cst_8 : f32 to vector<2x1xf32>
    %17 = arith.addf %13, %16 : vector<2x1xf32>
    %18 = math.rsqrt %17 : vector<2x1xf32>
    %19 = vector.broadcast %18 : vector<2x1xf32> to vector<2x32xf32>
    %20 = arith.mulf %15, %19 : vector<2x32xf32>
    %21 = vector.broadcast %1 : vector<1x32xf32> to vector<2x32xf32>
    %22 = arith.mulf %20, %21 : vector<2x32xf32>
    %23 = vector.broadcast %2 : vector<1x32xf32> to vector<2x32xf32>
    %24 = arith.addf %22, %23 : vector<2x32xf32>
    %25 = arith.truncf %24 : vector<2x32xf32> to vector<2x32xbf16>
    %c0_9 = arith.constant 0 : index
    %c0_10 = arith.constant 0 : index
    %26 = vector.load %arg3[%c0_9, %c0_10] : memref<32x128xbf16, #tpu.memory_space<vmem>>, vector<32x128xbf16>
    %cst_11 = arith.constant dense<0.000000e+00> : vector<2x128xf32>
    %27 = tpu.matmul %25, %26, %cst_11 {dimension_numbers = #tpu.dot_dimension_numbers<[1], [0], [0], [1], [0, 0, 1, 1], [], []>} : vector<2x32xbf16>, vector<32x128xbf16>, vector<2x128xf32> -> vector<2x128xf32>
    %c0_12 = arith.constant 0 : index
    %c0_13 = arith.constant 0 : index
    %28 = vector.load %arg4[%c0_12, %c0_13] : memref<1x128xf32, #tpu.memory_space<vmem>>, vector<1x128xf32>
    %29 = vector.broadcast %28 : vector<1x128xf32> to vector<2x128xf32>
    %30 = arith.addf %27, %29 : vector<2x128xf32>
    %cst_14 = arith.constant 5.000000e-01 : f32
    %31 = vector.broadcast %cst_14 : f32 to vector<2x128xf32>
    %32 = arith.mulf %31, %30 : vector<2x128xf32>
    %cst_15 = arith.constant 4.471500e-02 : f32
    %33 = vector.broadcast %cst_15 : f32 to vector<2x128xf32>
    %34 = arith.mulf %33, %30 : vector<2x128xf32>
    %35 = arith.mulf %34, %30 : vector<2x128xf32>
    %36 = arith.mulf %35, %30 : vector<2x128xf32>
    %37 = arith.addf %30, %36 : vector<2x128xf32>
    %cst_16 = arith.constant 0.797884583 : f32
    %38 = vector.broadcast %cst_16 : f32 to vector<2x128xf32>
    %39 = arith.mulf %38, %37 : vector<2x128xf32>
    %40 = math.tanh %39 : vector<2x128xf32>
    %cst_17 = arith.constant 1.000000e+00 : f32
    %41 = vector.broadcast %cst_17 : f32 to vector<2x128xf32>
    %42 = arith.addf %41, %40 : vector<2x128xf32>
    %43 = arith.mulf %32, %42 : vector<2x128xf32>
    %44 = arith.truncf %43 : vector<2x128xf32> to vector<2x128xbf16>
    %c0_18 = arith.constant 0 : index
    %c0_19 = arith.constant 0 : index
    %45 = vector.load %arg5[%c0_18, %c0_19] : memref<128x10xbf16, #tpu.memory_space<vmem>>, vector<128x10xbf16>
    %cst_20 = arith.constant dense<0.000000e+00> : vector<2x10xf32>
    %46 = tpu.matmul %44, %45, %cst_20 {dimension_numbers = #tpu.dot_dimension_numbers<[1], [0], [0], [1], [0, 0, 1, 1], [], []>} : vector<2x128xbf16>, vector<128x10xbf16>, vector<2x10xf32> -> vector<2x10xf32>
    %c0_21 = arith.constant 0 : index
    %c0_22 = arith.constant 0 : index
    %47 = vector.load %arg6[%c0_21, %c0_22] : memref<1x10xf32, #tpu.memory_space<vmem>>, vector<1x10xf32>
    %48 = vector.broadcast %47 : vector<1x10xf32> to vector<2x10xf32>
    %49 = arith.addf %46, %48 : vector<2x10xf32>
    %c0_23 = arith.constant 0 : index
    %c0_24 = arith.constant 0 : index
    %50 = vector.load %arg7[%c0_23, %c0_24] : memref<2x10xf32, #tpu.memory_space<vmem>>, vector<2x10xf32>
    tpu.vector_store %arg7[%c0_23, %c0_24], %49 {strides = array<i32>} : memref<2x10xf32, #tpu.memory_space<vmem>>, vector<2x10xf32>,
    return
  }
}

</mosaic_0001>

<bundles_post_ra>
// kernel: tempose_forward.5
= control target key start
LH: loop header
LB: loop body
LE: loop exit
PB: predicated region body
PF: predicated region fallthrough
CT: control target
= control target key end

     0   :  { %s357_s12 = smov 0   ;;  %s383_s0 = inlined_call_operand.vmem [shape: f32[4,8,24], index: 0, kind: input, shape index: {}]   ;;  %s384_s1 = inlined_call_operand.vmem [shape: bf16[24,32], index: 1, kind: input, shape index: {}]   ;;  %s385_s2 = inlined_call_operand.vmem [shape: f32[1,32], index: 2, kind: input, shape index: {}]   ;;  %s386_s3 = inlined_call_operand.vmem [shape: f32[4,8,32], index: 3, kind: output, shape index: {}]  }
   0x1 LB: > { %s291_s13 = sadd.s32 4294967295, %s333_s12   ;;  %p295_p0 = scmp.ge.s32.totalorder %s333_s12, 1  ;;  %s333_s12 = sphi %s357_s12, %s13_s12  }
   0x2   : > { %p136_p1 = scmp.lt.s32.totalorder %s333_s12, 5 }
   0x4   : > { %p137_p2 = pnand %p295_p0, %p136_p1 }
   0x5   : > { %p158_p3 = scmp.lt.s32.totalorder (!%p137_p2), %s291_s13, 3 }
   0x6   : > { %140 = sbr.rel (%p137_p2) target bundleno = 219 (0xdb), region = 32 }
   0xb   : > { %v325_v0 = vld [vmem:[%s384_s1 + $0x8] ss:$0 sps:$4 sm:$0xff]   ;;  %vm192_vm0 = vcmask 1043456   ;;  %v335_v1 = vmov 0.0   ;;  %vm336_vm1 = vmmov 0   ;;  %v326_v3 = vld [vmem:[%s384_s1] sm:$0xff]  }
   0xc   : > { %307 = vmatprep.subr.bf16.mxu0 %v335_v1  ;;  %v194_v2 = vsel %vm192_vm0, %v325_v0, 0  ;;  %311 = vmatprep.mubr.msk.bf16.mxu0 %vm336_vm1, %v335_v1  ;;  %s388_s13 = smov (!%p158_p3, %s291_s13), 3  ;;  %vm188_vm2 = vcmask 195584   ;;  %v298_v6 = vld [vmem:[%s385_s2] ss:$0 sm:$0xff]  ;;  %vm236_vm3 = vcmask 261120  }
   0xd   : > { %308 = vmatpush3.bf16.msra.mxu0 %v194_v2  ;;  %s296_s18 = sshll.u32 %s388_s13, 3 }
   0xe   : > { %309 = vmatprep.subr.bf16.mxu0 %v335_v1  ;;  %s161_s21 = scalar_lea.vmem %s383_s0, %s296_s18  ;;  %s165_s26 = scalar_lea.vmem %s386_s3, %s296_s18 }
   0xf   : > { %v167_v4 = vld [vmem:[%s161_s21] sm:$0xff] }
  0x10   : > { %v168_v5 = vpack.c.bf16 %v167_v4, %v167_v4 }
  0x11   : > { %310 = vmatpush3.bf16.msra.mxu0 %v326_v3 }
  0x14   : > { %312 = vmatmul.mubr.msk.bf16.vlgmr.msra.gmra.mxu0 %vm188_vm2, %v168_v5 }
  0xd4   : > { %v230_v7 = vpop.f32.mrf.mxu0 }
  0xd5   : > { %v231_v8 = vadd.f32 %v298_v6, %v230_v7 }
  0xd6   : > { %v313_v9 = vpop.f32.mrf.mxu0 }
  0xd7   : > { %237 = vst.msk [vmem:[%s165_s26] sm:$0xff] %vm236_vm3, %v231_v8 }
  0xd8   : > { %v233_v10 = vpop.f32.mrf.mxu0 }
  0xda   : > { %v314_v11 = vpop.f32.mrf.mxu0 }
  0xdb PF: > { %s13_s12 = sadd.s32 1, %s333_s12  }
  0xdc   : > { %p10_p4 = scmp.ge.s32.totalorder %s13_s12, 6  }
  0xde   :  { %12 = sbr.rel (!%p10_p4) target bundleno = 1 (0x1), region = 62 }

// kernel: tempose_forward.6
= control target key start
LH: loop header
LB: loop body
LE: loop exit
PB: predicated region body
PF: predicated region fallthrough
CT: control target
= control target key end

     0   :  { %s754_s24 = smov 0   ;;  %s828_s0 = inlined_call_operand.vmem [shape: f32[6,8,2], index: 0, kind: input, shape index: {}]   ;;  %s829_s1 = inlined_call_operand.vmem [shape: bf16[10,16], index: 1, kind: input, shape index: {}]   ;;  %s830_s2 = inlined_call_operand.vmem [shape: bf16[80,32], index: 2, kind: input, shape index: {}]   ;;  %s831_s3 = inlined_call_operand.vmem [shape: f32[1,16], index: 3, kind: input, shape index: {}]   ;;  %s832_s4 = inlined_call_operand.vmem [shape: f32[1,16], index: 4, kind: input, shape index: {}]   ;;  %s833_s5 = inlined_call_operand.vmem [shape: f32[1,32], index: 5, kind: input, shape index: {}]   ;;  %s834_s6 = inlined_call_operand.vmem [shape: f32[1,32], index: 6, kind: input, shape index: {}]   ;;  %s835_s7 = inlined_call_operand.vmem [shape: f32[6,8,32], index: 7, kind: output, shape index: {}]  }
   0x1 LB: > { %s619_s25 = sadd.s32 4294967295, %s702_s24   ;;  %p623_p0 = scmp.ge.s32.totalorder %s702_s24, 1  ;;  %s702_s24 = sphi %s754_s24, %s17_s24  }
   0x2   : > { %p236_p1 = scmp.lt.s32.totalorder %s702_s24, 7 }
   0x4   : > { %p237_p2 = pnand %p623_p0, %p236_p1 }
   0x5   : > { %p266_p3 = scmp.lt.s32.totalorder (!%p237_p2), %s619_s25, 5  ;;  %s706_s9 = smov (!%p237_p2), 2  }
   0x6   : > { %240 = sbr.rel (%p237_p2) target bundleno = 720 (0x2d0), region = 48  ;;  %s707_s10 = smov (!%p237_p2), 6  }
   0x7   : > { %s708_s11 = smov (!%p237_p2), 4   ;;  %s709_s12 = smov (!%p237_p2), 8  }
   0x8   : > { %s710_s30 = smov (!%p237_p2), 32  }
   0xb   : > { %v277_v0 = vlaneseq  ;;  %vm338_vm0 = vcmask 1044480   ;;  %s837_s25 = smov (!%p266_p3, %s619_s25), 5  ;;  %v704_v2 = vmov 0.0   ;;  %v686_v3 = vld [vmem:[%s829_s1] sm:$0x1f]   ;;  %vm705_vm3 = vmmov 0  }
   0xc   : > { %648 = vmatprep.subr.bf16.mxu0 %v704_v2  ;;  %654 = vmatprep.subr.bf16.mxu1 %v704_v2  ;;  %s624_s28 = sshll.u32 %s837_s25, 3  ;;  %v340_v7 = vsel %vm338_vm0, %v686_v3, 0  ;;  %vm318_vm6 = vcmask 15360   ;;  %vm320_vm7 = vcmask 31744   ;;  %vm322_vm8 = vcmask 48128   ;;  %v687_v27 = vld [vmem:[%s830_s2 + $0x20] sm:$0xff]  }
   0xd   : > { %v764_v1 = vshrl.u32 %v277_v0, 7  ;;  %s269_s8 = scalar_lea.vmem %s828_s0, %s624_s28  ;;  %649 = vmatpush3.bf16.msra.mxu0 %v340_v7  ;;  %650 = vmatprep.mubr.msk.bf16.mxu0 %vm705_vm3, %v704_v2  ;;  %vm324_vm9 = vcmask 64512   ;;  %vm334_vm10 = vcmask 80896   ;;  %v688_v28 = vld [vmem:[%s830_s2 + $0x18] sm:$0xff]   ;;  %v628_v29 = vld [vmem:[%s831_s3] ss:$0 sm:$0xff]  ;;  %s273_s17 = scalar_lea.vmem %s835_s7, %s624_s28 }
   0xe   : > { %v275_v8 = vld [vmem:[%s269_s8] sm:$0xff]  ;;  %664 = vmatprep.mubr.msk.bf16.mxu1 %vm705_vm3, %v704_v2  ;;  %655 = vmatpush3.bf16.msra.mxu1 %v687_v27  ;;  %v689_v42 = vld [vmem:[%s830_s2 + $0x10] sm:$0xff]   ;;  %v690_v43 = vld [vmem:[%s830_s2 + $0x8] sm:$0xff]   ;;  %s711_s8 = smov 16   ;;  %vm447_vm15 = vcmask 130048   ;;  %vm449_vm0 = vcmask 261120  }
   0xf   : > { %v285_v4 = vadd.s32 4294967295, %v764_v1  ;;  %v291_v5 = vadd.s32 1, %v764_v1  ;;  %v297_v6 = vadd.s32 2, %v764_v1  ;;  %v284_v9 = vrot.slane %v275_v8, 7  ;;  %656 = vmatprep.subr.bf16.mxu1 %v704_v2  ;;  %v629_v31 = vld [vmem:[%s832_s4] ss:$0 sm:$0xff] }
  0x10   : > { %v290_v10 = vrot.slane %v275_v8, 1  ;;  %v296_v11 = vrot.slane %v275_v8, 2  ;;  %v279_v15 = vadd.s32 4294967294, %v764_v1  ;;  %v276_v16 = vrot.slane %v275_v8, 6  ;;  %v691_v44 = vld [vmem:[%s830_s2] sm:$0xff]  }
  0x11   : > { %vm286_vm1 = vcmp.ge.s32.totalorder %v285_v4, 0  ;;  %vm293_vm2 = vcmp.lt.s32.totalorder %v291_v5, 8  ;;  %vm299_vm4 = vcmp.lt.s32.totalorder %v297_v6, 8  ;;  %v414_v46 = vadd.s32 4294967293, %v764_v1 }
  0x12   : > { %v289_v12 = vsel %vm286_vm1, %v284_v9, 0.0  ;;  %v295_v13 = vsel %vm293_vm2, %v290_v10, 0.0  ;;  %v301_v14 = vsel %vm299_vm4, %v296_v11, 0.0  ;;  %vm280_vm5 = vcmp.ge.s32.totalorder %v279_v15, 0  ;;  %657 = vmatpush3.bf16.msra.mxu1 %v688_v28 }
  0x13   : > { %303 = vrot.lane.b32.xlu0 %v289_v12, %s706_s9  ;;  %311 = vrot.lane.b32.xlu1 %v295_v13, %s707_s10  ;;  %v283_v19 = vsel %vm280_vm5, %v276_v16, 0.0  ;;  %v426_v47 = vadd.s32 6, %v764_v1  ;;  %vm415_vm11 = vcmp.ge.s32.totalorder %v414_v46, 0  ;;  %v420_v51 = vadd.s32 3, %v764_v1  ;;  %s712_s9 = smov 64   ;;  %s713_s10 = smov 48  }
  0x14   : > { %658 = vmatprep.subr.bf16.mxu1 %v704_v2  ;;  %v408_v58 = vadd.s32 4294967290, %v764_v1  ;;  %vm451_vm1 = vcmask 392192   ;;  %vm453_vm2 = vcmask 523264   ;;  %vm496_vm3 = vcmask 654336   ;;  %v636_v1 = vld [vmem:[%s833_s5] ss:$0 sm:$0xff] }
  0x15   : > { %vm428_vm12 = vcmp.lt.s32.totalorder %v426_v47, 8  ;;  %vm422_vm13 = vcmp.lt.s32.totalorder %v420_v51, 8 }
  0x16   : > { %659 = vmatpush3.bf16.msra.mxu1 %v689_v42  ;;  %vm409_vm14 = vcmp.ge.s32.totalorder %v408_v58, 0 }
  0x17   : > { %307 = vrot.lane.b32.xlu0 %v275_v8, %s708_s11  ;;  %315 = vrot.lane.b32.xlu1 %v301_v14, %s709_s12  ;;  %v637_v8 = vld [vmem:[%s834_s6] ss:$0 sm:$0xff] }
  0x18   : > { %660 = vmatprep.subr.bf16.mxu1 %v704_v2 }
  0x1a   : > { %661 = vmatpush3.bf16.msra.mxu1 %v690_v43 }
  0x1b   : > { %662 = vmatprep.subr.bf16.mxu1 %v704_v2 }
  0x1e   : > { %663 = vmatpush3.bf16.msra.mxu1 %v691_v44 }
  0x85   : > { %v304_v17 = vpop.permute.xlu0 %303  ;;  %v312_v18 = vpop.permute.xlu1 %311 }
  0x86   : > { %v319_v20 = vsel %vm318_vm6, %v283_v19, %v304_v17 }
  0x89   : > { %v308_v21 = vpop.permute.xlu0 %307  ;;  %v316_v22 = vpop.permute.xlu1 %315 }
  0x8a   : > { %v321_v23 = vsel %vm320_vm7, %v319_v20, %v308_v21 }
  0x8b   : > { %v323_v24 = vsel %vm322_vm8, %v321_v23, %v312_v18 }
  0x8c   : > { %v325_v25 = vsel %vm324_vm9, %v323_v24, %v316_v22 }
  0x8d   : > { %v326_v26 = vpack.c.bf16 %v325_v25, %v325_v25 }
  0x8f   : > { %651 = vmatmul.mubr.msk.bf16.vlgmr.msra.gmra.mxu0 %vm334_vm10, %v326_v26 }
 0x14f   : > { %v376_v30 = vpop.f32.mrf.mxu0 }
 0x150   : > { %v389_v32 = vmul.f32 %v628_v29, %v376_v30 }
 0x151   : > { %v652_v33 = vpop.f32.mrf.mxu0 }
 0x152   : > { %v397_v34 = vadd.f32 %v629_v31, %v389_v32 }
 0x153   : > { %v379_v35 = vpop.f32.mrf.mxu0 }
 0x154   : > { %v399_v36 = vmul.f32 0.044715, %v397_v34  ;;  %v398_v48 = vmul.f32 0.5, %v397_v34 }
 0x155   : > { %v653_v37 = vpop.f32.mrf.mxu0 }
 0x156   : > { %v400_v38 = vmul.f32 %v399_v36, %v397_v34 }
 0x158   : > { %v401_v39 = vmul.f32 %v400_v38, %v397_v34 }
 0x15a   : > { %v402_v40 = vadd.f32 %v401_v39, %v397_v34 }
 0x15c   : > { %v403_v41 = vmul.f32 0.7978846, %v402_v40 }
 0x15e   : > { %692 = vtanh.f32 %v403_v41 }
 0x16b   : > { %v693_v45 = vpop.eup %692 }
 0x16c   : > { %v405_v49 = vadd.f32 1.0, %v693_v45 }
 0x16e   : > { %v406_v50 = vmul.f32 %v405_v49, %v398_v48 }
 0x170   : > { %436 = vrot.lane.b32.xlu1 %v406_v50, %s710_s30  ;;  %v413_v52 = vrot.slane %v406_v50, 5  ;;  %v425_v53 = vrot.slane %v406_v50, 6  ;;  %v419_v56 = vrot.slane %v406_v50, 3  ;;  %v407_v59 = vrot.slane %v406_v50, 2 }
 0x172   : > { %v418_v54 = vsel %vm415_vm11, %v413_v52, 0.0  ;;  %v430_v55 = vsel %vm428_vm12, %v425_v53, 0.0  ;;  %v424_v57 = vsel %vm422_vm13, %v419_v56, 0.0  ;;  %v412_v62 = vsel %vm409_vm14, %v407_v59, 0.0 }
 0x173   : > { %432 = vrot.lane.b32.xlu0 %v418_v54, %s711_s8 }
 0x174   : > { %444 = vrot.lane.b32.xlu1 %v430_v55, %s712_s9 }
 0x177   : > { %440 = vrot.lane.b32.xlu0 %v424_v57, %s713_s10 }
 0x1e2   : > { %v437_v60 = vpop.permute.xlu1 %436 }
 0x1e5   : > { %v433_v61 = vpop.permute.xlu0 %432 }
 0x1e6   : > { %v448_v63 = vsel %vm447_vm15, %v412_v62, %v433_v61  ;;  %v445_v3 = vpop.permute.xlu1 %444 }
 0x1e7   : > { %v450_v2 = vsel %vm449_vm0, %v448_v63, %v437_v60 }
 0x1e9   : > { %v441_v0 = vpop.permute.xlu0 %440 }
 0x1ea   : > { %v452_v4 = vsel %vm451_vm1, %v450_v2, %v441_v0 }
 0x1eb   : > { %v454_v5 = vsel %vm453_vm2, %v452_v4, %v445_v3 }
 0x1ec   : > { %v455_v6 = vpack.c.bf16 %v454_v5, %v454_v5 }
 0x1ee   : > { %665 = vmatmul.mubr.msk.bf16.vlgmr.msra.gmra.mxu1 %vm496_vm3, %v455_v6 }
 0x2ae   : > { %v534_v7 = vpop.f32.mrf.mxu1 }
 0x2af   : > { %v547_v9 = vmul.f32 %v636_v1, %v534_v7 }
 0x2b0   : > { %v666_v10 = vpop.f32.mrf.mxu1 }
 0x2b1   : > { %v555_v11 = vadd.f32 %v637_v8, %v547_v9 }
 0x2b2   : > { %v537_v12 = vpop.f32.mrf.mxu1 }
 0x2b3   : > { %v557_v13 = vmul.f32 0.044715, %v555_v11  ;;  %v556_v20 = vmul.f32 0.5, %v555_v11 }
 0x2b4   : > { %v667_v14 = vpop.f32.mrf.mxu1 }
 0x2b5   : > { %v558_v15 = vmul.f32 %v557_v13, %v555_v11 }
 0x2b7   : > { %v559_v16 = vmul.f32 %v558_v15, %v555_v11 }
 0x2b9   : > { %v560_v17 = vadd.f32 %v559_v16, %v555_v11 }
 0x2bb   : > { %v561_v18 = vmul.f32 0.7978846, %v560_v17 }
 0x2bd   : > { %694 = vtanh.f32 %v561_v18 }
 0x2ca   : > { %v695_v19 = vpop.eup %694 }
 0x2cb   : > { %v563_v21 = vadd.f32 1.0, %v695_v19 }
 0x2cd   : > { %v564_v22 = vmul.f32 %v563_v21, %v556_v20 }
 0x2cf   : > { %565 = vst.msk [vmem:[%s273_s17] sm:$0xff] %vm449_vm0, %v564_v22 }
 0x2d0 PF: > { %s17_s24 = sadd.s32 1, %s702_s24  }
 0x2d1   : > { %p14_p4 = scmp.ge.s32.totalorder %s17_s24, 8  }
 0x2d3   :  { %16 = sbr.rel (!%p14_p4) target bundleno = 1 (0x1), region = 78 }

// kernel: tempose_forward.8
= control target key start
LH: loop header
LB: loop body
LE: loop exit
PB: predicated region body
PF: predicated region fallthrough
CT: control target
= control target key end

     0   :  { %s1477_s21 = smov 0   ;;  %s1636_s0 = inlined_call_operand.vmem [shape: f32[2,5,32], index: 0, kind: input, shape index: {}]   ;;  %s1637_s1 = inlined_call_operand.vmem [shape: f32[1,6,32], index: 1, kind: input, shape index: {}]   ;;  %s1638_s2 = inlined_call_operand.vmem [shape: f32[1,32], index: 2, kind: input, shape index: {}]   ;;  %s1639_s3 = inlined_call_operand.vmem [shape: f32[1,1,32], index: 3, kind: input, shape index: {}]   ;;  %s1640_s4 = inlined_call_operand.vmem [shape: f32[1,1,32], index: 4, kind: input, shape index: {}]   ;;  %s1641_s5 = inlined_call_operand.vmem [shape: bf16[1,32,96], index: 5, kind: input, shape index: {}]   ;;  %s1642_s6 = inlined_call_operand.vmem [shape: bf16[1,32,32], index: 6, kind: input, shape index: {}]   ;;  %s1643_s7 = inlined_call_operand.vmem [shape: f32[1,1,32], index: 7, kind: input, shape index: {}]   ;;  %s1644_s8 = inlined_call_operand.vmem [shape: f32[1,1,32], index: 8, kind: input, shape index: {}]   ;;  %s1645_s9 = inlined_call_operand.vmem [shape: f32[1,1,32], index: 9, kind: input, shape index: {}]   ;;  %s1646_s10 = inlined_call_operand.vmem [shape: bf16[1,32,128], index: 10, kind: input, shape index: {}]   ;;  %s1647_s11 = inlined_call_operand.vmem [shape: f32[1,1,128], index: 11, kind: input, shape index: {}]   ;;  %s1648_s12 = inlined_call_operand.vmem [shape: bf16[1,128,32], index: 12, kind: input, shape index: {}]   ;;  %s1649_s13 = inlined_call_operand.vmem [shape: f32[1,1,32], index: 13, kind: input, shape index: {}]   ;;  %s1650_s14 = inlined_call_operand.vmem [shape: f32[1,32], index: 14, kind: input, shape index: {}]   ;;  %s1651_s15 = inlined_call_operand.vmem [shape: f32[1,32], index: 15, kind: input, shape index: {}]   ;;  %s1652_s16 = inlined_call_operand.vmem [shape: f32[2,1,32], index: 16, kind: output, shape index: {}]  }
   0x1   :  { %1653 = sst [smem:[#allocation2_spill]] %s1636_s0 }
   0x2 LB: > { %s1200_s22 = sadd.s32 4294967295, %s1382_s21   ;;  %p1204_p0 = scmp.ge.s32.totalorder %s1382_s21, 1  ;;  %s1382_s21 = sphi %s1477_s21, %s26_s21  }
   0x3   : > { %p461_p1 = scmp.lt.s32.totalorder %s1382_s21, 3 }
   0x5   : > { %p462_p2 = pnand %p1204_p0, %p461_p1 }
   0x6   : > { %p508_p3 = scmp.lt.s32.totalorder (!%p462_p2), %s1200_s22, 1  ;;  %s1654_s28 = sld [smem:[#allocation2_spill]] (!%p462_p2) }
   0x7   : > { %465 = sbr.rel (%p462_p2) target bundleno = 2713 (0xa99), region = 84  ;;  %s1386_s27 = smov (!%p462_p2), 112  }
   0x8   : > { %s1389_s30 = smov (!%p462_p2), 48   ;;  %s1390_s0 = smov (!%p462_p2), 64  }
   0xc   : > { %s1656_s22 = smov (!%p508_p3, %s1200_s22), 1  ;;  %v516_v0 = vld [vmem:[%s1638_s2] sm:$0x1]  ;;  %vm521_vm0 = vcmask 1040384   ;;  %vm527_vm1 = vcmask 259072   ;;  %v1346_v12 = vld [vmem:[%s1641_s5 + $0x8] sm:$0xff]  }
   0xd   : > { %s1205_s23 = sshll.u32 %s1656_s22, 3  ;;  %v523_v1 = vld [vmem:[%s1637_s1] sm:$0x3f]  ;;  %v1384_v13 = vmov 0.0   ;;  %vm1385_vm2 = vmmov 0   ;;  %vm573_vm3 = vcmask 261120   ;;  %s514_s19 = scalar_lea.vmem %s1652_s16, %s1656_s22 }
   0xe   : > { %s511_s29 = scalar_lea.vmem %s1654_s28, %s1205_s23  ;;  %1262 = vmatprep.subr.bf16.mxu0 %v1384_v13  ;;  %1266 = vmatprep.mubr.msk.bf16.mxu0 %vm1385_vm2, %v1384_v13  ;;  %v1347_v14 = vld [vmem:[%s1641_s5] sm:$0xff]   ;;  %s1387_s28 = smov 96   ;;  %vm621_vm4 = vcmask 130048   ;;  %vm668_vm5 = vcmask 46080   ;;  %vm687_vm6 = vcmask 1042432   ;;  %vm683_vm7 = vcmask 48128  }
   0xf   : > { %v517_v2 = vld [vmem:[%s511_s29] sm:$0x1f]  ;;  %1263 = vmatpush3.bf16.msra.mxu0 %v1346_v12  ;;  %1282 = vmatprep.subr.bf16.mxu1 %v1384_v13  ;;  %s1388_s29 = smov 80   ;;  %s1391_s23 = smov 16   ;;  %vm1136_vm8 = vcmask 253952  }
  0x10   : > { %v519_v3 = vrot.slane %v517_v2, 7  ;;  %1264 = vmatprep.subr.bf16.mxu0 %v1384_v13  ;;  %1284 = vmatprep.mubr.msk.bf16.mxu1 %vm1385_vm2, %v1384_v13  ;;  %v1206_v19 = vld [vmem:[%s1639_s3] ss:$0 sm:$0xff] }
  0x11   : > { %v1207_v21 = vld [vmem:[%s1640_s4] ss:$0 sm:$0xff] }
  0x12   : > { %v522_v4 = vsel %vm521_vm0, %v516_v0, %v519_v3  ;;  %v1348_v3 = vld [vmem:[%s1642_s6 + $0x8] sm:$0xff]  }
  0x13   : > { %v1497_v5 = vadd.f32 %v523_v1, %v522_v4  ;;  %1265 = vmatpush3.bf16.msra.mxu0 %v1347_v14  ;;  %v1349_v4 = vld [vmem:[%s1642_s6] sm:$0xff]  }
  0x14   : > { %1270 = vmatprep.subr.bf16.mxu0 %v1384_v13 }
  0x15   : > { %v528_v6 = vsel %vm527_vm1, %v1497_v5, 0.0 }
  0x16   : > { %529 = vadd.xlane.f32.xlu0 %v528_v6 }
  0x9f   : > { %v530_v7 = vpop.xlane.xlu0 %529 }
  0xa0   : > { %v532_v8 = vmul.f32 0.03125, %v530_v7 }
  0xa2   : > { %v533_v9 = vsub.f32 %v1497_v5, %v532_v8 }
  0xa4   : > { %v534_v10 = vmul.f32 %v533_v9, %v533_v9 }
  0xa6   : > { %v535_v11 = vsel %vm527_vm1, %v534_v10, 0.0 }
  0xa7   : > { %536 = vadd.xlane.f32.xlu0 %v535_v11 }
 0x130   : > { %v537_v15 = vpop.xlane.xlu0 %536 }
 0x131   : > { %v538_v16 = vmul.f32 0.03125, %v537_v15 }
 0x133   : > { %v539_v17 = vadd.f32 1e-05, %v538_v16 }
 0x135   : > { %1360 = vrsqrt.f32 %v539_v17 }
 0x142   : > { %v1361_v18 = vpop.eup %1360 }
 0x143   : > { %v541_v20 = vmul.f32 %v1361_v18, %v533_v9 }
 0x145   : > { %v548_v22 = vmul.f32 %v1206_v19, %v541_v20  ;;  %v1218_v19 = vld [vmem:[%s1643_s7] ss:$0 sm:$0xff] }
 0x147   : > { %v555_v23 = vadd.f32 %v1207_v21, %v548_v22 }
 0x149   : > { %v556_v24 = vpack.c.bf16 %v555_v23, %v555_v23 }
 0x14b   : > { %1267 = vmatmul.mubr.msk.bf16.vlgmr.msra.gmra.mxu0 %vm573_vm3, %v556_v24 }
 0x14c   : > { %1272 = vmatprep.mubr.msk.bf16.mxu0 %vm1385_vm2, %v1384_v13 }
 0x20b   : > { %v611_v25 = vpop.f32.mrf.mxu0 }
 0x20c   : > { %v617_v26 = vpack.c.bf16 %v611_v25, %v611_v25 }
 0x20d   : > { %v1268_v27 = vpop.f32.mrf.mxu0 }
 0x20e   : > { %731 = vrot.lane.b32.xlu0 %v617_v26, %s1386_s27  ;;  %619 = vrot.lane.b32.xlu1 %v617_v26, %s1387_s28 }
 0x20f   : > { %v614_v28 = vpop.f32.mrf.mxu0 }
 0x211   : > { %v1269_v29 = vpop.f32.mrf.mxu0 }
 0x212   : > { %733 = vrot.lane.b32.xlu1 %v617_v26, %s1388_s29 }
 0x280   : > { %v620_v30 = vpop.permute.xlu1 %619  ;;  %v732_v34 = vpop.permute.xlu0 %731 }
 0x281   : > { %v626_v31 = vsel %vm621_vm4, %v620_v30, 0 }
 0x282   : > { %1271 = vmatpush3.bf16.xpose.msra.mxu0 %v626_v31  ;;  %v1351_v31 = vld [vmem:[%s1646_s10] sm:$0xff]  }
 0x283   : > { %1276 = vmatprep.subr.bf16.mxu0 %v1384_v13 }
 0x284   : > { %v734_v32 = vpop.permute.xlu1 %733 }
 0x285   : > { %v739_v33 = vsel %vm621_vm4, %v734_v32, 0 }
 0x286   : > { %1283 = vmatpush3.bf16.xpose.msra.mxu1 %v739_v33 }
 0x287   : > { %1294 = vmatprep.subr.bf16.mxu1 %v1384_v13 }
 0x289   : > { %1273 = vmatmul.mubr.msk.bf16.vlgmr.msra.gmra.mxu0 %vm621_vm4, %v617_v26 }
 0x28a   : > { %1278 = vmatprep.mubr.msk.bf16.mxu0 %vm1385_vm2, %v1384_v13 }
 0x28d   : > { %1285 = vmatmul.mubr.msk.bf16.vlgmr.msra.gmra.mxu1 %vm621_vm4, %v732_v34 }
 0x28e   : > { %1298 = vmatprep.mubr.msk.bf16.mxu1 %vm1385_vm2, %v1384_v13  ;;  %1295 = vmatpush3.bf16.msra.mxu1 %v1348_v3 }
 0x28f   : > { %1296 = vmatprep.subr.bf16.mxu1 %v1384_v13 }
 0x292   : > { %1297 = vmatpush3.bf16.msra.mxu1 %v1349_v4 }
 0x293   : > { %1310 = vmatprep.subr.bf16.mxu1 %v1384_v13 }
 0x349   : > { %v662_v35 = vpop.f32.mrf.mxu0 }
 0x34a   : > { %v669_v36 = vsel %vm668_vm5, %v662_v35, -inf }
 0x34b   : > { %670 = vmax.xlane.f32.xlu1 %v669_v36  ;;  %v1274_v37 = vpop.f32.mrf.mxu0  ;;  %v1219_v36 = vld [vmem:[%s1644_s8] ss:$0 sm:$0xff] }
 0x34d   : > { %v665_v38 = vpop.f32.mrf.mxu0  ;;  %v775_v39 = vpop.f32.mrf.mxu1 }
 0x34e   : > { %v781_v40 = vsel %vm668_vm5, %v775_v39, -inf  ;;  %v1220_v38 = vld [vmem:[%s1645_s9] ss:$0 sm:$0xff] }
 0x34f   : > { %782 = vmax.xlane.f32.xlu0 %v781_v40  ;;  %v1275_v41 = vpop.f32.mrf.mxu0  ;;  %v1286_v42 = vpop.f32.mrf.mxu1 }
 0x350   : > { %v1352_v42 = vld [vmem:[%s1648_s12 + $0x38] sm:$0xff]  }
 0x351   : > { %v778_v43 = vpop.f32.mrf.mxu1 }
 0x352   : > { %v1353_v43 = vld [vmem:[%s1648_s12 + $0x30] sm:$0xff]  }
 0x353   : > { %v1287_v44 = vpop.f32.mrf.mxu1 }
 0x354   : > { %v1354_v44 = vld [vmem:[%s1648_s12 + $0x28] sm:$0xff]  }
 0x365   : > { %793 = vrot.lane.b32.xlu0 %v617_v26, %s1389_s30 }
 0x3d4   : > { %v671_v45 = vpop.xlane.xlu1 %670 }
 0x3d5   : > { %v672_v46 = vsub.f32 %v662_v35, %v671_v45  ;;  %v1355_v45 = vld [vmem:[%s1648_s12 + $0x20] sm:$0xff]  }
 0x3d7   : > { %v673_v47 = vmul.f32 1.442695, %v672_v46  ;;  %v1356_v46 = vld [vmem:[%s1648_s12 + $0x18] sm:$0xff]  }
 0x3d8   : > { %v783_v48 = vpop.xlane.xlu0 %782 }
 0x3d9   : > { %1362 = vpow2.f32 %v673_v47  ;;  %v784_v49 = vsub.f32 %v775_v39, %v783_v48  ;;  %v1357_v47 = vld [vmem:[%s1648_s12 + $0x10] sm:$0xff]   ;;  %v1358_v48 = vld [vmem:[%s1648_s12 + $0x8] sm:$0xff]  }
 0x3db   : > { %v785_v50 = vmul.f32 1.442695, %v784_v49  ;;  %v1359_v49 = vld [vmem:[%s1648_s12] sm:$0xff]  }
 0x3dc   : > { %v794_v61 = vpop.permute.xlu0 %793 }
 0x3dd   : > { %1364 = vpow2.f32 %v785_v50  ;;  %v799_v0 = vsel %vm687_vm6, %v794_v61, 0  ;;  %v1221_v50 = vld [vmem:[%s1647_s11] ss:$0 sm:$0xff] }
 0x3e6   : > { %v1363_v51 = vpop.eup %1362 }
 0x3e7   : > { %v675_v52 = vsel %vm668_vm5, %v1363_v51, 0.0 }
 0x3e8   : > { %676 = vadd.xlane.f32.xlu1 %v675_v52 }
 0x3ea   : > { %v1365_v53 = vpop.eup %1364 }
 0x3eb   : > { %v787_v54 = vsel %vm668_vm5, %v1365_v53, 0.0 }
 0x3ec   : > { %788 = vadd.xlane.f32.xlu1 %v787_v54 }
 0x3fd   : > { %681 = vrot.lane.b32.xlu1 %v617_v26, %s1390_s0 }
 0x471   : > { %v677_v55 = vpop.xlane.xlu1 %676 }
 0x472   : > { %1366 = vrcp.f32 %v677_v55 }
 0x475   : > { %v789_v56 = vpop.xlane.xlu1 %788 }
 0x476   : > { %1368 = vrcp.f32 %v789_v56 }
 0x479   : > { %v682_v57 = vpop.permute.xlu1 %681 }
 0x47a   : > { %v689_v58 = vsel %vm687_vm6, %v682_v57, 0 }
 0x47b   : > { %1277 = vmatpush3.bf16.msra.mxu0 %v689_v58 }
 0x47c   : > { %1288 = vmatprep.subr.bf16.mxu0 %v1384_v13 }
 0x47f   : > { %v1367_v59 = vpop.eup %1366 }
 0x480   : > { %v679_v60 = vmul.f32 %v1367_v59, %v1363_v51 }
 0x482   : > { %v680_v62 = vpack.c.bf16 %v679_v60, %v679_v60 }
 0x483   : > { %v1369_v63 = vpop.eup %1368 }
 0x484   : > { %1279 = vmatmul.mubr.msk.bf16.vlgmr.msra.gmra.mxu0 %vm683_vm7, %v680_v62  ;;  %v791_v1 = vmul.f32 %v1369_v63, %v1365_v53 }
 0x485   : > { %1289 = vmatpush3.bf16.msra.mxu0 %v799_v0  ;;  %1290 = vmatprep.mubr.msk.bf16.mxu0 %vm1385_vm2, %v1384_v13 }
 0x486   : > { %1302 = vmatprep.subr.bf16.mxu0 %v1384_v13  ;;  %v792_v2 = vpack.c.bf16 %v791_v1, %v791_v1 }
 0x48c   : > { %1291 = vmatmul.mubr.msk.bf16.vlgmr.msra.gmra.mxu0 %vm683_vm7, %v792_v2  ;;  %v1233_v2 = vld [vmem:[%s1649_s13] ss:$0 sm:$0xff] }
 0x48d   : > { %1306 = vmatprep.mubr.msk.bf16.mxu0 %vm1385_vm2, %v1384_v13 }
 0x544   : > { %v725_v6 = vpop.f32.mrf.mxu0 }
 0x546   : > { %v1280_v7 = vpop.f32.mrf.mxu0 }
 0x548   : > { %v728_v8 = vpop.f32.mrf.mxu0 }
 0x54a   : > { %v1281_v9 = vpop.f32.mrf.mxu0 }
 0x54c   : > { %v835_v10 = vpop.f32.mrf.mxu0 }
 0x54d   : > { %842 = vrot.lane.b32.xlu1 %v835_v10, %s1391_s23 }
 0x54e   : > { %v1292_v11 = vpop.f32.mrf.mxu0 }
 0x550   : > { %v838_v12 = vpop.f32.mrf.mxu0 }
 0x552   : > { %v1293_v14 = vpop.f32.mrf.mxu0 }
 0x5bf   : > { %v843_v15 = vpop.permute.xlu1 %842 }
 0x5c0   : > { %v845_v16 = vsel %vm621_vm4, %v725_v6, %v843_v15 }
 0x5c1   : > { %v846_v17 = vpack.c.bf16 %v845_v16, %v845_v16 }
 0x5c3   : > { %1299 = vmatmul.mubr.msk.bf16.vlgmr.msra.gmra.mxu1 %vm573_vm3, %v846_v17 }
 0x5c4   : > { %1326 = vmatprep.mubr.msk.bf16.mxu1 %vm1385_vm2, %v1384_v13  ;;  %1311 = vmatpush3.bf16.msra.mxu1 %v1352_v42 }
 0x5c5   : > { %1312 = vmatprep.subr.bf16.mxu1 %v1384_v13 }
 0x5c8   : > { %1313 = vmatpush3.bf16.msra.mxu1 %v1353_v43 }
 0x5c9   : > { %1314 = vmatprep.subr.bf16.mxu1 %v1384_v13 }
 0x5cc   : > { %1315 = vmatpush3.bf16.msra.mxu1 %v1354_v44 }
 0x5cd   : > { %1316 = vmatprep.subr.bf16.mxu1 %v1384_v13 }
 0x5d0   : > { %1317 = vmatpush3.bf16.msra.mxu1 %v1355_v45 }
 0x5d1   : > { %1318 = vmatprep.subr.bf16.mxu1 %v1384_v13 }
 0x5d4   : > { %1319 = vmatpush3.bf16.msra.mxu1 %v1356_v46 }
 0x5d5   : > { %1320 = vmatprep.subr.bf16.mxu1 %v1384_v13 }
 0x5d8   : > { %1321 = vmatpush3.bf16.msra.mxu1 %v1357_v47 }
 0x5d9   : > { %1322 = vmatprep.subr.bf16.mxu1 %v1384_v13 }
 0x5dc   : > { %1323 = vmatpush3.bf16.msra.mxu1 %v1358_v48 }
 0x5dd   : > { %1324 = vmatprep.subr.bf16.mxu1 %v1384_v13 }
 0x5e0   : > { %1325 = vmatpush3.bf16.msra.mxu1 %v1359_v49 }
 0x683   : > { %v900_v18 = vpop.f32.mrf.mxu1 }
 0x684   : > { %v906_v20 = vadd.f32 %v900_v18, %v1497_v5  ;;  %v1350_v5 = vld [vmem:[%s1646_s10 + $0x8] sm:$0xff]  }
 0x685   : > { %v1300_v21 = vpop.f32.mrf.mxu1  ;;  %1303 = vmatpush3.bf16.msra.mxu0 %v1350_v5 }
 0x686   : > { %v1562_v22 = vadd.f32 %v1218_v19, %v906_v20  ;;  %1304 = vmatprep.subr.bf16.mxu0 %v1384_v13  ;;  %v1134_v20 = vld [vmem:[%s1650_s14] sm:$0x1] }
 0x687   : > { %v903_v23 = vpop.f32.mrf.mxu1 }
 0x688   : > { %v917_v24 = vsel %vm527_vm1, %v1562_v22, 0.0 }
 0x689   : > { %918 = vadd.xlane.f32.xlu1 %v917_v24  ;;  %v1301_v25 = vpop.f32.mrf.mxu1  ;;  %1305 = vmatpush3.bf16.msra.mxu0 %v1351_v31 }
 0x712   : > { %v919_v26 = vpop.xlane.xlu1 %918 }
 0x713   : > { %v920_v27 = vmul.f32 0.03125, %v919_v26 }
 0x715   : > { %v921_v28 = vsub.f32 %v1562_v22, %v920_v27 }
 0x717   : > { %v922_v29 = vmul.f32 %v921_v28, %v921_v28 }
 0x719   : > { %v923_v30 = vsel %vm527_vm1, %v922_v29, 0.0 }
 0x71a   : > { %924 = vadd.xlane.f32.xlu0 %v923_v30 }
 0x7a3   : > { %v925_v32 = vpop.xlane.xlu0 %924 }
 0x7a4   : > { %v926_v33 = vmul.f32 0.03125, %v925_v32 }
 0x7a6   : > { %v927_v34 = vadd.f32 1e-05, %v926_v33 }
 0x7a8   : > { %1370 = vrsqrt.f32 %v927_v34 }
 0x7b5   : > { %v1371_v35 = vpop.eup %1370 }
 0x7b6   : > { %v929_v37 = vmul.f32 %v1371_v35, %v921_v28 }
 0x7b8   : > { %v936_v39 = vmul.f32 %v1219_v36, %v929_v37 }
 0x7ba   : > { %v943_v40 = vadd.f32 %v1220_v38, %v936_v39 }
 0x7bc   : > { %v944_v41 = vpack.c.bf16 %v943_v40, %v943_v40 }
 0x7be   : > { %1307 = vmatmul.mubr.msk.bf16.vlgmr.msra.gmra.mxu0 %vm573_vm3, %v944_v41 }
 0x87e   : > { %v1005_v51 = vpop.f32.mrf.mxu0 }
 0x87f   : > { %v1006_v52 = vadd.f32 %v1221_v50, %v1005_v51 }
 0x880   : > { %v1308_v53 = vpop.f32.mrf.mxu0 }
 0x881   : > { %v1012_v54 = vmul.f32 0.044715, %v1006_v52  ;;  %v1011_v62 = vmul.f32 0.5, %v1006_v52 }
 0x882   : > { %v1008_v55 = vpop.f32.mrf.mxu0 }
 0x883   : > { %v1013_v56 = vmul.f32 %v1012_v54, %v1006_v52 }
 0x884   : > { %v1309_v57 = vpop.f32.mrf.mxu0 }
 0x885   : > { %v1014_v58 = vmul.f32 %v1013_v56, %v1006_v52 }
 0x887   : > { %v1015_v59 = vadd.f32 %v1014_v58, %v1006_v52 }
 0x889   : > { %v1016_v60 = vmul.f32 0.7978846, %v1015_v59 }
 0x88b   : > { %1372 = vtanh.f32 %v1016_v60 }
 0x898   : > { %v1373_v61 = vpop.eup %1372 }
 0x899   : > { %v1018_v63 = vadd.f32 1.0, %v1373_v61 }
 0x89b   : > { %v1019_v13 = vmul.f32 %v1018_v63, %v1011_v62 }
 0x89d   : > { %v1020_v0 = vpack.c.bf16 %v1019_v13, %v1019_v13 }
 0x89f   : > { %1327 = vmatmul.mubr.bf16.vlgmr.msra.gmra.mxu1 %v1020_v0 }
 0x95f   : > { %v1119_v1 = vpop.f32.mrf.mxu1 }
 0x960   : > { %v1125_v3 = vadd.f32 %v1119_v1, %v1562_v22  ;;  %v1135_v22 = vld [vmem:[%s1651_s15] sm:$0x1] }
 0x961   : > { %v1328_v4 = vpop.f32.mrf.mxu1 }
 0x962   : > { %v1133_v6 = vadd.f32 %v1233_v2, %v1125_v3 }
 0x963   : > { %v1122_v7 = vpop.f32.mrf.mxu1 }
 0x964   : > { %v1137_v8 = vsel %vm1136_vm8, %v1133_v6, 0.0 }
 0x965   : > { %1138 = vadd.xlane.f32.xlu1 %v1137_v8  ;;  %v1329_v9 = vpop.f32.mrf.mxu1 }
 0x9ee   : > { %v1139_v10 = vpop.xlane.xlu1 %1138 }
 0x9ef   : > { %v1140_v11 = vmul.f32 0.03125, %v1139_v10 }
 0x9f1   : > { %v1141_v12 = vsub.f32 %v1133_v6, %v1140_v11 }
 0x9f3   : > { %v1142_v14 = vmul.f32 %v1141_v12, %v1141_v12 }
 0x9f5   : > { %v1143_v15 = vsel %vm1136_vm8, %v1142_v14, 0.0 }
 0x9f6   : > { %1144 = vadd.xlane.f32.xlu1 %v1143_v15 }
 0xa7f   : > { %v1145_v16 = vpop.xlane.xlu1 %1144 }
 0xa80   : > { %v1146_v17 = vmul.f32 0.03125, %v1145_v16 }
 0xa82   : > { %v1147_v18 = vadd.f32 1e-05, %v1146_v17 }
 0xa84   : > { %1374 = vrsqrt.f32 %v1147_v18 }
 0xa91   : > { %v1375_v19 = vpop.eup %1374 }
 0xa92   : > { %v1149_v21 = vmul.f32 %v1375_v19, %v1141_v12 }
 0xa94   : > { %v1150_v23 = vmul.f32 %v1149_v21, %v1134_v20 }
 0xa96   : > { %v1151_v24 = vadd.f32 %v1150_v23, %v1135_v22 }
 0xa98   : > { %1152 = vst.msk [vmem:[%s514_s19] sm:$0x1] %vm1136_vm8, %v1151_v24 }
 0xa99 PF: > { %s26_s21 = sadd.s32 1, %s1382_s21  }
 0xa9a   : > { %p23_p4 = scmp.ge.s32.totalorder %s26_s21, 4  }
 0xa9c   :  { %25 = sbr.rel (!%p23_p4) target bundleno = 2 (0x2), region = 114 }

// kernel: tempose_forward.9
= control target key start
LH: loop header
LB: loop body
LE: loop exit
PB: predicated region body
PF: predicated region fallthrough
CT: control target
= control target key end

     0   :  { %vm31_vm0 = vcmask 254976   ;;  %s450_s0 = inlined_call_operand.vmem [shape: f32[2,32], index: 0, kind: input, shape index: {}]   ;;  %s451_s1 = inlined_call_operand.vmem [shape: f32[1,32], index: 1, kind: input, shape index: {}]   ;;  %s452_s2 = inlined_call_operand.vmem [shape: f32[1,32], index: 2, kind: input, shape index: {}]   ;;  %s453_s3 = inlined_call_operand.vmem [shape: bf16[32,128], index: 3, kind: input, shape index: {}]   ;;  %s454_s4 = inlined_call_operand.vmem [shape: f32[1,128], index: 4, kind: input, shape index: {}]   ;;  %s455_s5 = inlined_call_operand.vmem [shape: bf16[128,10], index: 5, kind: input, shape index: {}]   ;;  %s456_s6 = inlined_call_operand.vmem [shape: f32[1,10], index: 6, kind: input, shape index: {}]   ;;  %s457_s7 = inlined_call_operand.hbm [shape: f32[2,10], index: 7, kind: output, shape index: {}]  }
   0x1   :  { %v28_v0 = vld [vmem:[%s450_s0] sm:$0x3] }
   0x2   :  { %v32_v1 = vsel %vm31_vm0, %v28_v0, 0.0 }
   0x3   :  { %33 = vadd.xlane.f32.xlu0 %v32_v1 }
   0x4   :  { %12 = vsyncpa [#allocation3], 0  ;;  %v323_v7 = vld [vmem:[%s453_s3 + $0x8] sm:$0xff]   ;;  %v359_v8 = vmov 0.0   ;;  %vm360_vm1 = vmmov 0   ;;  %v324_v9 = vld [vmem:[%s453_s3] sm:$0xff]  }
   0x5   :  { %292 = vmatprep.subr.bf16.mxu0 %v359_v8  ;;  %296 = vmatprep.mubr.msk.bf16.mxu0 %vm360_vm1, %v359_v8  ;;  %v265_v14 = vld [vmem:[%s451_s1] ss:$0 sm:$0xff]  ;;  %vm84_vm2 = vcmask 261120   ;;  %v325_v20 = vld [vmem:[%s455_s5 + $0x38] sm:$0xff]   ;;  %v326_v21 = vld [vmem:[%s455_s5 + $0x30] sm:$0xff]   ;;  %vm249_vm3 = vcmask 74752  }
   0x6   :  { %293 = vmatpush3.bf16.msra.mxu0 %v323_v7  ;;  %300 = vmatprep.subr.bf16.mxu1 %v359_v8  ;;  %v266_v16 = vld [vmem:[%s452_s2] ss:$0 sm:$0xff]  ;;  %v327_v22 = vld [vmem:[%s455_s5 + $0x28] sm:$0xff]   ;;  %v329_v24 = vld [vmem:[%s455_s5 + $0x18] sm:$0xff]  }
   0x7   :  { %294 = vmatprep.subr.bf16.mxu0 %v359_v8  ;;  %316 = vmatprep.mubr.msk.bf16.mxu1 %vm360_vm1, %v359_v8  ;;  %v328_v23 = vld [vmem:[%s455_s5 + $0x20] sm:$0xff]   ;;  %v330_v25 = vld [vmem:[%s455_s5 + $0x10] sm:$0xff]   ;;  %v331_v26 = vld [vmem:[%s455_s5 + $0x8] sm:$0xff]  }
   0x8   :  { %301 = vmatpush3.bf16.msra.mxu1 %v325_v20  ;;  %v332_v27 = vld [vmem:[%s455_s5] sm:$0xff]  }
   0x9   :  { %302 = vmatprep.subr.bf16.mxu1 %v359_v8  ;;  %v267_v28 = vld [vmem:[%s454_s4] ss:$0 sm:$0xff]  ;;  %s361_s4 = smov [#allocation2]  }
   0xa   :  { %295 = vmatpush3.bf16.msra.mxu0 %v324_v9  ;;  %v271_v44 = vld [vmem:[%s456_s6] ss:$0 sm:$0xff]  ;;  %s257_s26 = sshll.u32 %s361_s4, 4  ;;  %s258_s26 = int_to_ptr.vmem [resolvable:$true] %s257_s26 }
   0xb   :  { %s337_s27 = scalar_lea.vmem %s258_s26, 32  ;;  %p342_p1 = scmp.lt.s32.totalorder %s258_s26, %s258_s26 }
   0xc   :  { %303 = vmatpush3.bf16.msra.mxu1 %v326_v21  ;;  %p338_p0 = scmp.ne.s32.totalorder %s258_s26, %s337_s27  ;;  %p343_p2 = scmp.lt.s32.totalorder %s337_s27, %s337_s27 }
   0xd   :  { %304 = vmatprep.subr.bf16.mxu1 %v359_v8 }
   0xe   :  { %p344_p3 = por %p343_p2, %p342_p1 }
  0x10   :  { %305 = vmatpush3.bf16.msra.mxu1 %v327_v22  ;;  %p345_p4 = pnand %p344_p3, %p338_p0 }
  0x11   :  { %306 = vmatprep.subr.bf16.mxu1 %v359_v8 }
  0x14   :  { %307 = vmatpush3.bf16.msra.mxu1 %v328_v23 }
  0x15   :  { %308 = vmatprep.subr.bf16.mxu1 %v359_v8 }
  0x18   :  { %309 = vmatpush3.bf16.msra.mxu1 %v329_v24 }
  0x19   :  { %310 = vmatprep.subr.bf16.mxu1 %v359_v8 }
  0x1c   :  { %311 = vmatpush3.bf16.msra.mxu1 %v330_v25 }
  0x1d   :  { %312 = vmatprep.subr.bf16.mxu1 %v359_v8 }
  0x20   :  { %313 = vmatpush3.bf16.msra.mxu1 %v331_v26 }
  0x21   :  { %314 = vmatprep.subr.bf16.mxu1 %v359_v8 }
  0x24   :  { %315 = vmatpush3.bf16.msra.mxu1 %v332_v27 }
  0x8c   :  { %v34_v2 = vpop.xlane.xlu0 %33 }
  0x8d   :  { %v36_v3 = vmul.f32 0.03125, %v34_v2 }
  0x8f   :  { %v37_v4 = vsub.f32 %v28_v0, %v36_v3 }
  0x91   :  { %v38_v5 = vmul.f32 %v37_v4, %v37_v4 }
  0x93   :  { %v39_v6 = vsel %vm31_vm0, %v38_v5, 0.0 }
  0x94   :  { %40 = vadd.xlane.f32.xlu0 %v39_v6 }
 0x11d   :  { %v41_v10 = vpop.xlane.xlu0 %40 }
 0x11e   :  { %v42_v11 = vmul.f32 0.03125, %v41_v10 }
 0x120   :  { %v43_v12 = vadd.f32 1e-05, %v42_v11 }
 0x122   :  { %333 = vrsqrt.f32 %v43_v12 }
 0x12f   :  { %v334_v13 = vpop.eup %333 }
 0x130   :  { %v45_v15 = vmul.f32 %v334_v13, %v37_v4 }
 0x132   :  { %v52_v17 = vmul.f32 %v265_v14, %v45_v15 }
 0x134   :  { %v59_v18 = vadd.f32 %v266_v16, %v52_v17 }
 0x136   :  { %v60_v19 = vpack.c.bf16 %v59_v18, %v59_v18 }
 0x138   :  { %297 = vmatmul.mubr.msk.bf16.vlgmr.msra.gmra.mxu0 %vm84_vm2, %v60_v19 }
 0x1f8   :  { %v122_v29 = vpop.f32.mrf.mxu0 }
 0x1f9   :  { %v123_v30 = vadd.f32 %v267_v28, %v122_v29 }
 0x1fa   :  { %v298_v31 = vpop.f32.mrf.mxu0 }
 0x1fb   :  { %v129_v32 = vmul.f32 0.044715, %v123_v30  ;;  %v128_v40 = vmul.f32 0.5, %v123_v30 }
 0x1fc   :  { %v125_v33 = vpop.f32.mrf.mxu0 }
 0x1fd   :  { %v130_v34 = vmul.f32 %v129_v32, %v123_v30 }
 0x1fe   :  { %v299_v35 = vpop.f32.mrf.mxu0 }
 0x1ff   :  { %v131_v36 = vmul.f32 %v130_v34, %v123_v30 }
 0x201   :  { %v132_v37 = vadd.f32 %v131_v36, %v123_v30 }
 0x203   :  { %v133_v38 = vmul.f32 0.7978846, %v132_v37 }
 0x205   :  { %335 = vtanh.f32 %v133_v38 }
 0x212   :  { %v336_v39 = vpop.eup %335 }
 0x213   :  { %v135_v41 = vadd.f32 1.0, %v336_v39 }
 0x215   :  { %v136_v42 = vmul.f32 %v135_v41, %v128_v40 }
 0x217   :  { %v137_v43 = vpack.c.bf16 %v136_v42, %v136_v42 }
 0x219   :  { %317 = vmatmul.mubr.bf16.vlgmr.msra.gmra.mxu1 %v137_v43 }
 0x2d9   :  { %v243_v45 = vpop.f32.mrf.mxu1 }
 0x2da   :  { %v244_v46 = vadd.f32 %v271_v44, %v243_v45 }
 0x2db   :  { %v318_v47 = vpop.f32.mrf.mxu1 }
 0x2dc   :  { %250 = vst.msk [vmem:[#allocation2] sm:$0x3] %vm249_vm3, %v244_v46 }
 0x2dd   :  { %v246_v48 = vpop.f32.mrf.mxu1 }
 0x2de   :  { %348 = shalt.err (!%p345_p4)
}
 0x2df   :  { %260 = dma.vmem_to_hbm [thread:$0]  %s258_s26, 32, %s457_s7, [#allocation3]   ;;  %v319_v49 = vpop.f32.mrf.mxu1 }
 0x2e0   :  { %357 = dma.done.wait [#allocation3], 32  }
 0x2e1   :  { %358 = vsyncadd [#allocation3], 4294967264 }
 0x2e2   :  { %264 = vsyncpa [#allocation3], 1 }

// kernel: tempose_forward.7
= control target key start
LH: loop header
LB: loop body
LE: loop exit
PB: predicated region body
PF: predicated region fallthrough
CT: control target
= control target key end

     0   :  { %s2610_s21 = smov 0   ;;  %s2963_s0 = inlined_call_operand.vmem [shape: f32[10,8,32], index: 0, kind: input, shape index: {}]   ;;  %s2964_s1 = inlined_call_operand.vmem [shape: f32[5,9,32], index: 1, kind: input, shape index: {}]   ;;  %s2965_s2 = inlined_call_operand.vmem [shape: f32[1,32], index: 2, kind: input, shape index: {}]   ;;  %s2966_s3 = inlined_call_operand.vmem [shape: f32[2,1,32], index: 3, kind: input, shape index: {}]   ;;  %s2967_s4 = inlined_call_operand.vmem [shape: f32[2,1,32], index: 4, kind: input, shape index: {}]   ;;  %s2968_s5 = inlined_call_operand.vmem [shape: bf16[2,32,96], index: 5, kind: input, shape index: {}]   ;;  %s2969_s6 = inlined_call_operand.vmem [shape: bf16[2,32,32], index: 6, kind: input, shape index: {}]   ;;  %s2970_s7 = inlined_call_operand.vmem [shape: f32[2,1,32], index: 7, kind: input, shape index: {}]   ;;  %s2971_s8 = inlined_call_operand.vmem [shape: f32[2,1,32], index: 8, kind: input, shape index: {}]   ;;  %s2972_s9 = inlined_call_operand.vmem [shape: f32[2,1,32], index: 9, kind: input, shape index: {}]   ;;  %s2973_s10 = inlined_call_operand.vmem [shape: bf16[2,32,128], index: 10, kind: input, shape index: {}]   ;;  %s2974_s11 = inlined_call_operand.vmem [shape: f32[2,1,128], index: 11, kind: input, shape index: {}]   ;;  %s2975_s12 = inlined_call_operand.vmem [shape: bf16[2,128,32], index: 12, kind: input, shape index: {}]   ;;  %s2976_s13 = inlined_call_operand.vmem [shape: f32[2,1,32], index: 13, kind: input, shape index: {}]   ;;  %s2977_s14 = inlined_call_operand.vmem [shape: f32[1,32], index: 14, kind: input, shape index: {}]   ;;  %s2978_s15 = inlined_call_operand.vmem [shape: f32[1,32], index: 15, kind: input, shape index: {}]   ;;  %s2979_s16 = inlined_call_operand.vmem [shape: f32[10,1,32], index: 16, kind: output, shape index: {}]  }
   0x1   :  { %2981 = sst [smem:[#allocation2_spill]] %s2963_s0 }
   0x2 LB: > { %s2093_s22 = sadd.s32 4294967295, %s2514_s21   ;;  %p2103_p0 = scmp.ge.s32.totalorder %s2514_s21, 1  ;;  %s2514_s21 = sphi %s2610_s21, %s26_s21  }
   0x3   : > { %p523_p1 = scmp.lt.s32.totalorder %s2514_s21, 11 }
   0x5   : > { %p524_p2 = pnand %p2103_p0, %p523_p1 }
   0x6   : > { %p588_p3 = scmp.lt.s32.totalorder (!%p524_p2), %s2093_s22, 9  ;;  %s593_s23 = ssub.s32 (!%p524_p2), 0, %s2093_s22 }
   0x7   : > { %527 = sbr.rel (%p524_p2) target bundleno = 6184 (0x1828), region = 84  ;;  %s2105_s25 = smin.u32 (!%p524_p2), %s2093_s22, %s593_s23 }
   0x8   : > { %2448 = sdivrem.u32 (!%p524_p2), %s2105_s25, 5  ;;  %p592_p4 = scmp.lt.s32.totalorder (!%p524_p2), %s2093_s22, 0 }
   0x9   : > { %s2982_s29 = sld [smem:[#allocation2_spill]] (!%p524_p2)  ;;  %s2518_s20 = smov (!%p524_p2), 96  }
   0xa   : > { %s2520_s23 = smov (!%p524_p2), 112   ;;  %s2521_s25 = smov (!%p524_p2), 64  }
   0xc   : > { %s2618_s24 = scalar_select %p588_p3, %s2093_s22, 9  ;;  %v627_v1 = vld [vmem:[%s2965_s2] sm:$0x1]  ;;  %vm632_vm0 = vcmask 1040384   ;;  %vm640_vm1 = vcmask 261120   ;;  %vm644_vm2 = vcmask 253952  }
   0xd   : > { %v2420_v20 = vld [vmem:[%s2968_s5 + $0x8] sm:$0xff]   ;;  %v2516_v21 = vmov 0.0   ;;  %vm2517_vm3 = vmmov 0   ;;  %v2421_v22 = vld [vmem:[%s2968_s5] sm:$0xff]   ;;  %vm750_vm4 = vcmask 130048   ;;  %vm798_vm5 = vcmask 72704  }
   0xe   : > { %s2104_s26 = sshll.u32 %s2618_s24, 3  ;;  %2256 = vmatprep.subr.bf16.mxu1 %v2516_v21  ;;  %2260 = vmatprep.mubr.msk.bf16.mxu1 %vm2517_vm3, %v2516_v21  ;;  %v2110_v31 = vld [vmem:[%s2966_s3] ss:$0 sm:$0xff]  ;;  %vm802_vm6 = vcmask 65536   ;;  %vm828_vm7 = vcmask 1043456   ;;  %vm829_vm8 = vcmask 1044480  }
   0xf   : > { %s591_s30 = scalar_lea.vmem %s2982_s29, %s2104_s26  ;;  %2257 = vmatpush3.bf16.msra.mxu1 %v2420_v20  ;;  %2282 = vmatprep.subr.bf16.mxu0 %v2516_v21  ;;  %v2111_v35 = vld [vmem:[%s2967_s4] ss:$0 sm:$0xff] }
  0x10   : > { %v628_v0 = vld [vmem:[%s591_s30] sm:$0xff]  ;;  %2258 = vmatprep.subr.bf16.mxu1 %v2516_v21  ;;  %2284 = vmatprep.mubr.msk.bf16.mxu0 %vm2517_vm3, %v2516_v21 }
  0x11   : > { %s2449_s0 = spop.drf %2448  ;;  %v630_v2 = vrot.slane %v628_v0, 7  ;;  %v2522_v0 = vmov 65535  }
  0x12   : > { %s597_s17 = ssub.s32 0, %s2449_s0 }
  0x13   : > { %s2985_s17 = smov (!%p592_p4, %s597_s17), %s2449_s0  ;;  %v633_v3 = vsel %vm632_vm0, %v627_v1, %v630_v2  ;;  %2259 = vmatpush3.bf16.msra.mxu1 %v2421_v22  ;;  %v830_v1 = vsel %vm828_vm7, 4294967295, %v2522_v0  ;;  %s2980_s0 = smov 16  }
  0x14   : > { %p2107_p5 = scmp.lt.s32.totalorder %s2985_s17, 0  ;;  %s603_s18 = sadd.s32 5, %s2985_s17  ;;  %2264 = vmatprep.subr.bf16.mxu1 %v2516_v21 }
  0x16   : > { %s2987_s18 = smov (!%p2107_p5, %s603_s18), %s2985_s17 }
  0x17   : > { %p605_p6 = scmp.lt.s32.totalorder %s2987_s18, 4 }
  0x19   : > { %s2989_s18 = smov (!%p605_p6, %s2987_s18), 4 }
  0x1a   : > { %s2203_s22 = sshll.u32 %s2989_s18, 4 }
  0x1b   : > { %s609_s26 = scalar_lea.vmem %s2964_s1, %s2203_s22  ;;  %s2519_s22 = smov 80  }
  0x1c   : > { %v634_v4 = vld [vmem:[%s609_s26] sm:$0xff]  ;;  %v635_v5 = vld [vmem:[%s609_s26 + $0x8] sm:$0x1]  ;;  %s2523_s26 = smov 48  }
  0x1d   : > { %v2630_v6 = vadd.f32 %v634_v4, %v633_v3  ;;  %v2634_v8 = vadd.f32 %v635_v5, %v630_v2  ;;  %v2685_v3 = vsel %vm829_vm8, %v830_v1, 0 }
  0x1f   : > { %v641_v7 = vsel %vm640_vm1, %v2630_v6, 0.0  ;;  %v645_v9 = vsel %vm644_vm2, %v2634_v8, 0.0 }
  0x20   : > { %642 = vadd.xlane.f32.xlu0 %v641_v7 }
  0x24   : > { %646 = vadd.xlane.f32.xlu0 %v645_v9 }
  0xa9   : > { %v643_v10 = vpop.xlane.xlu0 %642 }
  0xaa   : > { %v649_v11 = vmul.f32 0.03125, %v643_v10 }
  0xac   : > { %v651_v12 = vsub.f32 %v2630_v6, %v649_v11 }
  0xad   : > { %v647_v13 = vpop.xlane.xlu0 %646 }
  0xae   : > { %v650_v14 = vmul.f32 0.03125, %v647_v13  ;;  %v653_v15 = vmul.f32 %v651_v12, %v651_v12 }
  0xb0   : > { %v652_v16 = vsub.f32 %v2634_v8, %v650_v14  ;;  %v655_v17 = vsel %vm640_vm1, %v653_v15, 0.0 }
  0xb1   : > { %656 = vadd.xlane.f32.xlu1 %v655_v17 }
  0xb2   : > { %v654_v18 = vmul.f32 %v652_v16, %v652_v16 }
  0xb4   : > { %v658_v19 = vsel %vm644_vm2, %v654_v18, 0.0 }
  0xb5   : > { %659 = vadd.xlane.f32.xlu1 %v658_v19 }
 0x13a   : > { %v657_v23 = vpop.xlane.xlu1 %656 }
 0x13b   : > { %v661_v24 = vmul.f32 0.03125, %v657_v23 }
 0x13d   : > { %v663_v25 = vadd.f32 1e-05, %v661_v24 }
 0x13e   : > { %v660_v26 = vpop.xlane.xlu1 %659 }
 0x13f   : > { %2450 = vrsqrt.f32 %v663_v25  ;;  %v662_v27 = vmul.f32 0.03125, %v660_v26 }
 0x141   : > { %v664_v28 = vadd.f32 1e-05, %v662_v27 }
 0x143   : > { %2452 = vrsqrt.f32 %v664_v28 }
 0x14c   : > { %v2451_v29 = vpop.eup %2450 }
 0x14d   : > { %v667_v30 = vmul.f32 %v2451_v29, %v651_v12 }
 0x14f   : > { %v675_v34 = vmul.f32 %v2110_v31, %v667_v30 }
 0x150   : > { %v2453_v32 = vpop.eup %2452 }
 0x151   : > { %v668_v33 = vmul.f32 %v2453_v32, %v652_v16  ;;  %v683_v37 = vadd.f32 %v2111_v35, %v675_v34 }
 0x153   : > { %v676_v36 = vmul.f32 %v2110_v31, %v668_v33 }
 0x155   : > { %v684_v38 = vadd.f32 %v2111_v35, %v676_v36 }
 0x157   : > { %v685_v39 = vpack.c.bf16 %v684_v38, %v683_v37 }
 0x159   : > { %2261 = vmatmul.mubr.msk.bf16.vlgmr.msra.gmra.mxu1 %vm640_vm1, %v685_v39 }
 0x15a   : > { %2266 = vmatprep.mubr.msk.bf16.mxu1 %vm2517_vm3, %v2516_v21 }
 0x219   : > { %v739_v40 = vpop.f32.mrf.mxu1 }
 0x21b   : > { %v2262_v41 = vpop.f32.mrf.mxu1 }
 0x21d   : > { %v742_v42 = vpop.f32.mrf.mxu1 }
 0x21e   : > { %v2665_v43 = vpack.c.bf16 %v742_v42, %v739_v40 }
 0x21f   : > { %v2263_v44 = vpop.f32.mrf.mxu1 }
 0x220   : > { %748 = vrot.lane.b32.xlu0 %v2665_v43, %s2518_s20 }
 0x224   : > { %878 = vrot.lane.b32.xlu0 %v2665_v43, %s2519_s22 }
 0x228   : > { %876 = vrot.lane.b32.xlu0 %v2665_v43, %s2520_s23 }
 0x292   : > { %v749_v45 = vpop.permute.xlu0 %748 }
 0x293   : > { %v755_v46 = vsel %vm750_vm4, %v749_v45, 0 }
 0x294   : > { %2265 = vmatpush3.bf16.xpose.msra.mxu1 %v755_v46 }
 0x295   : > { %2270 = vmatprep.subr.bf16.mxu1 %v2516_v21 }
 0x296   : > { %v879_v12 = vpop.permute.xlu0 %878 }
 0x297   : > { %v884_v14 = vsel %vm750_vm4, %v879_v12, 0 }
 0x29a   : > { %v877_v15 = vpop.permute.xlu0 %876 }
 0x29b   : > { %2267 = vmatmul.mubr.msk.bf16.vlgmr.msra.gmra.mxu1 %vm750_vm4, %v2665_v43 }
 0x29c   : > { %2272 = vmatprep.mubr.msk.bf16.mxu1 %vm2517_vm3, %v2516_v21 }
 0x35b   : > { %v791_v47 = vpop.f32.mrf.mxu1 }
 0x35c   : > { %v799_v48 = vsel %vm798_vm5, %v791_v47, -inf }
 0x35d   : > { %800 = vmax.xlane.f32.xlu1 %v799_v48  ;;  %v2268_v49 = vpop.f32.mrf.mxu1 }
 0x35f   : > { %v794_v50 = vpop.f32.mrf.mxu1 }
 0x360   : > { %v803_v51 = vsel %vm802_vm6, %v794_v50, -inf }
 0x361   : > { %804 = vmax.xlane.f32.xlu1 %v803_v51  ;;  %v2269_v52 = vpop.f32.mrf.mxu1 }
 0x3e6   : > { %v801_v53 = vpop.xlane.xlu1 %800 }
 0x3e7   : > { %v806_v54 = vsub.f32 %v791_v47, %v801_v53  ;;  %v2423_v47 = vld [vmem:[%s2969_s6] sm:$0xff]  }
 0x3e9   : > { %v808_v55 = vmul.f32 1.442695, %v806_v54 }
 0x3ea   : > { %v805_v56 = vpop.xlane.xlu1 %804 }
 0x3eb   : > { %2454 = vpow2.f32 %v808_v55  ;;  %v807_v57 = vsub.f32 %v794_v50, %v805_v56 }
 0x3ed   : > { %v810_v58 = vmul.f32 1.442695, %v807_v57 }
 0x3ef   : > { %2456 = vpow2.f32 %v810_v58 }
 0x3f8   : > { %v2455_v59 = vpop.eup %2454 }
 0x3f9   : > { %v812_v60 = vsel %vm798_vm5, %v2455_v59, 0.0 }
 0x3fa   : > { %813 = vadd.xlane.f32.xlu1 %v812_v60  ;;  %v2122_v60 = vld [vmem:[%s2970_s7] ss:$0 sm:$0xff] }
 0x3fc   : > { %v2457_v61 = vpop.eup %2456 }
 0x3fd   : > { %v815_v62 = vsel %vm802_vm6, %v2457_v61, 0.0 }
 0x3fe   : > { %816 = vadd.xlane.f32.xlu1 %v815_v62 }
 0x40f   : > { %823 = vrot.lane.b32.xlu1 %v2665_v43, %s2521_s25 }
 0x483   : > { %v814_v63 = vpop.xlane.xlu1 %813 }
 0x484   : > { %2458 = vrcp.f32 %v814_v63 }
 0x487   : > { %v817_v2 = vpop.xlane.xlu1 %816 }
 0x488   : > { %2460 = vrcp.f32 %v817_v2 }
 0x48b   : > { %v824_v4 = vpop.permute.xlu1 %823 }
 0x48c   : > { %v833_v5 = vand.u32 %v2685_v3, %v824_v4 }
 0x48e   : > { %2271 = vmatpush3.bf16.msra.mxu1 %v833_v5 }
 0x48f   : > { %2276 = vmatprep.subr.bf16.mxu1 %v2516_v21 }
 0x491   : > { %v2459_v7 = vpop.eup %2458 }
 0x492   : > { %v820_v10 = vmul.f32 %v2459_v7, %v2455_v59 }
 0x495   : > { %v2461_v9 = vpop.eup %2460 }
 0x496   : > { %v821_v11 = vmul.f32 %v2461_v9, %v2457_v61 }
 0x498   : > { %v822_v13 = vpack.c.bf16 %v821_v11, %v820_v10 }
 0x49a   : > { %2273 = vmatmul.mubr.msk.bf16.vlgmr.msra.gmra.mxu1 %vm798_vm5, %v822_v13 }
 0x49b   : > { %2277 = vmatpush3.bf16.xpose.msra.mxu1 %v884_v14  ;;  %2278 = vmatprep.mubr.msk.bf16.mxu1 %vm2517_vm3, %v2516_v21 }
 0x49c   : > { %2288 = vmatprep.subr.bf16.mxu1 %v2516_v21 }
 0x4a2   : > { %2279 = vmatmul.mubr.msk.bf16.vlgmr.msra.gmra.mxu1 %vm750_vm4, %v877_v15 }
 0x4a3   : > { %2292 = vmatprep.mubr.msk.bf16.mxu1 %vm2517_vm3, %v2516_v21 }
 0x55a   : > { %v869_v16 = vpop.f32.mrf.mxu1 }
 0x55c   : > { %v2274_v17 = vpop.f32.mrf.mxu1 }
 0x55d   : > { %v2424_v17 = vld [vmem:[%s2973_s10 + $0x8] sm:$0xff]  }
 0x55e   : > { %v872_v18 = vpop.f32.mrf.mxu1 }
 0x560   : > { %v2275_v19 = vpop.f32.mrf.mxu1 }
 0x562   : > { %v920_v20 = vpop.f32.mrf.mxu1 }
 0x563   : > { %v927_v22 = vsel %vm798_vm5, %v920_v20, -inf }
 0x564   : > { %928 = vmax.xlane.f32.xlu0 %v927_v22  ;;  %v2280_v23 = vpop.f32.mrf.mxu1 }
 0x566   : > { %v923_v24 = vpop.f32.mrf.mxu1 }
 0x567   : > { %v930_v25 = vsel %vm802_vm6, %v923_v24, -inf }
 0x568   : > { %931 = vmax.xlane.f32.xlu1 %v930_v25  ;;  %v2281_v26 = vpop.f32.mrf.mxu1 }
 0x5ed   : > { %v929_v27 = vpop.xlane.xlu0 %928 }
 0x5ee   : > { %v933_v28 = vsub.f32 %v920_v20, %v929_v27 }
 0x5f0   : > { %v935_v29 = vmul.f32 1.442695, %v933_v28  ;;  %v2123_v28 = vld [vmem:[%s2971_s8] ss:$0 sm:$0xff] }
 0x5f1   : > { %v932_v30 = vpop.xlane.xlu1 %931 }
 0x5f2   : > { %2462 = vpow2.f32 %v935_v29  ;;  %v934_v31 = vsub.f32 %v923_v24, %v932_v30 }
 0x5f4   : > { %v937_v32 = vmul.f32 1.442695, %v934_v31 }
 0x5f6   : > { %2464 = vpow2.f32 %v937_v32  ;;  %v2124_v32 = vld [vmem:[%s2972_s9] ss:$0 sm:$0xff] }
 0x5ff   : > { %v2463_v33 = vpop.eup %2462 }
 0x600   : > { %v939_v34 = vsel %vm798_vm5, %v2463_v33, 0.0 }
 0x601   : > { %940 = vadd.xlane.f32.xlu0 %v939_v34 }
 0x603   : > { %v2465_v35 = vpop.eup %2464 }
 0x604   : > { %v942_v36 = vsel %vm802_vm6, %v2465_v35, 0.0 }
 0x605   : > { %943 = vadd.xlane.f32.xlu0 %v942_v36 }
 0x61b   : > { %950 = vrot.lane.b32.xlu0 %v2665_v43, %s2523_s26  ;;  %v2422_v43 = vld [vmem:[%s2969_s6 + $0x8] sm:$0xff]  }
 0x61c   : > { %2289 = vmatpush3.bf16.msra.mxu1 %v2422_v43 }
 0x61d   : > { %2290 = vmatprep.subr.bf16.mxu1 %v2516_v21 }
 0x620   : > { %2291 = vmatpush3.bf16.msra.mxu1 %v2423_v47 }
 0x621   : > { %2304 = vmatprep.subr.bf16.mxu1 %v2516_v21 }
 0x68a   : > { %v941_v37 = vpop.xlane.xlu0 %940 }
 0x68b   : > { %2466 = vrcp.f32 %v941_v37  ;;  %v2426_v37 = vld [vmem:[%s2975_s12 + $0x38] sm:$0xff]  }
 0x68e   : > { %v944_v38 = vpop.xlane.xlu0 %943 }
 0x68f   : > { %2468 = vrcp.f32 %v944_v38  ;;  %v2427_v38 = vld [vmem:[%s2975_s12 + $0x30] sm:$0xff]  }
 0x692   : > { %v951_v39 = vpop.permute.xlu0 %950 }
 0x693   : > { %v956_v40 = vand.u32 %v951_v39, %v2685_v3  ;;  %v2428_v39 = vld [vmem:[%s2975_s12 + $0x28] sm:$0xff]  }
 0x695   : > { %2283 = vmatpush3.bf16.msra.mxu0 %v956_v40  ;;  %v2429_v40 = vld [vmem:[%s2975_s12 + $0x20] sm:$0xff]  }
 0x696   : > { %2296 = vmatprep.subr.bf16.mxu0 %v2516_v21 }
 0x698   : > { %v2467_v41 = vpop.eup %2466 }
 0x699   : > { %v947_v44 = vmul.f32 %v2467_v41, %v2463_v33  ;;  %v2430_v41 = vld [vmem:[%s2975_s12 + $0x18] sm:$0xff]  }
 0x69c   : > { %v2469_v42 = vpop.eup %2468 }
 0x69d   : > { %v948_v45 = vmul.f32 %v2469_v42, %v2465_v35  ;;  %v2431_v42 = vld [vmem:[%s2975_s12 + $0x10] sm:$0xff]  }
 0x69f   : > { %v949_v46 = vpack.c.bf16 %v948_v45, %v947_v44  ;;  %v2432_v44 = vld [vmem:[%s2975_s12 + $0x8] sm:$0xff]   ;;  %v2433_v45 = vld [vmem:[%s2975_s12] sm:$0xff]  }
 0x6a1   : > { %2285 = vmatmul.mubr.msk.bf16.vlgmr.msra.gmra.mxu0 %vm798_vm5, %v949_v46  ;;  %v2125_v46 = vld [vmem:[%s2974_s11] ss:$0 sm:$0xff] }
 0x6a2   : > { %2300 = vmatprep.mubr.msk.bf16.mxu0 %vm2517_vm3, %v2516_v21  ;;  %2297 = vmatpush3.bf16.msra.mxu0 %v2424_v17 }
 0x6a3   : > { %2298 = vmatprep.subr.bf16.mxu0 %v2516_v21 }
 0x761   : > { %v992_v48 = vpop.f32.mrf.mxu0 }
 0x763   : > { %v2286_v49 = vpop.f32.mrf.mxu0 }
 0x765   : > { %v995_v50 = vpop.f32.mrf.mxu0 }
 0x766   : > { %v2410_v51 = vpack.i.bf16 %v995_v50, %v992_v48 }
 0x767   : > { %v2287_v52 = vpop.f32.mrf.mxu0 }
 0x768   : > { %2411 = vrot.lane.b32.xlu1 %v2410_v51, %s2980_s0 }
 0x7da   : > { %v2412_v53 = vpop.permute.xlu1 %2411 }
 0x7db   : > { %v2414_v54 = vunpack.i.h.bf16 %v2412_v53  ;;  %v2413_v55 = vunpack.i.l.bf16 %v2412_v53 }
 0x7dd   : > { %v1008_v56 = vsel %vm750_vm4, %v872_v18, %v2414_v54  ;;  %v1007_v57 = vsel %vm750_vm4, %v869_v16, %v2413_v55  ;;  %v2425_v18 = vld [vmem:[%s2973_s10] sm:$0xff]  }
 0x7de   : > { %v1009_v58 = vpack.c.bf16 %v1008_v56, %v1007_v57  ;;  %2299 = vmatpush3.bf16.msra.mxu0 %v2425_v18 }
 0x7df   : > { %2324 = vmatprep.subr.bf16.mxu0 %v2516_v21 }
 0x7e0   : > { %2293 = vmatmul.mubr.msk.bf16.vlgmr.msra.gmra.mxu1 %vm640_vm1, %v1009_v58 }
 0x7e1   : > { %2320 = vmatprep.mubr.msk.bf16.mxu1 %vm2517_vm3, %v2516_v21  ;;  %2305 = vmatpush3.bf16.msra.mxu1 %v2426_v37 }
 0x7e2   : > { %2306 = vmatprep.subr.bf16.mxu1 %v2516_v21 }
 0x7e5   : > { %2307 = vmatpush3.bf16.msra.mxu1 %v2427_v38 }
 0x7e6   : > { %2308 = vmatprep.subr.bf16.mxu1 %v2516_v21 }
 0x7e9   : > { %2309 = vmatpush3.bf16.msra.mxu1 %v2428_v39 }
 0x7ea   : > { %2310 = vmatprep.subr.bf16.mxu1 %v2516_v21 }
 0x7ed   : > { %2311 = vmatpush3.bf16.msra.mxu1 %v2429_v40  ;;  %v2140_v40 = vld [vmem:[%s2966_s3 + $0x1] ss:$0 sm:$0xff] }
 0x7ee   : > { %2312 = vmatprep.subr.bf16.mxu1 %v2516_v21 }
 0x7f1   : > { %2313 = vmatpush3.bf16.msra.mxu1 %v2430_v41 }
 0x7f2   : > { %2314 = vmatprep.subr.bf16.mxu1 %v2516_v21 }
 0x7f5   : > { %2315 = vmatpush3.bf16.msra.mxu1 %v2431_v42 }
 0x7f6   : > { %2316 = vmatprep.subr.bf16.mxu1 %v2516_v21 }
 0x7f9   : > { %2317 = vmatpush3.bf16.msra.mxu1 %v2432_v44 }
 0x7fa   : > { %2318 = vmatprep.subr.bf16.mxu1 %v2516_v21 }
 0x7fd   : > { %2319 = vmatpush3.bf16.msra.mxu1 %v2433_v45  ;;  %v2141_v45 = vld [vmem:[%s2967_s4 + $0x1] ss:$0 sm:$0xff] }
 0x7fe   : > { %2350 = vmatprep.subr.bf16.mxu1 %v2516_v21 }
 0x8a0   : > { %v1063_v59 = vpop.f32.mrf.mxu1 }
 0x8a1   : > { %v1070_v61 = vadd.f32 %v1063_v59, %v2630_v6 }
 0x8a2   : > { %v2294_v62 = vpop.f32.mrf.mxu1 }
 0x8a3   : > { %v2726_v63 = vadd.f32 %v2122_v60, %v1070_v61 }
 0x8a4   : > { %v1066_v0 = vpop.f32.mrf.mxu1 }
 0x8a5   : > { %v1071_v1 = vadd.f32 %v1066_v0, %v2634_v8  ;;  %v1083_v2 = vsel %vm640_vm1, %v2726_v63, 0.0 }
 0x8a6   : > { %1084 = vadd.xlane.f32.xlu1 %v1083_v2  ;;  %v2295_v4 = vpop.f32.mrf.mxu1 }
 0x8a7   : > { %v2731_v5 = vadd.f32 %v2122_v60, %v1071_v1 }
 0x8a9   : > { %v1086_v7 = vsel %vm644_vm2, %v2731_v5, 0.0 }
 0x8aa   : > { %1087 = vadd.xlane.f32.xlu0 %v1086_v7 }
 0x92f   : > { %v1085_v9 = vpop.xlane.xlu1 %1084 }
 0x930   : > { %v1089_v10 = vmul.f32 0.03125, %v1085_v9 }
 0x932   : > { %v1091_v6 = vsub.f32 %v2726_v63, %v1089_v10 }
 0x933   : > { %v1088_v11 = vpop.xlane.xlu0 %1087 }
 0x934   : > { %v1090_v12 = vmul.f32 0.03125, %v1088_v11  ;;  %v1093_v13 = vmul.f32 %v1091_v6, %v1091_v6 }
 0x936   : > { %v1092_v8 = vsub.f32 %v2731_v5, %v1090_v12  ;;  %v1095_v14 = vsel %vm640_vm1, %v1093_v13, 0.0  ;;  %v2137_v12 = vld [vmem:[%s2976_s13] ss:$0 sm:$0xff] }
 0x937   : > { %1096 = vadd.xlane.f32.xlu0 %v1095_v14 }
 0x938   : > { %v1094_v15 = vmul.f32 %v1092_v8, %v1092_v8 }
 0x93a   : > { %v1098_v16 = vsel %vm644_vm2, %v1094_v15, 0.0 }
 0x93b   : > { %1099 = vadd.xlane.f32.xlu1 %v1098_v16 }
 0x9c0   : > { %v1097_v19 = vpop.xlane.xlu0 %1096 }
 0x9c1   : > { %v1101_v20 = vmul.f32 0.03125, %v1097_v19 }
 0x9c3   : > { %v1103_v22 = vadd.f32 1e-05, %v1101_v20 }
 0x9c4   : > { %v1100_v23 = vpop.xlane.xlu1 %1099 }
 0x9c5   : > { %2470 = vrsqrt.f32 %v1103_v22  ;;  %v1102_v24 = vmul.f32 0.03125, %v1100_v23 }
 0x9c7   : > { %v1104_v25 = vadd.f32 1e-05, %v1102_v24 }
 0x9c9   : > { %2472 = vrsqrt.f32 %v1104_v25 }
 0x9d2   : > { %v2471_v26 = vpop.eup %2470 }
 0x9d3   : > { %v1107_v27 = vmul.f32 %v2471_v26, %v1091_v6 }
 0x9d5   : > { %v1115_v31 = vmul.f32 %v2123_v28, %v1107_v27 }
 0x9d6   : > { %v2473_v29 = vpop.eup %2472 }
 0x9d7   : > { %v1108_v30 = vmul.f32 %v2473_v29, %v1092_v8  ;;  %v1123_v34 = vadd.f32 %v2124_v32, %v1115_v31  ;;  %v2435_v31 = vld [vmem:[%s2968_s5 + $0x10] sm:$0xff]  }
 0x9d9   : > { %v1116_v33 = vmul.f32 %v2123_v28, %v1108_v30  ;;  %v2434_v30 = vld [vmem:[%s2968_s5 + $0x18] sm:$0xff]  }
 0x9db   : > { %v1124_v35 = vadd.f32 %v2124_v32, %v1116_v33 }
 0x9dd   : > { %v1125_v36 = vpack.c.bf16 %v1124_v35, %v1123_v34 }
 0x9df   : > { %2301 = vmatmul.mubr.msk.bf16.vlgmr.msra.gmra.mxu0 %vm640_vm1, %v1125_v36 }
 0x9e0   : > { %2328 = vmatprep.mubr.msk.bf16.mxu0 %vm2517_vm3, %v2516_v21  ;;  %2325 = vmatpush3.bf16.msra.mxu0 %v2434_v30 }
 0x9e1   : > { %2326 = vmatprep.subr.bf16.mxu0 %v2516_v21 }
 0x9e4   : > { %2327 = vmatpush3.bf16.msra.mxu0 %v2435_v31 }
 0x9e5   : > { %2332 = vmatprep.subr.bf16.mxu0 %v2516_v21 }
 0xa9f   : > { %v1186_v43 = vpop.f32.mrf.mxu0 }
 0xaa0   : > { %v1187_v47 = vadd.f32 %v2125_v46, %v1186_v43 }
 0xaa1   : > { %v2302_v48 = vpop.f32.mrf.mxu0 }
 0xaa2   : > { %v1195_v49 = vmul.f32 0.044715, %v1187_v47  ;;  %v1193_v2 = vmul.f32 0.5, %v1187_v47 }
 0xaa3   : > { %v1189_v50 = vpop.f32.mrf.mxu0 }
 0xaa4   : > { %v1197_v51 = vmul.f32 %v1195_v49, %v1187_v47  ;;  %v1190_v52 = vadd.f32 %v2125_v46, %v1189_v50 }
 0xaa5   : > { %v2303_v53 = vpop.f32.mrf.mxu0 }
 0xaa6   : > { %v1199_v54 = vmul.f32 %v1197_v51, %v1187_v47  ;;  %v1196_v55 = vmul.f32 0.044715, %v1190_v52  ;;  %v1194_v4 = vmul.f32 0.5, %v1190_v52 }
 0xaa8   : > { %v1201_v56 = vadd.f32 %v1199_v54, %v1187_v47  ;;  %v1198_v57 = vmul.f32 %v1196_v55, %v1190_v52 }
 0xaaa   : > { %v1203_v58 = vmul.f32 0.7978846, %v1201_v56  ;;  %v1200_v59 = vmul.f32 %v1198_v57, %v1190_v52 }
 0xaac   : > { %2474 = vtanh.f32 %v1203_v58  ;;  %v1202_v60 = vadd.f32 %v1200_v59, %v1190_v52 }
 0xaae   : > { %v1204_v61 = vmul.f32 0.7978846, %v1202_v60 }
 0xab0   : > { %2476 = vtanh.f32 %v1204_v61 }
 0xab9   : > { %v2475_v62 = vpop.eup %2474 }
 0xaba   : > { %v1207_v0 = vadd.f32 1.0, %v2475_v62 }
 0xabc   : > { %v1209_v9 = vmul.f32 %v1207_v0, %v1193_v2 }
 0xabd   : > { %v2477_v1 = vpop.eup %2476 }
 0xabe   : > { %v1208_v7 = vadd.f32 1.0, %v2477_v1 }
 0xac0   : > { %v1210_v10 = vmul.f32 %v1208_v7, %v1194_v4 }
 0xac2   : > { %v1211_v6 = vpack.c.bf16 %v1210_v10, %v1209_v9 }
 0xac4   : > { %2321 = vmatmul.mubr.bf16.vlgmr.msra.gmra.mxu1 %v1211_v6 }
 0xac5   : > { %2352 = vmatprep.mubr.msk.bf16.mxu1 %vm2517_vm3, %v2516_v21 }
 0xb84   : > { %v1310_v11 = vpop.f32.mrf.mxu1 }
 0xb85   : > { %v1317_v13 = vadd.f32 %v1310_v11, %v2726_v63 }
 0xb86   : > { %v2322_v8 = vpop.f32.mrf.mxu1 }
 0xb87   : > { %v2797_v14 = vadd.f32 %v2137_v12, %v1317_v13 }
 0xb88   : > { %v1313_v15 = vpop.f32.mrf.mxu1 }
 0xb89   : > { %v1318_v16 = vadd.f32 %v1313_v15, %v2731_v5  ;;  %v1332_v17 = vsel %vm640_vm1, %v2797_v14, 0.0 }
 0xb8a   : > { %1333 = vadd.xlane.f32.xlu0 %v1332_v17  ;;  %v2323_v18 = vpop.f32.mrf.mxu1 }
 0xb8b   : > { %v2802_v19 = vadd.f32 %v2137_v12, %v1318_v16 }
 0xb8d   : > { %v1335_v20 = vsel %vm644_vm2, %v2802_v19, 0.0 }
 0xb8e   : > { %1336 = vadd.xlane.f32.xlu1 %v1335_v20 }
 0xc13   : > { %v1334_v22 = vpop.xlane.xlu0 %1333 }
 0xc14   : > { %v1338_v23 = vmul.f32 0.03125, %v1334_v22 }
 0xc16   : > { %v1340_v63 = vsub.f32 %v2797_v14, %v1338_v23 }
 0xc17   : > { %v1337_v24 = vpop.xlane.xlu1 %1336 }
 0xc18   : > { %v1339_v25 = vmul.f32 0.03125, %v1337_v24  ;;  %v1342_v26 = vmul.f32 %v1340_v63, %v1340_v63 }
 0xc1a   : > { %v1341_v5 = vsub.f32 %v2802_v19, %v1339_v25  ;;  %v1344_v27 = vsel %vm640_vm1, %v1342_v26, 0.0 }
 0xc1b   : > { %1345 = vadd.xlane.f32.xlu0 %v1344_v27 }
 0xc1c   : > { %v1343_v28 = vmul.f32 %v1341_v5, %v1341_v5 }
 0xc1e   : > { %v1347_v29 = vsel %vm644_vm2, %v1343_v28, 0.0 }
 0xc1f   : > { %1348 = vadd.xlane.f32.xlu1 %v1347_v29 }
 0xca4   : > { %v1346_v32 = vpop.xlane.xlu0 %1345 }
 0xca5   : > { %v1350_v33 = vmul.f32 0.03125, %v1346_v32 }
 0xca7   : > { %v1352_v34 = vadd.f32 1e-05, %v1350_v33 }
 0xca8   : > { %v1349_v35 = vpop.xlane.xlu1 %1348 }
 0xca9   : > { %2478 = vrsqrt.f32 %v1352_v34  ;;  %v1351_v36 = vmul.f32 0.03125, %v1349_v35 }
 0xcab   : > { %v1353_v37 = vadd.f32 1e-05, %v1351_v36 }
 0xcad   : > { %2480 = vrsqrt.f32 %v1353_v37 }
 0xcb6   : > { %v2479_v38 = vpop.eup %2478 }
 0xcb7   : > { %v1356_v39 = vmul.f32 %v2479_v38, %v1340_v63 }
 0xcb9   : > { %v1364_v44 = vmul.f32 %v2140_v40, %v1356_v39 }
 0xcba   : > { %v2481_v41 = vpop.eup %2480 }
 0xcbb   : > { %v1357_v42 = vmul.f32 %v2481_v41, %v1341_v5  ;;  %v1372_v43 = vadd.f32 %v2141_v45, %v1364_v44 }
 0xcbd   : > { %v1365_v46 = vmul.f32 %v2140_v40, %v1357_v42 }
 0xcbf   : > { %v1373_v47 = vadd.f32 %v2141_v45, %v1365_v46 }
 0xcc1   : > { %v1374_v48 = vpack.c.bf16 %v1373_v47, %v1372_v43 }
 0xcc3   : > { %2329 = vmatmul.mubr.msk.bf16.vlgmr.msra.gmra.mxu0 %vm640_vm1, %v1374_v48 }
 0xcc4   : > { %2334 = vmatprep.mubr.msk.bf16.mxu0 %vm2517_vm3, %v2516_v21 }
 0xd83   : > { %v1429_v49 = vpop.f32.mrf.mxu0 }
 0xd85   : > { %v2330_v50 = vpop.f32.mrf.mxu0 }
 0xd87   : > { %v1432_v51 = vpop.f32.mrf.mxu0 }
 0xd88   : > { %v2827_v52 = vpack.c.bf16 %v1432_v51, %v1429_v49 }
 0xd89   : > { %v2331_v53 = vpop.f32.mrf.mxu0 }
 0xd8a   : > { %1438 = vrot.lane.b32.xlu0 %v2827_v52, %s2518_s20 }
 0xd8e   : > { %1561 = vrot.lane.b32.xlu0 %v2827_v52, %s2519_s22 }
 0xd92   : > { %1559 = vrot.lane.b32.xlu0 %v2827_v52, %s2520_s23  ;;  %s625_s23 = scalar_lea.vmem %s2979_s16, %s2618_s24 }
 0xdfc   : > { %v1439_v54 = vpop.permute.xlu0 %1438 }
 0xdfd   : > { %v1444_v55 = vsel %vm750_vm4, %v1439_v54, 0 }
 0xdfe   : > { %2333 = vmatpush3.bf16.xpose.msra.mxu0 %v1444_v55 }
 0xdff   : > { %2338 = vmatprep.subr.bf16.mxu0 %v2516_v21 }
 0xe00   : > { %v1562_v22 = vpop.permute.xlu0 %1561 }
 0xe01   : > { %v1567_v63 = vsel %vm750_vm4, %v1562_v22, 0 }
 0xe04   : > { %v1560_v24 = vpop.permute.xlu0 %1559 }
 0xe05   : > { %2335 = vmatmul.mubr.msk.bf16.vlgmr.msra.gmra.mxu0 %vm750_vm4, %v2827_v52 }
 0xe06   : > { %2340 = vmatprep.mubr.msk.bf16.mxu0 %vm2517_vm3, %v2516_v21 }
 0xec5   : > { %v1480_v56 = vpop.f32.mrf.mxu0 }
 0xec6   : > { %v1487_v57 = vsel %vm798_vm5, %v1480_v56, -inf }
 0xec7   : > { %1488 = vmax.xlane.f32.xlu1 %v1487_v57  ;;  %v2336_v58 = vpop.f32.mrf.mxu0 }
 0xec9   : > { %v1483_v59 = vpop.f32.mrf.mxu0 }
 0xeca   : > { %v1490_v60 = vsel %vm802_vm6, %v1483_v59, -inf }
 0xecb   : > { %1491 = vmax.xlane.f32.xlu1 %v1490_v60  ;;  %v2337_v61 = vpop.f32.mrf.mxu0 }
 0xf50   : > { %v1489_v62 = vpop.xlane.xlu1 %1488 }
 0xf51   : > { %v1493_v0 = vsub.f32 %v1480_v56, %v1489_v62 }
 0xf53   : > { %v1495_v1 = vmul.f32 1.442695, %v1493_v0 }
 0xf54   : > { %v1492_v2 = vpop.xlane.xlu1 %1491 }
 0xf55   : > { %2482 = vpow2.f32 %v1495_v1  ;;  %v1494_v4 = vsub.f32 %v1483_v59, %v1492_v2 }
 0xf57   : > { %v1497_v7 = vmul.f32 1.442695, %v1494_v4  ;;  %v2161_v4 = vld [vmem:[%s2970_s7 + $0x1] ss:$0 sm:$0xff] }
 0xf59   : > { %2484 = vpow2.f32 %v1497_v7 }
 0xf62   : > { %v2483_v9 = vpop.eup %2482 }
 0xf63   : > { %v1499_v10 = vsel %vm798_vm5, %v2483_v9, 0.0 }
 0xf64   : > { %1500 = vadd.xlane.f32.xlu1 %v1499_v10 }
 0xf66   : > { %v2485_v6 = vpop.eup %2484 }
 0xf67   : > { %v1502_v11 = vsel %vm802_vm6, %v2485_v6, 0.0 }
 0xf68   : > { %1503 = vadd.xlane.f32.xlu1 %v1502_v11 }
 0xf79   : > { %1510 = vrot.lane.b32.xlu1 %v2827_v52, %s2521_s25 }
 0xfed   : > { %v1501_v12 = vpop.xlane.xlu1 %1500 }
 0xfee   : > { %2486 = vrcp.f32 %v1501_v12 }
 0xff1   : > { %v1504_v13 = vpop.xlane.xlu1 %1503 }
 0xff2   : > { %2488 = vrcp.f32 %v1504_v13 }
 0xff5   : > { %v1511_v8 = vpop.permute.xlu1 %1510 }
 0xff6   : > { %v1516_v15 = vand.u32 %v1511_v8, %v2685_v3 }
 0xff8   : > { %2339 = vmatpush3.bf16.msra.mxu0 %v1516_v15 }
 0xff9   : > { %2344 = vmatprep.subr.bf16.mxu0 %v2516_v21 }
 0xffb   : > { %v2487_v16 = vpop.eup %2486 }
 0xffc   : > { %v1507_v18 = vmul.f32 %v2487_v16, %v2483_v9 }
 0xfff   : > { %v2489_v17 = vpop.eup %2488 }
0x1000   : > { %v1508_v20 = vmul.f32 %v2489_v17, %v2485_v6 }
0x1002   : > { %v1509_v23 = vpack.c.bf16 %v1508_v20, %v1507_v18 }
0x1004   : > { %2341 = vmatmul.mubr.msk.bf16.vlgmr.msra.gmra.mxu0 %vm798_vm5, %v1509_v23 }
0x1005   : > { %2345 = vmatpush3.bf16.xpose.msra.mxu0 %v1567_v63  ;;  %2346 = vmatprep.mubr.msk.bf16.mxu0 %vm2517_vm3, %v2516_v21 }
0x1006   : > { %2356 = vmatprep.subr.bf16.mxu0 %v2516_v21 }
0x100c   : > { %2347 = vmatmul.mubr.msk.bf16.vlgmr.msra.gmra.mxu0 %vm750_vm4, %v1560_v24 }
0x100d   : > { %2360 = vmatprep.mubr.msk.bf16.mxu0 %vm2517_vm3, %v2516_v21 }
0x10c4   : > { %v1552_v25 = vpop.f32.mrf.mxu0 }
0x10c6   : > { %v2342_v26 = vpop.f32.mrf.mxu0 }
0x10c7   : > { %v2439_v26 = vld [vmem:[%s2973_s10 + $0x10] sm:$0xff]  }
0x10c8   : > { %v1555_v5 = vpop.f32.mrf.mxu0 }
0x10ca   : > { %v2343_v27 = vpop.f32.mrf.mxu0 }
0x10cc   : > { %v1603_v28 = vpop.f32.mrf.mxu0 }
0x10cd   : > { %v1610_v29 = vsel %vm798_vm5, %v1603_v28, -inf }
0x10ce   : > { %1611 = vmax.xlane.f32.xlu0 %v1610_v29  ;;  %v2348_v30 = vpop.f32.mrf.mxu0 }
0x10d0   : > { %v1606_v31 = vpop.f32.mrf.mxu0 }
0x10d1   : > { %v1613_v32 = vsel %vm802_vm6, %v1606_v31, -inf }
0x10d2   : > { %1614 = vmax.xlane.f32.xlu1 %v1613_v32  ;;  %v2349_v33 = vpop.f32.mrf.mxu0 }
0x1157   : > { %v1612_v34 = vpop.xlane.xlu0 %1611 }
0x1158   : > { %v1616_v35 = vsub.f32 %v1603_v28, %v1612_v34  ;;  %v2164_v34 = vld [vmem:[%s2971_s8 + $0x1] ss:$0 sm:$0xff] }
0x115a   : > { %v1618_v36 = vmul.f32 1.442695, %v1616_v35 }
0x115b   : > { %v1615_v37 = vpop.xlane.xlu1 %1614 }
0x115c   : > { %2490 = vpow2.f32 %v1618_v36  ;;  %v1617_v38 = vsub.f32 %v1606_v31, %v1615_v37 }
0x115e   : > { %v1620_v39 = vmul.f32 1.442695, %v1617_v38  ;;  %v2165_v38 = vld [vmem:[%s2972_s9 + $0x1] ss:$0 sm:$0xff] }
0x1160   : > { %2492 = vpow2.f32 %v1620_v39 }
0x1169   : > { %v2491_v40 = vpop.eup %2490 }
0x116a   : > { %v1622_v41 = vsel %vm798_vm5, %v2491_v40, 0.0 }
0x116b   : > { %1623 = vadd.xlane.f32.xlu0 %v1622_v41 }
0x116d   : > { %v2493_v42 = vpop.eup %2492 }
0x116e   : > { %v1625_v44 = vsel %vm802_vm6, %v2493_v42, 0.0 }
0x116f   : > { %1626 = vadd.xlane.f32.xlu0 %v1625_v44  ;;  %v2440_v44 = vld [vmem:[%s2975_s12 + $0x78] sm:$0xff]  }
0x1185   : > { %1633 = vrot.lane.b32.xlu0 %v2827_v52, %s2523_s26  ;;  %v2436_v52 = vld [vmem:[%s2969_s6 + $0x18] sm:$0xff]   ;;  %s2983_s26 = smov 16  }
0x1186   : > { %2357 = vmatpush3.bf16.msra.mxu0 %v2436_v52 }
0x1187   : > { %2358 = vmatprep.subr.bf16.mxu0 %v2516_v21 }
0x11f4   : > { %v1624_v45 = vpop.xlane.xlu0 %1623 }
0x11f5   : > { %2494 = vrcp.f32 %v1624_v45  ;;  %v2441_v45 = vld [vmem:[%s2975_s12 + $0x70] sm:$0xff]  }
0x11f8   : > { %v1627_v46 = vpop.xlane.xlu0 %1626 }
0x11f9   : > { %2496 = vrcp.f32 %v1627_v46  ;;  %v2442_v46 = vld [vmem:[%s2975_s12 + $0x68] sm:$0xff]  }
0x11fc   : > { %v1634_v43 = vpop.permute.xlu0 %1633 }
0x11fd   : > { %v1639_v47 = vand.u32 %v1634_v43, %v2685_v3  ;;  %v2437_v3 = vld [vmem:[%s2969_s6 + $0x10] sm:$0xff]   ;;  %v2443_v43 = vld [vmem:[%s2975_s12 + $0x60] sm:$0xff]  }
0x11fe   : > { %2359 = vmatpush3.bf16.msra.mxu0 %v2437_v3 }
0x11ff   : > { %2351 = vmatpush3.bf16.msra.mxu1 %v1639_v47  ;;  %2372 = vmatprep.subr.bf16.mxu0 %v2516_v21  ;;  %v2444_v47 = vld [vmem:[%s2975_s12 + $0x58] sm:$0xff]  }
0x1200   : > { %2364 = vmatprep.subr.bf16.mxu1 %v2516_v21 }
0x1202   : > { %v2495_v48 = vpop.eup %2494 }
0x1203   : > { %v1630_v50 = vmul.f32 %v2495_v48, %v2491_v40  ;;  %v2445_v48 = vld [vmem:[%s2975_s12 + $0x50] sm:$0xff]  }
0x1206   : > { %v2497_v49 = vpop.eup %2496 }
0x1207   : > { %v1631_v51 = vmul.f32 %v2497_v49, %v2493_v42  ;;  %v2446_v49 = vld [vmem:[%s2975_s12 + $0x48] sm:$0xff]  }
0x1209   : > { %v1632_v53 = vpack.c.bf16 %v1631_v51, %v1630_v50  ;;  %v2447_v50 = vld [vmem:[%s2975_s12 + $0x40] sm:$0xff]  }
0x120a   : > { %v2171_v51 = vld [vmem:[%s2974_s11 + $0x1] ss:$0 sm:$0xff] }
0x120b   : > { %2353 = vmatmul.mubr.msk.bf16.vlgmr.msra.gmra.mxu1 %vm798_vm5, %v1632_v53 }
0x120c   : > { %2368 = vmatprep.mubr.msk.bf16.mxu1 %vm2517_vm3, %v2516_v21 }
0x12cb   : > { %v1675_v54 = vpop.f32.mrf.mxu1 }
0x12cd   : > { %v2354_v55 = vpop.f32.mrf.mxu1 }
0x12cf   : > { %v1678_v56 = vpop.f32.mrf.mxu1 }
0x12d0   : > { %v2415_v57 = vpack.i.bf16 %v1678_v56, %v1675_v54 }
0x12d1   : > { %v2355_v58 = vpop.f32.mrf.mxu1 }
0x12d2   : > { %2416 = vrot.lane.b32.xlu1 %v2415_v57, %s2983_s26 }
0x1344   : > { %v2417_v59 = vpop.permute.xlu1 %2416 }
0x1345   : > { %v2419_v60 = vunpack.i.h.bf16 %v2417_v59  ;;  %v2418_v61 = vunpack.i.l.bf16 %v2417_v59 }
0x1347   : > { %v1691_v62 = vsel %vm750_vm4, %v1555_v5, %v2419_v60  ;;  %v1690_v0 = vsel %vm750_vm4, %v1552_v25, %v2418_v61  ;;  %v2438_v25 = vld [vmem:[%s2973_s10 + $0x18] sm:$0xff]  }
0x1348   : > { %v1692_v1 = vpack.c.bf16 %v1691_v62, %v1690_v0  ;;  %2365 = vmatpush3.bf16.msra.mxu1 %v2438_v25 }
0x1349   : > { %2366 = vmatprep.subr.bf16.mxu1 %v2516_v21 }
0x134a   : > { %2361 = vmatmul.mubr.msk.bf16.vlgmr.msra.gmra.mxu0 %vm640_vm1, %v1692_v1 }
0x134b   : > { %2388 = vmatprep.mubr.msk.bf16.mxu0 %vm2517_vm3, %v2516_v21  ;;  %2373 = vmatpush3.bf16.msra.mxu0 %v2440_v44 }
0x134c   : > { %2367 = vmatpush3.bf16.msra.mxu1 %v2439_v26  ;;  %2374 = vmatprep.subr.bf16.mxu0 %v2516_v21 }
0x134f   : > { %2375 = vmatpush3.bf16.msra.mxu0 %v2441_v45 }
0x1350   : > { %2376 = vmatprep.subr.bf16.mxu0 %v2516_v21 }
0x1353   : > { %2377 = vmatpush3.bf16.msra.mxu0 %v2442_v46 }
0x1354   : > { %2378 = vmatprep.subr.bf16.mxu0 %v2516_v21 }
0x1357   : > { %2379 = vmatpush3.bf16.msra.mxu0 %v2443_v43 }
0x1358   : > { %2380 = vmatprep.subr.bf16.mxu0 %v2516_v21 }
0x135b   : > { %2381 = vmatpush3.bf16.msra.mxu0 %v2444_v47 }
0x135c   : > { %2382 = vmatprep.subr.bf16.mxu0 %v2516_v21 }
0x135f   : > { %2383 = vmatpush3.bf16.msra.mxu0 %v2445_v48 }
0x1360   : > { %2384 = vmatprep.subr.bf16.mxu0 %v2516_v21 }
0x1363   : > { %2385 = vmatpush3.bf16.msra.mxu0 %v2446_v49 }
0x1364   : > { %2386 = vmatprep.subr.bf16.mxu0 %v2516_v21 }
0x1367   : > { %2387 = vmatpush3.bf16.msra.mxu0 %v2447_v50 }
0x140a   : > { %v1747_v2 = vpop.f32.mrf.mxu0 }
0x140b   : > { %v1754_v7 = vadd.f32 %v1747_v2, %v2797_v14 }
0x140c   : > { %v2362_v9 = vpop.f32.mrf.mxu0 }
0x140d   : > { %v2886_v10 = vadd.f32 %v2161_v4, %v1754_v7 }
0x140e   : > { %v1750_v6 = vpop.f32.mrf.mxu0 }
0x140f   : > { %v1755_v11 = vadd.f32 %v1750_v6, %v2802_v19  ;;  %v1770_v12 = vsel %vm640_vm1, %v2886_v10, 0.0 }
0x1410   : > { %1771 = vadd.xlane.f32.xlu1 %v1770_v12  ;;  %v2363_v13 = vpop.f32.mrf.mxu0 }
0x1411   : > { %v1765_v8 = vadd.f32 %v2161_v4, %v1755_v11 }
0x1413   : > { %v1773_v15 = vsel %vm644_vm2, %v1765_v8, 0.0 }
0x1414   : > { %1774 = vadd.xlane.f32.xlu0 %v1773_v15 }
0x1499   : > { %v1772_v16 = vpop.xlane.xlu1 %1771 }
0x149a   : > { %v1776_v17 = vmul.f32 0.03125, %v1772_v16 }
0x149c   : > { %v1778_v18 = vsub.f32 %v2886_v10, %v1776_v17  ;;  %v2200_v17 = vld [vmem:[%s2976_s13 + $0x1] ss:$0 sm:$0xff] }
0x149d   : > { %v1775_v14 = vpop.xlane.xlu0 %1774 }
0x149e   : > { %v1777_v20 = vmul.f32 0.03125, %v1775_v14  ;;  %v1780_v22 = vmul.f32 %v1778_v18, %v1778_v18 }
0x14a0   : > { %v1779_v23 = vsub.f32 %v1765_v8, %v1777_v20  ;;  %v1782_v63 = vsel %vm640_vm1, %v1780_v22, 0.0 }
0x14a1   : > { %1783 = vadd.xlane.f32.xlu0 %v1782_v63 }
0x14a2   : > { %v1781_v19 = vmul.f32 %v1779_v23, %v1779_v23 }
0x14a4   : > { %v1785_v24 = vsel %vm644_vm2, %v1781_v19, 0.0 }
0x14a5   : > { %1786 = vadd.xlane.f32.xlu1 %v1785_v24 }
0x152a   : > { %v1784_v5 = vpop.xlane.xlu0 %1783 }
0x152b   : > { %v1788_v27 = vmul.f32 0.03125, %v1784_v5 }
0x152d   : > { %v1790_v28 = vadd.f32 1e-05, %v1788_v27 }
0x152e   : > { %v1787_v29 = vpop.xlane.xlu1 %1786 }
0x152f   : > { %2498 = vrsqrt.f32 %v1790_v28  ;;  %v1789_v30 = vmul.f32 0.03125, %v1787_v29 }
0x1531   : > { %v1791_v31 = vadd.f32 1e-05, %v1789_v30  ;;  %v2016_v30 = vld [vmem:[%s2977_s14] sm:$0x1] }
0x1533   : > { %2500 = vrsqrt.f32 %v1791_v31 }
0x153c   : > { %v2499_v32 = vpop.eup %2498 }
0x153d   : > { %v1794_v33 = vmul.f32 %v2499_v32, %v1778_v18  ;;  %v2017_v32 = vld [vmem:[%s2978_s15] sm:$0x1] }
0x153f   : > { %v1802_v37 = vmul.f32 %v2164_v34, %v1794_v33 }
0x1540   : > { %v2501_v35 = vpop.eup %2500 }
0x1541   : > { %v1795_v36 = vmul.f32 %v2501_v35, %v1779_v23  ;;  %v1810_v40 = vadd.f32 %v2165_v38, %v1802_v37 }
0x1543   : > { %v1803_v39 = vmul.f32 %v2164_v34, %v1795_v36 }
0x1545   : > { %v1811_v41 = vadd.f32 %v2165_v38, %v1803_v39 }
0x1547   : > { %v1812_v42 = vpack.c.bf16 %v1811_v41, %v1810_v40 }
0x1549   : > { %2369 = vmatmul.mubr.msk.bf16.vlgmr.msra.gmra.mxu1 %vm640_vm1, %v1812_v42 }
0x1609   : > { %v1875_v53 = vpop.f32.mrf.mxu1 }
0x160a   : > { %v1876_v52 = vadd.f32 %v2171_v51, %v1875_v53 }
0x160b   : > { %v2370_v3 = vpop.f32.mrf.mxu1 }
0x160c   : > { %v1884_v54 = vmul.f32 0.044715, %v1876_v52  ;;  %v1882_v6 = vmul.f32 0.5, %v1876_v52 }
0x160d   : > { %v1878_v55 = vpop.f32.mrf.mxu1 }
0x160e   : > { %v1886_v56 = vmul.f32 %v1884_v54, %v1876_v52  ;;  %v1879_v57 = vadd.f32 %v2171_v51, %v1878_v55 }
0x160f   : > { %v2371_v58 = vpop.f32.mrf.mxu1 }
0x1610   : > { %v1888_v59 = vmul.f32 %v1886_v56, %v1876_v52  ;;  %v1885_v60 = vmul.f32 0.044715, %v1879_v57  ;;  %v1883_v11 = vmul.f32 0.5, %v1879_v57 }
0x1612   : > { %v1890_v61 = vadd.f32 %v1888_v59, %v1876_v52  ;;  %v1887_v62 = vmul.f32 %v1885_v60, %v1879_v57 }
0x1614   : > { %v1892_v0 = vmul.f32 0.7978846, %v1890_v61  ;;  %v1889_v1 = vmul.f32 %v1887_v62, %v1879_v57 }
0x1616   : > { %2502 = vtanh.f32 %v1892_v0  ;;  %v1891_v21 = vadd.f32 %v1889_v1, %v1879_v57 }
0x1618   : > { %v1893_v2 = vmul.f32 0.7978846, %v1891_v21 }
0x161a   : > { %2504 = vtanh.f32 %v1893_v2 }
0x1623   : > { %v2503_v4 = vpop.eup %2502 }
0x1624   : > { %v1896_v7 = vadd.f32 1.0, %v2503_v4 }
0x1626   : > { %v1898_v13 = vmul.f32 %v1896_v7, %v1882_v6 }
0x1627   : > { %v2505_v9 = vpop.eup %2504 }
0x1628   : > { %v1897_v12 = vadd.f32 1.0, %v2505_v9 }
0x162a   : > { %v1899_v8 = vmul.f32 %v1897_v12, %v1883_v11 }
0x162c   : > { %v1900_v15 = vpack.c.bf16 %v1899_v8, %v1898_v13 }
0x162e   : > { %2389 = vmatmul.mubr.bf16.vlgmr.msra.gmra.mxu0 %v1900_v15 }
0x16ee   : > { %v2000_v16 = vpop.f32.mrf.mxu0 }
0x16ef   : > { %v2006_v18 = vadd.f32 %v2000_v16, %v2886_v10 }
0x16f0   : > { %v2390_v14 = vpop.f32.mrf.mxu0 }
0x16f1   : > { %v2015_v20 = vadd.f32 %v2200_v17, %v2006_v18 }
0x16f2   : > { %v2003_v22 = vpop.f32.mrf.mxu0 }
0x16f3   : > { %v2018_v23 = vsel %vm644_vm2, %v2015_v20, 0.0 }
0x16f4   : > { %2019 = vadd.xlane.f32.xlu0 %v2018_v23  ;;  %v2391_v63 = vpop.f32.mrf.mxu0 }
0x177d   : > { %v2020_v19 = vpop.xlane.xlu0 %2019 }
0x177e   : > { %v2021_v24 = vmul.f32 0.03125, %v2020_v19 }
0x1780   : > { %v2022_v25 = vsub.f32 %v2015_v20, %v2021_v24 }
0x1782   : > { %v2023_v26 = vmul.f32 %v2022_v25, %v2022_v25 }
0x1784   : > { %v2024_v5 = vsel %vm644_vm2, %v2023_v26, 0.0 }
0x1785   : > { %2025 = vadd.xlane.f32.xlu1 %v2024_v5 }
0x180e   : > { %v2026_v27 = vpop.xlane.xlu1 %2025 }
0x180f   : > { %v2027_v28 = vmul.f32 0.03125, %v2026_v27 }
0x1811   : > { %v2028_v29 = vadd.f32 1e-05, %v2027_v28 }
0x1813   : > { %2506 = vrsqrt.f32 %v2028_v29 }
0x1820   : > { %v2507_v10 = vpop.eup %2506 }
0x1821   : > { %v2030_v31 = vmul.f32 %v2507_v10, %v2022_v25 }
0x1823   : > { %v2031_v33 = vmul.f32 %v2030_v31, %v2016_v30 }
0x1825   : > { %v2032_v34 = vadd.f32 %v2031_v33, %v2017_v32 }
0x1827   : > { %2033 = vst.msk [vmem:[%s625_s23] sm:$0x1] %vm644_vm2, %v2032_v34 }
0x1828 PF: > { %s26_s21 = sadd.s32 1, %s2514_s21  }
0x1829   : > { %p23_p7 = scmp.ge.s32.totalorder %s26_s21, 12  }
0x182b   :  { %25 = sbr.rel (!%p23_p7) target bundleno = 2 (0x2), region = 128 }

</bundles_post_ra>
